<compile_context>
chip_gen: v6e
topology: v6e:2x2x1
jax: 0.10.0
libtpu: 0.0.40
codegen_flags: <defaults>
</compile_context>

<pallas_src>
import jax
import jax.numpy as jnp
from jax.experimental import pallas as pl
from jax.experimental.pallas import tpu as pltpu


def _copy_kernel(x_ref, o_ref):
    # Pure streaming copy of the current (tile_r, lane) tile; the reshape
    # itself is only a metadata change done in the JAX wrapper.
    o_ref[...] = x_ref[...]


_MAX_LANE = 2048               # lane (last-dim) width cap: large multiple of 128
_TARGET_TILE_BYTES = 4 << 20   # ~4 MiB per tile (amortizes ~0.35 us/step cost)
_MIN_SPLIT_BYTES = 4 << 20     # force >=2 grid steps above this (v7x megacore)
_VMEM_LIMIT_BYTES = 32 << 20   # 4 live 4 MiB buffers = 16 MiB; legal on v5e too


def _lane_dense_width(total):
    """Largest multiple of 128 (<= _MAX_LANE) that divides `total`, or None."""
    lane = _MAX_LANE
    while lane >= 128:
        if total % lane == 0:
            return lane
        lane -= 128
    return None


def _pick_tile_rows(rows, lane, itemsize):
    """Choose the sublane tile height.

    Returns either `rows` (full-extent block, always legal) or a multiple of
    the sublane pack factor, preferring a value that divides `rows` exactly
    and that keeps >= 2 grid steps for multi-MiB copies.
    """
    pack = max(8, 32 // itemsize)  # sublane packing: 8 f32 / 16 bf16 / 32 int8
    row_bytes = lane * itemsize
    max_rows_by_bytes = max(pack, (_TARGET_TILE_BYTES // row_bytes) // pack * pack)
    total_bytes = rows * row_bytes

    cap = min(rows, max_rows_by_bytes)
    # Guarantee >= 2 grid steps on multi-MiB arrays so the "parallel" grid
    # axis can shard the copy across both v7x TensorCores.
    if total_bytes >= _MIN_SPLIT_BYTES and cap >= rows:
        cap = max(pack, (rows // 2) // pack * pack)

    if cap >= rows:
        return rows  # single full-extent tile (legal for any rows)

    cap = max(pack, (cap // pack) * pack)
    # Prefer a tile height that divides rows -> no partial trailing tile.
    t = cap
    while t >= pack:
        if rows % t == 0:
            return t
        t -= pack
    return cap  # accept a ragged last tile (Pallas handles the edge block)


def reshape_pallas(x, batch_sizeGR, features, seq_length, *, copy=False):
    """forward(x) = x.reshape(batch_sizeGR, features, seq_length).

    copy=False (default): metadata-only reshape, zero HBM traffic.
    copy=True: materialize a fresh, un-aliased buffer via a pipelined
               Pallas streaming copy, then apply the metadata-only reshape.
    """
    total = batch_sizeGR * features * seq_length
    assert x.size == total, (
        f"cannot reshape array of size {x.size} into "
        f"({batch_sizeGR}, {features}, {seq_length})"
    )
    out_shape = (batch_sizeGR, features, seq_length)

    if not copy:
        # Contiguous reshape is metadata-only; this is the recommended path.
        return jnp.reshape(x, out_shape)

    lane = _lane_dense_width(total)
    if lane is None:
        # No lane-dense (multiple-of-128) slab exists; a copy kernel would only
        # add masked partial stores on top of 2x HBM traffic.
        return jnp.reshape(x, out_shape)

    rows = total // lane
    itemsize = jnp.dtype(x.dtype).itemsize
    tile_r = _pick_tile_rows(rows, lane, itemsize)
    grid = (pl.cdiv(rows, tile_r),)

    # Zero-cost row-major view of the flat data as a lane-dense slab.
    x2d = jnp.reshape(x, (rows, lane))

    out2d = pl.pallas_call(
        _copy_kernel,
        out_shape=jax.ShapeDtypeStruct((rows, lane), x.dtype),
        grid=grid,
        in_specs=[pl.BlockSpec((tile_r, lane), lambda i: (i, 0))],
        out_specs=pl.BlockSpec((tile_r, lane), lambda i: (i, 0)),
        # NOTE: no input_output_aliases - the copy path exists precisely to
        # produce a distinct output buffer; aliasing made it a no-op rewrite
        # (donated input) or 4x HBM traffic (defensive copy).
        compiler_params=pltpu.CompilerParams(
            # Independent row-tiles: shard across the 2 TCs on v7x megacore.
            dimension_semantics=("parallel",),
            vmem_limit_bytes=_VMEM_LIMIT_BYTES,
        ),
    )(x2d)

    # Final logical (metadata-only) view to (B, F, S).
    return jnp.reshape(out2d, out_shape)


if __name__ == "__main__":
    key = jax.random.PRNGKey(0)
    k1, k2, k3 = jax.random.split(key, 3)

    # Case 1: the module's nominal small configuration (B=2, F=4, S=16);
    # input is e.g. a flattened activation of shape (B, F*S).
    # Default path: metadata-only reshape (no HBM traffic).
    B, F, S = 2, 4, 16
    x = jax.random.normal(k1, (B, F * S), dtype=jnp.float32)
    out = jax.block_until_ready(reshape_pallas(x, B, F, S))
    ref = jnp.reshape(x, (B, F, S))
    assert out.shape == (B, F, S)
    assert out.dtype == x.dtype
    assert bool(jnp.all(out == ref))

    # Case 2: explicit materialized copy on a larger array; exercises the
    # multi-tile pipelined grid (rows=2048, tile_r=512 -> grid=(4,), 4 MiB
    # tiles, "parallel" axis).
    B2, F2, S2 = 8, 512, 1024
    x2 = jax.random.normal(k2, (B2, F2, S2 // 2, 2), dtype=jnp.float32)
    out2 = jax.block_until_ready(reshape_pallas(x2, B2, F2, S2, copy=True))
    ref2 = jnp.reshape(x2, (B2, F2, S2))
    assert out2.shape == (B2, F2, S2)
    assert out2.dtype == x2.dtype
    assert bool(jnp.all(out2 == ref2))

    # Case 3: 4 MiB array where a single tile would fit, but the forced-split
    # rule halves tile_r (rows=512, tile_r=256 -> grid=(2,)) so both v7x
    # TensorCores get work.
    B3, F3, S3 = 2, 512, 1024
    x3 = jax.random.normal(k3, (B3, F3 * S3), dtype=jnp.float32)
    out3 = jax.block_until_ready(reshape_pallas(x3, B3, F3, S3, copy=True))
    ref3 = jnp.reshape(x3, (B3, F3, S3))
    assert out3.shape == (B3, F3, S3)
    assert bool(jnp.all(out3 == ref3))

    print("KERNEL_OK")
</pallas_src>

<mosaic_0001>
module attributes {stable_mosaic.version = 11 : i64} {
  func.func @_copy_kernel(%arg0: i32, %arg1: memref<512x2048xf32, #tpu.memory_space<vmem>>, %arg2: memref<512x2048xf32, #tpu.memory_space<vmem>>) attributes {dimension_semantics = [#tpu.dimension_semantics<parallel>], iteration_bounds = array<i64: 4>, scalar_prefetch = 0 : i64, scratch_operands = 0 : i64, tpu.core_type = #tpu.core_type<tc>, window_params = [{transform_indices = @transform_0, window_bounds = array<i64: 512, 2048>}, {transform_indices = @transform_1, window_bounds = array<i64: 512, 2048>}]} {
    %c0 = arith.constant 0 : index
    %c0_0 = arith.constant 0 : index
    %0 = vector.load %arg1[%c0, %c0_0] : memref<512x2048xf32, #tpu.memory_space<vmem>>, vector<512x2048xf32>
    %c0_1 = arith.constant 0 : index
    %c0_2 = arith.constant 0 : index
    %1 = vector.load %arg2[%c0_1, %c0_2] : memref<512x2048xf32, #tpu.memory_space<vmem>>, vector<512x2048xf32>
    tpu.vector_store %arg2[%c0_1, %c0_2], %0 {strides = array<i32>} : memref<512x2048xf32, #tpu.memory_space<vmem>>, vector<512x2048xf32>,
    return
  }
  func.func @transform_0(%arg0: i32) -> (i32, i32) {
    %c0_i32 = arith.constant 0 : i32
    %c0_i32_0 = arith.constant 0 : i32
    return %arg0, %c0_i32 : i32, i32
  }
  func.func @transform_1(%arg0: i32) -> (i32, i32) {
    %c0_i32 = arith.constant 0 : i32
    %c0_i32_0 = arith.constant 0 : i32
    return %arg0, %c0_i32 : i32, i32
  }
}

</mosaic_0001>

<bundles_post_ra>
// kernel: tpu_custom_call.1
= control target key start
LH: loop header
LB: loop body
LE: loop exit
PB: predicated region body
PF: predicated region fallthrough
CT: control target
= control target key end

     0   :  { %6 = vsyncpa [#allocation3], 0  ;;  %s4659_s0 = inlined_call_operand.hbm [shape: f32[2048,2048], index: 0, kind: input, shape index: {}]   ;;  %s4660_s1 = inlined_call_operand.hbm [shape: f32[2048,2048], index: 1, kind: output, shape index: {}]  }
   0x1   :  { %8 = vsyncpa [#allocation3 + $0x1], 0 }
   0x2   :  { %9 = vsyncpa [#allocation4], 0 }
   0x3   :  { %11 = vsyncpa [#allocation4 + $0x1], 0  ;;  %s2454_s6 = smov 0   ;;  %s2456_s7 = smov 0  }
   0x4   :  { %s2458_s8 = smov 0   ;;  %s2460_s9 = smov 0  }
   0x5 LB: > { %s2475_s10 = sadd.s32 4294967295, %s2436_s9   ;;  %s2274_s11 = sadd.s32 4294967294, %s2436_s9   ;;  %s2436_s9 = sphi %s2460_s9, %s4674_s9   ;;  %s2432_s8 = sphi %s2458_s8, %s4673_s8   ;;  %s2428_s7 = sphi %s2456_s7, %s4672_s7   ;;  %s2424_s6 = sphi %s2454_s6, %s4671_s6  }
   0x6   : > { %s2479_s12 = sadd.s32 1, %s2436_s9   ;;  %s24_s13 = sadd.s32 1, %s2432_s8 }
   0x7   : > { %s21_s14 = ssub.s32 %s2436_s9, %s2479_s12  ;;  %p31_p0 = scmp.ne.s32.totalorder %s2432_s8, %s2428_s7 }
   0x8   : > { %p22_p1 = scmp.eq.s32.totalorder %s21_s14, 0  ;;  %p32_p2 = scmp.eq.s32.totalorder %s2436_s9, 0 }
   0x9   : > { %p37_p3 = scmp.ne.s32.totalorder %s2428_s7, %s2424_s6  ;;  %p38_p4 = scmp.eq.s32.totalorder %s2475_s10, 0 }
   0xa   : > { %s2491_s15 = scalar_select %p22_p1, %s2432_s8, %s24_s13  }
   0xb   : > { %p2493_p5 = por %p32_p2, %p31_p0  ;;  %p2497_p6 = por %p38_p4, %p37_p3 }
   0xc   : > { %p61_p7 = scmp.eq.s32.totalorder %s2475_s10, 3  ;;  %p67_p8 = scmp.eq.s32.totalorder %s2274_s11, 3 }
   0xd   : > { %s4664_s17 = scalar_select %p2497_p6, 1, 0 }
   0xe   : > { %p2306_p9 = scmp.lt.s32.totalorder %s2436_s9, 4  ;;  %p2503_p10 = por %p61_p7, %p31_p0 }
   0xf   : > { %p2507_p11 = por %p67_p8, %p37_p3  ;;  %s87_s20 = sand.u32 1, %s2432_s8  }
  0x10   : > { %s4665_s18 = scalar_select %p2503_p10, 1, 0 }
  0x11   : > { %s4666_s19 = scalar_select %p2507_p11, 1, 0 }
  0x12   : > { %s2291_s21 = sshll.u32 %s2436_s9, 17  ;;  %s2277_s22 = sshll.u32 %s87_s20, 13 }
  0x13   : > { %s2516_s25 = scalar_lea.hbm %s4659_s0, %s2291_s21  ;;  %s91_s26 = scalar_lea.vmem [#allocation2], %s2277_s22 }
  0x14   : > { %s99_s27 = sshll.u32 %s91_s26, 4  ;;  %p2520_p12 = pnand %p2306_p9, %p2493_p5  ;;  %s2524_s27 = int_to_ptr.vmem [resolvable:$true] %s99_s27 }
  0x15   : > { %s2526_s29 = scalar_lea.sflag [#allocation3], %s87_s20  ;;  %s2344_s30 = scalar_lea.hbm %s2516_s25, 131072 }
  0x16   : > { %p2345_p13 = scmp.ne.s32.totalorder %s2516_s25, %s2344_s30  ;;  %p2346_p0 = pneg %p2520_p12 }
  0x17   : > { %s2349_s4 = scalar_lea.hbm %s4659_s0, 524288  ;;  %p2350_p3 = scmp.lt.s32.totalorder %s2516_s25, %s4659_s0 }
  0x18   : > { %p2347_p1 = pnand %p2346_p0, %p2345_p13  ;;  %p2351_p4 = scmp.lt.s32.totalorder %s2349_s4, %s2344_s30 }
  0x1a   : > { %p2348_p2 = pneg %p2347_p1  ;;  %p2352_p5 = por %p2351_p4, %p2350_p3 }
  0x1c   : > { %p2353_p7 = pnand %p2352_p5, %p2348_p2 }
  0x1e   : > { %2356 = shalt.err (!%p2353_p7)
}
  0x1f   : > { %s2357_s13 = scalar_lea.vmem %s2524_s27, 131072  ;;  %s2438_s14 = smov [#allocation2]  }
  0x20   : > { %p2358_p8 = scmp.ne.s32.totalorder %s2524_s27, %s2357_s13  ;;  %s2362_s16 = sshll.u32 %s2438_s14, 4  ;;  %s2363_s16 = int_to_ptr.vmem [resolvable:$false] %s2362_s16 }
  0x21   : > { %s2364_s20 = scalar_lea.vmem %s2363_s16, 262144  ;;  %p2365_p1 = scmp.lt.s32.totalorder %s2524_s27, %s2363_s16 }
  0x22   : > { %p2360_p9 = pnand %p2358_p8, %p2346_p0  ;;  %p2366_p11 = scmp.lt.s32.totalorder %s2364_s20, %s2357_s13 }
  0x24   : > { %p2361_p13 = pneg %p2360_p9  ;;  %p2367_p10 = por %p2366_p11, %p2365_p1 }
  0x26   : > { %p2368_p6 = pnand %p2367_p10, %p2361_p13 }
  0x28   : > { %2371 = shalt.err (!%p2368_p6)
}
  0x29   : > { %s2439_s21 = smov 2048   ;;  %s2440_s22 = smov 128  }
  0x2a   : > { %2301 = dma.hbm_to_vmem [thread:$0]  (!%p2520_p12), %s2516_s25, 131072, %s2524_s27, %s2526_s29, %s2439_s21, %s2439_s21, %s2440_s22  }
  0x2b   : > { %p2281_p0 = scmp.ge.s32.totalorder %s2436_s9, 1  ;;  %p107_p2 = scmp.lt.s32.totalorder %s2436_s9, 5 }
  0x2d   : > { %p108_p3 = pnand %p2281_p0, %p107_p2 }
  0x2e   : > { %s2550_s23 = sand.u32 (!%p108_p3), 1, %s2428_s7   ;;  %p4668_p6 = scmp.ne.s32.totalorder (!%p108_p3), %s4664_s17, 0 }
  0x2f   : > { %111 = sbr.rel (%p108_p3) target bundleno = 579 (0x243), region = 24  ;;  %s2282_s24 = sshll.u32 (!%p108_p3), %s2550_s23, 13 }
  0x30   : > { %s114_s26 = scalar_lea.sflag (!%p108_p3), [#allocation3], %s2550_s23  ;;  %s2554_s30 = scalar_lea.vmem (!%p108_p3), [#allocation2], %s2282_s24 }
  0x34   : > { %2415 = dma.done.wait (%p4668_p6), %s114_s26, 131072  }
  0x35   : > { %2417 = vsyncadd (%p4668_p6), %s114_s26, 4294836224  ;;  %v138_v0 = vld [vmem:[%s2554_s30] sm:$0xff]  ;;  %v139_v1 = vld [vmem:[%s2554_s30 + $0x8] sm:$0xff]  ;;  %s2563_s25 = scalar_lea.vmem [#allocation5], %s2282_s24  ;;  %s2293_s17 = sshll.u32 %s2475_s10, 17 }
  0x36   : > { %v140_v2 = vld [vmem:[%s2554_s30 + $0x10] sm:$0xff]  ;;  %1162 = vst [vmem:[%s2563_s25] sm:$0xff] %v138_v0  ;;  %1163 = vst [vmem:[%s2563_s25 + $0x8] sm:$0xff] %v139_v1  ;;  %v141_v3 = vld [vmem:[%s2554_s30 + $0x18] sm:$0xff]  ;;  %s2201_s27 = sshll.u32 %s2563_s25, 4  ;;  %s4604_s29 = scalar_lea.hbm %s4660_s1, %s2293_s17  ;;  %s4606_s27 = int_to_ptr.vmem [resolvable:$true] %s2201_s27 }
  0x37   : > { %1164 = vst [vmem:[%s2563_s25 + $0x10] sm:$0xff] %v140_v2  ;;  %v142_v4 = vld [vmem:[%s2554_s30 + $0x20] sm:$0xff]  ;;  %v143_v5 = vld [vmem:[%s2554_s30 + $0x28] sm:$0xff]  ;;  %1165 = vst [vmem:[%s2563_s25 + $0x18] sm:$0xff] %v141_v3  ;;  %s2187_s2 = scalar_lea.sflag [#allocation4], %s2550_s23  ;;  %s2372_s3 = scalar_lea.vmem %s4606_s27, 131072 }
  0x38   : > { %1166 = vst [vmem:[%s2563_s25 + $0x20] sm:$0xff] %v142_v4  ;;  %1167 = vst [vmem:[%s2563_s25 + $0x28] sm:$0xff] %v143_v5  ;;  %v144_v6 = vld [vmem:[%s2554_s30 + $0x30] sm:$0xff]  ;;  %v145_v7 = vld [vmem:[%s2554_s30 + $0x38] sm:$0xff]  ;;  %p2373_p10 = scmp.ne.s32.totalorder %s4606_s27, %s2372_s3  ;;  %p4669_p11 = scmp.ne.s32.totalorder %s4665_s18, 0 }
  0x39   : > { %v146_v8 = vld [vmem:[%s2554_s30 + $0x40] sm:$0xff]  ;;  %1168 = vst [vmem:[%s2563_s25 + $0x30] sm:$0xff] %v144_v6  ;;  %1169 = vst [vmem:[%s2563_s25 + $0x38] sm:$0xff] %v145_v7  ;;  %v147_v9 = vld [vmem:[%s2554_s30 + $0x48] sm:$0xff]  ;;  %s2441_s4 = smov [#allocation5]  }
  0x3a   : > { %1170 = vst [vmem:[%s2563_s25 + $0x40] sm:$0xff] %v146_v8  ;;  %v148_v10 = vld [vmem:[%s2554_s30 + $0x50] sm:$0xff]  ;;  %v149_v11 = vld [vmem:[%s2554_s30 + $0x58] sm:$0xff]  ;;  %1171 = vst [vmem:[%s2563_s25 + $0x48] sm:$0xff] %v147_v9  ;;  %p2374_p12 = pnand %p2373_p10, %p4669_p11  ;;  %s2376_s5 = sshll.u32 %s2441_s4, 4  ;;  %s2377_s5 = int_to_ptr.vmem [resolvable:$false] %s2376_s5 }
  0x3b   : > { %1172 = vst [vmem:[%s2563_s25 + $0x50] sm:$0xff] %v148_v10  ;;  %1173 = vst [vmem:[%s2563_s25 + $0x58] sm:$0xff] %v149_v11  ;;  %v150_v12 = vld [vmem:[%s2554_s30 + $0x60] sm:$0xff]  ;;  %v151_v13 = vld [vmem:[%s2554_s30 + $0x68] sm:$0xff]  ;;  %s2378_s11 = scalar_lea.vmem %s2377_s5, 262144  ;;  %p2379_p5 = scmp.lt.s32.totalorder %s4606_s27, %s2377_s5 }
  0x3c   : > { %v152_v14 = vld [vmem:[%s2554_s30 + $0x70] sm:$0xff]  ;;  %1174 = vst [vmem:[%s2563_s25 + $0x60] sm:$0xff] %v150_v12  ;;  %1175 = vst [vmem:[%s2563_s25 + $0x68] sm:$0xff] %v151_v13  ;;  %v153_v15 = vld [vmem:[%s2554_s30 + $0x78] sm:$0xff]  ;;  %p2375_p4 = pneg %p2374_p12  ;;  %p2380_p7 = scmp.lt.s32.totalorder %s2378_s11, %s2372_s3 }
  0x3d   : > { %1176 = vst [vmem:[%s2563_s25 + $0x70] sm:$0xff] %v152_v14  ;;  %v154_v16 = vld [vmem:[%s2554_s30 + $0x80] sm:$0xff]  ;;  %v155_v17 = vld [vmem:[%s2554_s30 + $0x88] sm:$0xff]  ;;  %1177 = vst [vmem:[%s2563_s25 + $0x78] sm:$0xff] %v153_v15 }
  0x3e   : > { %1178 = vst [vmem:[%s2563_s25 + $0x80] sm:$0xff] %v154_v16  ;;  %1179 = vst [vmem:[%s2563_s25 + $0x88] sm:$0xff] %v155_v17  ;;  %v156_v18 = vld [vmem:[%s2554_s30 + $0x90] sm:$0xff]  ;;  %v157_v19 = vld [vmem:[%s2554_s30 + $0x98] sm:$0xff]  ;;  %p2381_p8 = por %p2380_p7, %p2379_p5 }
  0x3f   : > { %v158_v20 = vld [vmem:[%s2554_s30 + $0xa0] sm:$0xff]  ;;  %1180 = vst [vmem:[%s2563_s25 + $0x90] sm:$0xff] %v156_v18  ;;  %1181 = vst [vmem:[%s2563_s25 + $0x98] sm:$0xff] %v157_v19  ;;  %v159_v21 = vld [vmem:[%s2554_s30 + $0xa8] sm:$0xff] }
  0x40   : > { %1182 = vst [vmem:[%s2563_s25 + $0xa0] sm:$0xff] %v158_v20  ;;  %v160_v22 = vld [vmem:[%s2554_s30 + $0xb0] sm:$0xff]  ;;  %v161_v23 = vld [vmem:[%s2554_s30 + $0xb8] sm:$0xff]  ;;  %1183 = vst [vmem:[%s2563_s25 + $0xa8] sm:$0xff] %v159_v21  ;;  %p2382_p9 = pnand %p2381_p8, %p2375_p4 }
  0x41   : > { %1184 = vst [vmem:[%s2563_s25 + $0xb0] sm:$0xff] %v160_v22  ;;  %1185 = vst [vmem:[%s2563_s25 + $0xb8] sm:$0xff] %v161_v23  ;;  %v162_v24 = vld [vmem:[%s2554_s30 + $0xc0] sm:$0xff]  ;;  %v163_v25 = vld [vmem:[%s2554_s30 + $0xc8] sm:$0xff] }
  0x42   : > { %v164_v26 = vld [vmem:[%s2554_s30 + $0xd0] sm:$0xff]  ;;  %1186 = vst [vmem:[%s2563_s25 + $0xc0] sm:$0xff] %v162_v24  ;;  %1187 = vst [vmem:[%s2563_s25 + $0xc8] sm:$0xff] %v163_v25  ;;  %v165_v27 = vld [vmem:[%s2554_s30 + $0xd8] sm:$0xff] }
  0x43   : > { %1188 = vst [vmem:[%s2563_s25 + $0xd0] sm:$0xff] %v164_v26  ;;  %v166_v28 = vld [vmem:[%s2554_s30 + $0xe0] sm:$0xff]  ;;  %v167_v29 = vld [vmem:[%s2554_s30 + $0xe8] sm:$0xff]  ;;  %1189 = vst [vmem:[%s2563_s25 + $0xd8] sm:$0xff] %v165_v27 }
  0x44   : > { %1190 = vst [vmem:[%s2563_s25 + $0xe0] sm:$0xff] %v166_v28  ;;  %1191 = vst [vmem:[%s2563_s25 + $0xe8] sm:$0xff] %v167_v29  ;;  %v168_v30 = vld [vmem:[%s2554_s30 + $0xf0] sm:$0xff]  ;;  %v169_v31 = vld [vmem:[%s2554_s30 + $0xf8] sm:$0xff] }
  0x45   : > { %v170_v32 = vld [vmem:[%s2554_s30 + $0x100] sm:$0xff]  ;;  %1192 = vst [vmem:[%s2563_s25 + $0xf0] sm:$0xff] %v168_v30  ;;  %1193 = vst [vmem:[%s2563_s25 + $0xf8] sm:$0xff] %v169_v31  ;;  %v171_v33 = vld [vmem:[%s2554_s30 + $0x108] sm:$0xff] }
  0x46   : > { %1194 = vst [vmem:[%s2563_s25 + $0x100] sm:$0xff] %v170_v32  ;;  %v172_v34 = vld [vmem:[%s2554_s30 + $0x110] sm:$0xff]  ;;  %v173_v35 = vld [vmem:[%s2554_s30 + $0x118] sm:$0xff]  ;;  %1195 = vst [vmem:[%s2563_s25 + $0x108] sm:$0xff] %v171_v33 }
  0x47   : > { %1196 = vst [vmem:[%s2563_s25 + $0x110] sm:$0xff] %v172_v34  ;;  %1197 = vst [vmem:[%s2563_s25 + $0x118] sm:$0xff] %v173_v35  ;;  %v174_v36 = vld [vmem:[%s2554_s30 + $0x120] sm:$0xff]  ;;  %v175_v37 = vld [vmem:[%s2554_s30 + $0x128] sm:$0xff] }
  0x48   : > { %v176_v38 = vld [vmem:[%s2554_s30 + $0x130] sm:$0xff]  ;;  %1198 = vst [vmem:[%s2563_s25 + $0x120] sm:$0xff] %v174_v36  ;;  %1199 = vst [vmem:[%s2563_s25 + $0x128] sm:$0xff] %v175_v37  ;;  %v177_v39 = vld [vmem:[%s2554_s30 + $0x138] sm:$0xff] }
  0x49   : > { %1200 = vst [vmem:[%s2563_s25 + $0x130] sm:$0xff] %v176_v38  ;;  %v178_v40 = vld [vmem:[%s2554_s30 + $0x140] sm:$0xff]  ;;  %v179_v41 = vld [vmem:[%s2554_s30 + $0x148] sm:$0xff]  ;;  %1201 = vst [vmem:[%s2563_s25 + $0x138] sm:$0xff] %v177_v39 }
  0x4a   : > { %1202 = vst [vmem:[%s2563_s25 + $0x140] sm:$0xff] %v178_v40  ;;  %1203 = vst [vmem:[%s2563_s25 + $0x148] sm:$0xff] %v179_v41  ;;  %v180_v42 = vld [vmem:[%s2554_s30 + $0x150] sm:$0xff]  ;;  %v181_v43 = vld [vmem:[%s2554_s30 + $0x158] sm:$0xff] }
  0x4b   : > { %v182_v44 = vld [vmem:[%s2554_s30 + $0x160] sm:$0xff]  ;;  %1204 = vst [vmem:[%s2563_s25 + $0x150] sm:$0xff] %v180_v42  ;;  %1205 = vst [vmem:[%s2563_s25 + $0x158] sm:$0xff] %v181_v43  ;;  %v183_v45 = vld [vmem:[%s2554_s30 + $0x168] sm:$0xff] }
  0x4c   : > { %1206 = vst [vmem:[%s2563_s25 + $0x160] sm:$0xff] %v182_v44  ;;  %v184_v46 = vld [vmem:[%s2554_s30 + $0x170] sm:$0xff]  ;;  %v185_v47 = vld [vmem:[%s2554_s30 + $0x178] sm:$0xff]  ;;  %1207 = vst [vmem:[%s2563_s25 + $0x168] sm:$0xff] %v183_v45 }
  0x4d   : > { %1208 = vst [vmem:[%s2563_s25 + $0x170] sm:$0xff] %v184_v46  ;;  %1209 = vst [vmem:[%s2563_s25 + $0x178] sm:$0xff] %v185_v47  ;;  %v186_v48 = vld [vmem:[%s2554_s30 + $0x180] sm:$0xff]  ;;  %v187_v49 = vld [vmem:[%s2554_s30 + $0x188] sm:$0xff] }
  0x4e   : > { %v188_v50 = vld [vmem:[%s2554_s30 + $0x190] sm:$0xff]  ;;  %1210 = vst [vmem:[%s2563_s25 + $0x180] sm:$0xff] %v186_v48  ;;  %1211 = vst [vmem:[%s2563_s25 + $0x188] sm:$0xff] %v187_v49  ;;  %v189_v51 = vld [vmem:[%s2554_s30 + $0x198] sm:$0xff] }
  0x4f   : > { %1212 = vst [vmem:[%s2563_s25 + $0x190] sm:$0xff] %v188_v50  ;;  %v190_v52 = vld [vmem:[%s2554_s30 + $0x1a0] sm:$0xff]  ;;  %v191_v53 = vld [vmem:[%s2554_s30 + $0x1a8] sm:$0xff]  ;;  %1213 = vst [vmem:[%s2563_s25 + $0x198] sm:$0xff] %v189_v51 }
  0x50   : > { %1214 = vst [vmem:[%s2563_s25 + $0x1a0] sm:$0xff] %v190_v52  ;;  %1215 = vst [vmem:[%s2563_s25 + $0x1a8] sm:$0xff] %v191_v53  ;;  %v192_v54 = vld [vmem:[%s2554_s30 + $0x1b0] sm:$0xff]  ;;  %v193_v55 = vld [vmem:[%s2554_s30 + $0x1b8] sm:$0xff] }
  0x51   : > { %v194_v56 = vld [vmem:[%s2554_s30 + $0x1c0] sm:$0xff]  ;;  %1216 = vst [vmem:[%s2563_s25 + $0x1b0] sm:$0xff] %v192_v54  ;;  %1217 = vst [vmem:[%s2563_s25 + $0x1b8] sm:$0xff] %v193_v55  ;;  %v195_v57 = vld [vmem:[%s2554_s30 + $0x1c8] sm:$0xff] }
  0x52   : > { %1218 = vst [vmem:[%s2563_s25 + $0x1c0] sm:$0xff] %v194_v56  ;;  %v196_v58 = vld [vmem:[%s2554_s30 + $0x1d0] sm:$0xff]  ;;  %v197_v59 = vld [vmem:[%s2554_s30 + $0x1d8] sm:$0xff]  ;;  %1219 = vst [vmem:[%s2563_s25 + $0x1c8] sm:$0xff] %v195_v57 }
  0x53   : > { %1220 = vst [vmem:[%s2563_s25 + $0x1d0] sm:$0xff] %v196_v58  ;;  %1221 = vst [vmem:[%s2563_s25 + $0x1d8] sm:$0xff] %v197_v59  ;;  %v198_v60 = vld [vmem:[%s2554_s30 + $0x1e0] sm:$0xff]  ;;  %v199_v61 = vld [vmem:[%s2554_s30 + $0x1e8] sm:$0xff] }
  0x54   : > { %v200_v62 = vld [vmem:[%s2554_s30 + $0x1f0] sm:$0xff]  ;;  %1222 = vst [vmem:[%s2563_s25 + $0x1e0] sm:$0xff] %v198_v60  ;;  %1223 = vst [vmem:[%s2563_s25 + $0x1e8] sm:$0xff] %v199_v61  ;;  %v201_v63 = vld [vmem:[%s2554_s30 + $0x1f8] sm:$0xff] }
  0x55   : > { %1224 = vst [vmem:[%s2563_s25 + $0x1f0] sm:$0xff] %v200_v62  ;;  %v202_v0 = vld [vmem:[%s2554_s30 + $0x200] sm:$0xff]  ;;  %v203_v1 = vld [vmem:[%s2554_s30 + $0x208] sm:$0xff]  ;;  %1225 = vst [vmem:[%s2563_s25 + $0x1f8] sm:$0xff] %v201_v63 }
  0x56   : > { %1226 = vst [vmem:[%s2563_s25 + $0x200] sm:$0xff] %v202_v0  ;;  %1227 = vst [vmem:[%s2563_s25 + $0x208] sm:$0xff] %v203_v1  ;;  %v204_v2 = vld [vmem:[%s2554_s30 + $0x210] sm:$0xff]  ;;  %v205_v3 = vld [vmem:[%s2554_s30 + $0x218] sm:$0xff] }
  0x57   : > { %v206_v4 = vld [vmem:[%s2554_s30 + $0x220] sm:$0xff]  ;;  %1228 = vst [vmem:[%s2563_s25 + $0x210] sm:$0xff] %v204_v2  ;;  %1229 = vst [vmem:[%s2563_s25 + $0x218] sm:$0xff] %v205_v3  ;;  %v207_v5 = vld [vmem:[%s2554_s30 + $0x228] sm:$0xff] }
  0x58   : > { %1230 = vst [vmem:[%s2563_s25 + $0x220] sm:$0xff] %v206_v4  ;;  %v208_v6 = vld [vmem:[%s2554_s30 + $0x230] sm:$0xff]  ;;  %v209_v7 = vld [vmem:[%s2554_s30 + $0x238] sm:$0xff]  ;;  %1231 = vst [vmem:[%s2563_s25 + $0x228] sm:$0xff] %v207_v5 }
  0x59   : > { %1232 = vst [vmem:[%s2563_s25 + $0x230] sm:$0xff] %v208_v6  ;;  %1233 = vst [vmem:[%s2563_s25 + $0x238] sm:$0xff] %v209_v7  ;;  %v210_v8 = vld [vmem:[%s2554_s30 + $0x240] sm:$0xff]  ;;  %v211_v9 = vld [vmem:[%s2554_s30 + $0x248] sm:$0xff] }
  0x5a   : > { %v212_v10 = vld [vmem:[%s2554_s30 + $0x250] sm:$0xff]  ;;  %1234 = vst [vmem:[%s2563_s25 + $0x240] sm:$0xff] %v210_v8  ;;  %1235 = vst [vmem:[%s2563_s25 + $0x248] sm:$0xff] %v211_v9  ;;  %v213_v11 = vld [vmem:[%s2554_s30 + $0x258] sm:$0xff] }
  0x5b   : > { %1236 = vst [vmem:[%s2563_s25 + $0x250] sm:$0xff] %v212_v10  ;;  %v214_v12 = vld [vmem:[%s2554_s30 + $0x260] sm:$0xff]  ;;  %v215_v13 = vld [vmem:[%s2554_s30 + $0x268] sm:$0xff]  ;;  %1237 = vst [vmem:[%s2563_s25 + $0x258] sm:$0xff] %v213_v11 }
  0x5c   : > { %1238 = vst [vmem:[%s2563_s25 + $0x260] sm:$0xff] %v214_v12  ;;  %1239 = vst [vmem:[%s2563_s25 + $0x268] sm:$0xff] %v215_v13  ;;  %v216_v14 = vld [vmem:[%s2554_s30 + $0x270] sm:$0xff]  ;;  %v217_v15 = vld [vmem:[%s2554_s30 + $0x278] sm:$0xff] }
  0x5d   : > { %v218_v16 = vld [vmem:[%s2554_s30 + $0x280] sm:$0xff]  ;;  %1240 = vst [vmem:[%s2563_s25 + $0x270] sm:$0xff] %v216_v14  ;;  %1241 = vst [vmem:[%s2563_s25 + $0x278] sm:$0xff] %v217_v15  ;;  %v219_v17 = vld [vmem:[%s2554_s30 + $0x288] sm:$0xff] }
  0x5e   : > { %1242 = vst [vmem:[%s2563_s25 + $0x280] sm:$0xff] %v218_v16  ;;  %v220_v18 = vld [vmem:[%s2554_s30 + $0x290] sm:$0xff]  ;;  %v221_v19 = vld [vmem:[%s2554_s30 + $0x298] sm:$0xff]  ;;  %1243 = vst [vmem:[%s2563_s25 + $0x288] sm:$0xff] %v219_v17 }
  0x5f   : > { %1244 = vst [vmem:[%s2563_s25 + $0x290] sm:$0xff] %v220_v18  ;;  %1245 = vst [vmem:[%s2563_s25 + $0x298] sm:$0xff] %v221_v19  ;;  %v222_v20 = vld [vmem:[%s2554_s30 + $0x2a0] sm:$0xff]  ;;  %v223_v21 = vld [vmem:[%s2554_s30 + $0x2a8] sm:$0xff] }
  0x60   : > { %v224_v22 = vld [vmem:[%s2554_s30 + $0x2b0] sm:$0xff]  ;;  %1246 = vst [vmem:[%s2563_s25 + $0x2a0] sm:$0xff] %v222_v20  ;;  %1247 = vst [vmem:[%s2563_s25 + $0x2a8] sm:$0xff] %v223_v21  ;;  %v225_v23 = vld [vmem:[%s2554_s30 + $0x2b8] sm:$0xff] }
  0x61   : > { %1248 = vst [vmem:[%s2563_s25 + $0x2b0] sm:$0xff] %v224_v22  ;;  %v226_v24 = vld [vmem:[%s2554_s30 + $0x2c0] sm:$0xff]  ;;  %v227_v25 = vld [vmem:[%s2554_s30 + $0x2c8] sm:$0xff]  ;;  %1249 = vst [vmem:[%s2563_s25 + $0x2b8] sm:$0xff] %v225_v23 }
  0x62   : > { %1250 = vst [vmem:[%s2563_s25 + $0x2c0] sm:$0xff] %v226_v24  ;;  %1251 = vst [vmem:[%s2563_s25 + $0x2c8] sm:$0xff] %v227_v25  ;;  %v228_v26 = vld [vmem:[%s2554_s30 + $0x2d0] sm:$0xff]  ;;  %v229_v27 = vld [vmem:[%s2554_s30 + $0x2d8] sm:$0xff] }
  0x63   : > { %v230_v28 = vld [vmem:[%s2554_s30 + $0x2e0] sm:$0xff]  ;;  %1252 = vst [vmem:[%s2563_s25 + $0x2d0] sm:$0xff] %v228_v26  ;;  %1253 = vst [vmem:[%s2563_s25 + $0x2d8] sm:$0xff] %v229_v27  ;;  %v231_v29 = vld [vmem:[%s2554_s30 + $0x2e8] sm:$0xff] }
  0x64   : > { %1254 = vst [vmem:[%s2563_s25 + $0x2e0] sm:$0xff] %v230_v28  ;;  %v232_v30 = vld [vmem:[%s2554_s30 + $0x2f0] sm:$0xff]  ;;  %v233_v31 = vld [vmem:[%s2554_s30 + $0x2f8] sm:$0xff]  ;;  %1255 = vst [vmem:[%s2563_s25 + $0x2e8] sm:$0xff] %v231_v29 }
  0x65   : > { %1256 = vst [vmem:[%s2563_s25 + $0x2f0] sm:$0xff] %v232_v30  ;;  %1257 = vst [vmem:[%s2563_s25 + $0x2f8] sm:$0xff] %v233_v31  ;;  %v234_v32 = vld [vmem:[%s2554_s30 + $0x300] sm:$0xff]  ;;  %v235_v33 = vld [vmem:[%s2554_s30 + $0x308] sm:$0xff] }
  0x66   : > { %v236_v34 = vld [vmem:[%s2554_s30 + $0x310] sm:$0xff]  ;;  %1258 = vst [vmem:[%s2563_s25 + $0x300] sm:$0xff] %v234_v32  ;;  %1259 = vst [vmem:[%s2563_s25 + $0x308] sm:$0xff] %v235_v33  ;;  %v237_v35 = vld [vmem:[%s2554_s30 + $0x318] sm:$0xff] }
  0x67   : > { %1260 = vst [vmem:[%s2563_s25 + $0x310] sm:$0xff] %v236_v34  ;;  %v238_v36 = vld [vmem:[%s2554_s30 + $0x320] sm:$0xff]  ;;  %v239_v37 = vld [vmem:[%s2554_s30 + $0x328] sm:$0xff]  ;;  %1261 = vst [vmem:[%s2563_s25 + $0x318] sm:$0xff] %v237_v35 }
  0x68   : > { %1262 = vst [vmem:[%s2563_s25 + $0x320] sm:$0xff] %v238_v36  ;;  %1263 = vst [vmem:[%s2563_s25 + $0x328] sm:$0xff] %v239_v37  ;;  %v240_v38 = vld [vmem:[%s2554_s30 + $0x330] sm:$0xff]  ;;  %v241_v39 = vld [vmem:[%s2554_s30 + $0x338] sm:$0xff] }
  0x69   : > { %v242_v40 = vld [vmem:[%s2554_s30 + $0x340] sm:$0xff]  ;;  %1264 = vst [vmem:[%s2563_s25 + $0x330] sm:$0xff] %v240_v38  ;;  %1265 = vst [vmem:[%s2563_s25 + $0x338] sm:$0xff] %v241_v39  ;;  %v243_v41 = vld [vmem:[%s2554_s30 + $0x348] sm:$0xff] }
  0x6a   : > { %1266 = vst [vmem:[%s2563_s25 + $0x340] sm:$0xff] %v242_v40  ;;  %v244_v42 = vld [vmem:[%s2554_s30 + $0x350] sm:$0xff]  ;;  %v245_v43 = vld [vmem:[%s2554_s30 + $0x358] sm:$0xff]  ;;  %1267 = vst [vmem:[%s2563_s25 + $0x348] sm:$0xff] %v243_v41 }
  0x6b   : > { %1268 = vst [vmem:[%s2563_s25 + $0x350] sm:$0xff] %v244_v42  ;;  %1269 = vst [vmem:[%s2563_s25 + $0x358] sm:$0xff] %v245_v43  ;;  %v246_v44 = vld [vmem:[%s2554_s30 + $0x360] sm:$0xff]  ;;  %v247_v45 = vld [vmem:[%s2554_s30 + $0x368] sm:$0xff] }
  0x6c   : > { %v248_v46 = vld [vmem:[%s2554_s30 + $0x370] sm:$0xff]  ;;  %1270 = vst [vmem:[%s2563_s25 + $0x360] sm:$0xff] %v246_v44  ;;  %1271 = vst [vmem:[%s2563_s25 + $0x368] sm:$0xff] %v247_v45  ;;  %v249_v47 = vld [vmem:[%s2554_s30 + $0x378] sm:$0xff] }
  0x6d   : > { %1272 = vst [vmem:[%s2563_s25 + $0x370] sm:$0xff] %v248_v46  ;;  %v250_v48 = vld [vmem:[%s2554_s30 + $0x380] sm:$0xff]  ;;  %v251_v49 = vld [vmem:[%s2554_s30 + $0x388] sm:$0xff]  ;;  %1273 = vst [vmem:[%s2563_s25 + $0x378] sm:$0xff] %v249_v47 }
  0x6e   : > { %1274 = vst [vmem:[%s2563_s25 + $0x380] sm:$0xff] %v250_v48  ;;  %1275 = vst [vmem:[%s2563_s25 + $0x388] sm:$0xff] %v251_v49  ;;  %v252_v50 = vld [vmem:[%s2554_s30 + $0x390] sm:$0xff]  ;;  %v253_v51 = vld [vmem:[%s2554_s30 + $0x398] sm:$0xff] }
  0x6f   : > { %v254_v52 = vld [vmem:[%s2554_s30 + $0x3a0] sm:$0xff]  ;;  %1276 = vst [vmem:[%s2563_s25 + $0x390] sm:$0xff] %v252_v50  ;;  %1277 = vst [vmem:[%s2563_s25 + $0x398] sm:$0xff] %v253_v51  ;;  %v255_v53 = vld [vmem:[%s2554_s30 + $0x3a8] sm:$0xff] }
  0x70   : > { %1278 = vst [vmem:[%s2563_s25 + $0x3a0] sm:$0xff] %v254_v52  ;;  %v256_v54 = vld [vmem:[%s2554_s30 + $0x3b0] sm:$0xff]  ;;  %v257_v55 = vld [vmem:[%s2554_s30 + $0x3b8] sm:$0xff]  ;;  %1279 = vst [vmem:[%s2563_s25 + $0x3a8] sm:$0xff] %v255_v53 }
  0x71   : > { %1280 = vst [vmem:[%s2563_s25 + $0x3b0] sm:$0xff] %v256_v54  ;;  %1281 = vst [vmem:[%s2563_s25 + $0x3b8] sm:$0xff] %v257_v55  ;;  %v258_v56 = vld [vmem:[%s2554_s30 + $0x3c0] sm:$0xff]  ;;  %v259_v57 = vld [vmem:[%s2554_s30 + $0x3c8] sm:$0xff] }
  0x72   : > { %v260_v58 = vld [vmem:[%s2554_s30 + $0x3d0] sm:$0xff]  ;;  %1282 = vst [vmem:[%s2563_s25 + $0x3c0] sm:$0xff] %v258_v56  ;;  %1283 = vst [vmem:[%s2563_s25 + $0x3c8] sm:$0xff] %v259_v57  ;;  %v261_v59 = vld [vmem:[%s2554_s30 + $0x3d8] sm:$0xff] }
  0x73   : > { %1284 = vst [vmem:[%s2563_s25 + $0x3d0] sm:$0xff] %v260_v58  ;;  %v262_v60 = vld [vmem:[%s2554_s30 + $0x3e0] sm:$0xff]  ;;  %v263_v61 = vld [vmem:[%s2554_s30 + $0x3e8] sm:$0xff]  ;;  %1285 = vst [vmem:[%s2563_s25 + $0x3d8] sm:$0xff] %v261_v59 }
  0x74   : > { %1286 = vst [vmem:[%s2563_s25 + $0x3e0] sm:$0xff] %v262_v60  ;;  %1287 = vst [vmem:[%s2563_s25 + $0x3e8] sm:$0xff] %v263_v61  ;;  %v264_v62 = vld [vmem:[%s2554_s30 + $0x3f0] sm:$0xff]  ;;  %v265_v63 = vld [vmem:[%s2554_s30 + $0x3f8] sm:$0xff] }
  0x75   : > { %v266_v0 = vld [vmem:[%s2554_s30 + $0x400] sm:$0xff]  ;;  %1288 = vst [vmem:[%s2563_s25 + $0x3f0] sm:$0xff] %v264_v62  ;;  %1289 = vst [vmem:[%s2563_s25 + $0x3f8] sm:$0xff] %v265_v63  ;;  %v267_v1 = vld [vmem:[%s2554_s30 + $0x408] sm:$0xff] }
  0x76   : > { %1290 = vst [vmem:[%s2563_s25 + $0x400] sm:$0xff] %v266_v0  ;;  %v268_v2 = vld [vmem:[%s2554_s30 + $0x410] sm:$0xff]  ;;  %v269_v3 = vld [vmem:[%s2554_s30 + $0x418] sm:$0xff]  ;;  %1291 = vst [vmem:[%s2563_s25 + $0x408] sm:$0xff] %v267_v1 }
  0x77   : > { %1292 = vst [vmem:[%s2563_s25 + $0x410] sm:$0xff] %v268_v2  ;;  %1293 = vst [vmem:[%s2563_s25 + $0x418] sm:$0xff] %v269_v3  ;;  %v270_v4 = vld [vmem:[%s2554_s30 + $0x420] sm:$0xff]  ;;  %v271_v5 = vld [vmem:[%s2554_s30 + $0x428] sm:$0xff] }
  0x78   : > { %v272_v6 = vld [vmem:[%s2554_s30 + $0x430] sm:$0xff]  ;;  %1294 = vst [vmem:[%s2563_s25 + $0x420] sm:$0xff] %v270_v4  ;;  %1295 = vst [vmem:[%s2563_s25 + $0x428] sm:$0xff] %v271_v5  ;;  %v273_v7 = vld [vmem:[%s2554_s30 + $0x438] sm:$0xff] }
  0x79   : > { %1296 = vst [vmem:[%s2563_s25 + $0x430] sm:$0xff] %v272_v6  ;;  %v274_v8 = vld [vmem:[%s2554_s30 + $0x440] sm:$0xff]  ;;  %v275_v9 = vld [vmem:[%s2554_s30 + $0x448] sm:$0xff]  ;;  %1297 = vst [vmem:[%s2563_s25 + $0x438] sm:$0xff] %v273_v7 }
  0x7a   : > { %1298 = vst [vmem:[%s2563_s25 + $0x440] sm:$0xff] %v274_v8  ;;  %1299 = vst [vmem:[%s2563_s25 + $0x448] sm:$0xff] %v275_v9  ;;  %v276_v10 = vld [vmem:[%s2554_s30 + $0x450] sm:$0xff]  ;;  %v277_v11 = vld [vmem:[%s2554_s30 + $0x458] sm:$0xff] }
  0x7b   : > { %v278_v12 = vld [vmem:[%s2554_s30 + $0x460] sm:$0xff]  ;;  %1300 = vst [vmem:[%s2563_s25 + $0x450] sm:$0xff] %v276_v10  ;;  %1301 = vst [vmem:[%s2563_s25 + $0x458] sm:$0xff] %v277_v11  ;;  %v279_v13 = vld [vmem:[%s2554_s30 + $0x468] sm:$0xff] }
  0x7c   : > { %1302 = vst [vmem:[%s2563_s25 + $0x460] sm:$0xff] %v278_v12  ;;  %v280_v14 = vld [vmem:[%s2554_s30 + $0x470] sm:$0xff]  ;;  %v281_v15 = vld [vmem:[%s2554_s30 + $0x478] sm:$0xff]  ;;  %1303 = vst [vmem:[%s2563_s25 + $0x468] sm:$0xff] %v279_v13 }
  0x7d   : > { %1304 = vst [vmem:[%s2563_s25 + $0x470] sm:$0xff] %v280_v14  ;;  %1305 = vst [vmem:[%s2563_s25 + $0x478] sm:$0xff] %v281_v15  ;;  %v282_v16 = vld [vmem:[%s2554_s30 + $0x480] sm:$0xff]  ;;  %v283_v17 = vld [vmem:[%s2554_s30 + $0x488] sm:$0xff] }
  0x7e   : > { %v284_v18 = vld [vmem:[%s2554_s30 + $0x490] sm:$0xff]  ;;  %1306 = vst [vmem:[%s2563_s25 + $0x480] sm:$0xff] %v282_v16  ;;  %1307 = vst [vmem:[%s2563_s25 + $0x488] sm:$0xff] %v283_v17  ;;  %v285_v19 = vld [vmem:[%s2554_s30 + $0x498] sm:$0xff] }
  0x7f   : > { %1308 = vst [vmem:[%s2563_s25 + $0x490] sm:$0xff] %v284_v18  ;;  %v286_v20 = vld [vmem:[%s2554_s30 + $0x4a0] sm:$0xff]  ;;  %v287_v21 = vld [vmem:[%s2554_s30 + $0x4a8] sm:$0xff]  ;;  %1309 = vst [vmem:[%s2563_s25 + $0x498] sm:$0xff] %v285_v19 }
  0x80   : > { %1310 = vst [vmem:[%s2563_s25 + $0x4a0] sm:$0xff] %v286_v20  ;;  %1311 = vst [vmem:[%s2563_s25 + $0x4a8] sm:$0xff] %v287_v21  ;;  %v288_v22 = vld [vmem:[%s2554_s30 + $0x4b0] sm:$0xff]  ;;  %v289_v23 = vld [vmem:[%s2554_s30 + $0x4b8] sm:$0xff] }
  0x81   : > { %v290_v24 = vld [vmem:[%s2554_s30 + $0x4c0] sm:$0xff]  ;;  %1312 = vst [vmem:[%s2563_s25 + $0x4b0] sm:$0xff] %v288_v22  ;;  %1313 = vst [vmem:[%s2563_s25 + $0x4b8] sm:$0xff] %v289_v23  ;;  %v291_v25 = vld [vmem:[%s2554_s30 + $0x4c8] sm:$0xff] }
  0x82   : > { %1314 = vst [vmem:[%s2563_s25 + $0x4c0] sm:$0xff] %v290_v24  ;;  %v292_v26 = vld [vmem:[%s2554_s30 + $0x4d0] sm:$0xff]  ;;  %v293_v27 = vld [vmem:[%s2554_s30 + $0x4d8] sm:$0xff]  ;;  %1315 = vst [vmem:[%s2563_s25 + $0x4c8] sm:$0xff] %v291_v25 }
  0x83   : > { %1316 = vst [vmem:[%s2563_s25 + $0x4d0] sm:$0xff] %v292_v26  ;;  %1317 = vst [vmem:[%s2563_s25 + $0x4d8] sm:$0xff] %v293_v27  ;;  %v294_v28 = vld [vmem:[%s2554_s30 + $0x4e0] sm:$0xff]  ;;  %v295_v29 = vld [vmem:[%s2554_s30 + $0x4e8] sm:$0xff] }
  0x84   : > { %v296_v30 = vld [vmem:[%s2554_s30 + $0x4f0] sm:$0xff]  ;;  %1318 = vst [vmem:[%s2563_s25 + $0x4e0] sm:$0xff] %v294_v28  ;;  %1319 = vst [vmem:[%s2563_s25 + $0x4e8] sm:$0xff] %v295_v29  ;;  %v297_v31 = vld [vmem:[%s2554_s30 + $0x4f8] sm:$0xff] }
  0x85   : > { %1320 = vst [vmem:[%s2563_s25 + $0x4f0] sm:$0xff] %v296_v30  ;;  %v298_v32 = vld [vmem:[%s2554_s30 + $0x500] sm:$0xff]  ;;  %v299_v33 = vld [vmem:[%s2554_s30 + $0x508] sm:$0xff]  ;;  %1321 = vst [vmem:[%s2563_s25 + $0x4f8] sm:$0xff] %v297_v31 }
  0x86   : > { %1322 = vst [vmem:[%s2563_s25 + $0x500] sm:$0xff] %v298_v32  ;;  %1323 = vst [vmem:[%s2563_s25 + $0x508] sm:$0xff] %v299_v33  ;;  %v300_v34 = vld [vmem:[%s2554_s30 + $0x510] sm:$0xff]  ;;  %v301_v35 = vld [vmem:[%s2554_s30 + $0x518] sm:$0xff] }
  0x87   : > { %v302_v36 = vld [vmem:[%s2554_s30 + $0x520] sm:$0xff]  ;;  %1324 = vst [vmem:[%s2563_s25 + $0x510] sm:$0xff] %v300_v34  ;;  %1325 = vst [vmem:[%s2563_s25 + $0x518] sm:$0xff] %v301_v35  ;;  %v303_v37 = vld [vmem:[%s2554_s30 + $0x528] sm:$0xff] }
  0x88   : > { %1326 = vst [vmem:[%s2563_s25 + $0x520] sm:$0xff] %v302_v36  ;;  %v304_v38 = vld [vmem:[%s2554_s30 + $0x530] sm:$0xff]  ;;  %v305_v39 = vld [vmem:[%s2554_s30 + $0x538] sm:$0xff]  ;;  %1327 = vst [vmem:[%s2563_s25 + $0x528] sm:$0xff] %v303_v37 }
  0x89   : > { %1328 = vst [vmem:[%s2563_s25 + $0x530] sm:$0xff] %v304_v38  ;;  %1329 = vst [vmem:[%s2563_s25 + $0x538] sm:$0xff] %v305_v39  ;;  %v306_v40 = vld [vmem:[%s2554_s30 + $0x540] sm:$0xff]  ;;  %v307_v41 = vld [vmem:[%s2554_s30 + $0x548] sm:$0xff] }
  0x8a   : > { %v308_v42 = vld [vmem:[%s2554_s30 + $0x550] sm:$0xff]  ;;  %1330 = vst [vmem:[%s2563_s25 + $0x540] sm:$0xff] %v306_v40  ;;  %1331 = vst [vmem:[%s2563_s25 + $0x548] sm:$0xff] %v307_v41  ;;  %v309_v43 = vld [vmem:[%s2554_s30 + $0x558] sm:$0xff] }
  0x8b   : > { %1332 = vst [vmem:[%s2563_s25 + $0x550] sm:$0xff] %v308_v42  ;;  %v310_v44 = vld [vmem:[%s2554_s30 + $0x560] sm:$0xff]  ;;  %v311_v45 = vld [vmem:[%s2554_s30 + $0x568] sm:$0xff]  ;;  %1333 = vst [vmem:[%s2563_s25 + $0x558] sm:$0xff] %v309_v43 }
  0x8c   : > { %1334 = vst [vmem:[%s2563_s25 + $0x560] sm:$0xff] %v310_v44  ;;  %1335 = vst [vmem:[%s2563_s25 + $0x568] sm:$0xff] %v311_v45  ;;  %v312_v46 = vld [vmem:[%s2554_s30 + $0x570] sm:$0xff]  ;;  %v313_v47 = vld [vmem:[%s2554_s30 + $0x578] sm:$0xff] }
  0x8d   : > { %v314_v48 = vld [vmem:[%s2554_s30 + $0x580] sm:$0xff]  ;;  %1336 = vst [vmem:[%s2563_s25 + $0x570] sm:$0xff] %v312_v46  ;;  %1337 = vst [vmem:[%s2563_s25 + $0x578] sm:$0xff] %v313_v47  ;;  %v315_v49 = vld [vmem:[%s2554_s30 + $0x588] sm:$0xff] }
  0x8e   : > { %1338 = vst [vmem:[%s2563_s25 + $0x580] sm:$0xff] %v314_v48  ;;  %v316_v50 = vld [vmem:[%s2554_s30 + $0x590] sm:$0xff]  ;;  %v317_v51 = vld [vmem:[%s2554_s30 + $0x598] sm:$0xff]  ;;  %1339 = vst [vmem:[%s2563_s25 + $0x588] sm:$0xff] %v315_v49 }
  0x8f   : > { %1340 = vst [vmem:[%s2563_s25 + $0x590] sm:$0xff] %v316_v50  ;;  %1341 = vst [vmem:[%s2563_s25 + $0x598] sm:$0xff] %v317_v51  ;;  %v318_v52 = vld [vmem:[%s2554_s30 + $0x5a0] sm:$0xff]  ;;  %v319_v53 = vld [vmem:[%s2554_s30 + $0x5a8] sm:$0xff] }
  0x90   : > { %v320_v54 = vld [vmem:[%s2554_s30 + $0x5b0] sm:$0xff]  ;;  %1342 = vst [vmem:[%s2563_s25 + $0x5a0] sm:$0xff] %v318_v52  ;;  %1343 = vst [vmem:[%s2563_s25 + $0x5a8] sm:$0xff] %v319_v53  ;;  %v321_v55 = vld [vmem:[%s2554_s30 + $0x5b8] sm:$0xff] }
  0x91   : > { %1344 = vst [vmem:[%s2563_s25 + $0x5b0] sm:$0xff] %v320_v54  ;;  %v322_v56 = vld [vmem:[%s2554_s30 + $0x5c0] sm:$0xff]  ;;  %v323_v57 = vld [vmem:[%s2554_s30 + $0x5c8] sm:$0xff]  ;;  %1345 = vst [vmem:[%s2563_s25 + $0x5b8] sm:$0xff] %v321_v55 }
  0x92   : > { %1346 = vst [vmem:[%s2563_s25 + $0x5c0] sm:$0xff] %v322_v56  ;;  %1347 = vst [vmem:[%s2563_s25 + $0x5c8] sm:$0xff] %v323_v57  ;;  %v324_v58 = vld [vmem:[%s2554_s30 + $0x5d0] sm:$0xff]  ;;  %v325_v59 = vld [vmem:[%s2554_s30 + $0x5d8] sm:$0xff] }
  0x93   : > { %v326_v60 = vld [vmem:[%s2554_s30 + $0x5e0] sm:$0xff]  ;;  %1348 = vst [vmem:[%s2563_s25 + $0x5d0] sm:$0xff] %v324_v58  ;;  %1349 = vst [vmem:[%s2563_s25 + $0x5d8] sm:$0xff] %v325_v59  ;;  %v327_v61 = vld [vmem:[%s2554_s30 + $0x5e8] sm:$0xff] }
  0x94   : > { %1350 = vst [vmem:[%s2563_s25 + $0x5e0] sm:$0xff] %v326_v60  ;;  %v328_v62 = vld [vmem:[%s2554_s30 + $0x5f0] sm:$0xff]  ;;  %v329_v63 = vld [vmem:[%s2554_s30 + $0x5f8] sm:$0xff]  ;;  %1351 = vst [vmem:[%s2563_s25 + $0x5e8] sm:$0xff] %v327_v61 }
  0x95   : > { %1352 = vst [vmem:[%s2563_s25 + $0x5f0] sm:$0xff] %v328_v62  ;;  %1353 = vst [vmem:[%s2563_s25 + $0x5f8] sm:$0xff] %v329_v63  ;;  %v330_v0 = vld [vmem:[%s2554_s30 + $0x600] sm:$0xff]  ;;  %v331_v1 = vld [vmem:[%s2554_s30 + $0x608] sm:$0xff] }
  0x96   : > { %v332_v2 = vld [vmem:[%s2554_s30 + $0x610] sm:$0xff]  ;;  %1354 = vst [vmem:[%s2563_s25 + $0x600] sm:$0xff] %v330_v0  ;;  %1355 = vst [vmem:[%s2563_s25 + $0x608] sm:$0xff] %v331_v1  ;;  %v333_v3 = vld [vmem:[%s2554_s30 + $0x618] sm:$0xff] }
  0x97   : > { %1356 = vst [vmem:[%s2563_s25 + $0x610] sm:$0xff] %v332_v2  ;;  %v334_v4 = vld [vmem:[%s2554_s30 + $0x620] sm:$0xff]  ;;  %v335_v5 = vld [vmem:[%s2554_s30 + $0x628] sm:$0xff]  ;;  %1357 = vst [vmem:[%s2563_s25 + $0x618] sm:$0xff] %v333_v3 }
  0x98   : > { %1358 = vst [vmem:[%s2563_s25 + $0x620] sm:$0xff] %v334_v4  ;;  %1359 = vst [vmem:[%s2563_s25 + $0x628] sm:$0xff] %v335_v5  ;;  %v336_v6 = vld [vmem:[%s2554_s30 + $0x630] sm:$0xff]  ;;  %v337_v7 = vld [vmem:[%s2554_s30 + $0x638] sm:$0xff] }
  0x99   : > { %v338_v8 = vld [vmem:[%s2554_s30 + $0x640] sm:$0xff]  ;;  %1360 = vst [vmem:[%s2563_s25 + $0x630] sm:$0xff] %v336_v6  ;;  %1361 = vst [vmem:[%s2563_s25 + $0x638] sm:$0xff] %v337_v7  ;;  %v339_v9 = vld [vmem:[%s2554_s30 + $0x648] sm:$0xff] }
  0x9a   : > { %1362 = vst [vmem:[%s2563_s25 + $0x640] sm:$0xff] %v338_v8  ;;  %v340_v10 = vld [vmem:[%s2554_s30 + $0x650] sm:$0xff]  ;;  %v341_v11 = vld [vmem:[%s2554_s30 + $0x658] sm:$0xff]  ;;  %1363 = vst [vmem:[%s2563_s25 + $0x648] sm:$0xff] %v339_v9 }
  0x9b   : > { %1364 = vst [vmem:[%s2563_s25 + $0x650] sm:$0xff] %v340_v10  ;;  %1365 = vst [vmem:[%s2563_s25 + $0x658] sm:$0xff] %v341_v11  ;;  %v342_v12 = vld [vmem:[%s2554_s30 + $0x660] sm:$0xff]  ;;  %v343_v13 = vld [vmem:[%s2554_s30 + $0x668] sm:$0xff] }
  0x9c   : > { %v344_v14 = vld [vmem:[%s2554_s30 + $0x670] sm:$0xff]  ;;  %1366 = vst [vmem:[%s2563_s25 + $0x660] sm:$0xff] %v342_v12  ;;  %1367 = vst [vmem:[%s2563_s25 + $0x668] sm:$0xff] %v343_v13  ;;  %v345_v15 = vld [vmem:[%s2554_s30 + $0x678] sm:$0xff] }
  0x9d   : > { %1368 = vst [vmem:[%s2563_s25 + $0x670] sm:$0xff] %v344_v14  ;;  %v346_v16 = vld [vmem:[%s2554_s30 + $0x680] sm:$0xff]  ;;  %v347_v17 = vld [vmem:[%s2554_s30 + $0x688] sm:$0xff]  ;;  %1369 = vst [vmem:[%s2563_s25 + $0x678] sm:$0xff] %v345_v15 }
  0x9e   : > { %1370 = vst [vmem:[%s2563_s25 + $0x680] sm:$0xff] %v346_v16  ;;  %1371 = vst [vmem:[%s2563_s25 + $0x688] sm:$0xff] %v347_v17  ;;  %v348_v18 = vld [vmem:[%s2554_s30 + $0x690] sm:$0xff]  ;;  %v349_v19 = vld [vmem:[%s2554_s30 + $0x698] sm:$0xff] }
  0x9f   : > { %v350_v20 = vld [vmem:[%s2554_s30 + $0x6a0] sm:$0xff]  ;;  %1372 = vst [vmem:[%s2563_s25 + $0x690] sm:$0xff] %v348_v18  ;;  %1373 = vst [vmem:[%s2563_s25 + $0x698] sm:$0xff] %v349_v19  ;;  %v351_v21 = vld [vmem:[%s2554_s30 + $0x6a8] sm:$0xff] }
  0xa0   : > { %1374 = vst [vmem:[%s2563_s25 + $0x6a0] sm:$0xff] %v350_v20  ;;  %v352_v22 = vld [vmem:[%s2554_s30 + $0x6b0] sm:$0xff]  ;;  %v353_v23 = vld [vmem:[%s2554_s30 + $0x6b8] sm:$0xff]  ;;  %1375 = vst [vmem:[%s2563_s25 + $0x6a8] sm:$0xff] %v351_v21 }
  0xa1   : > { %1376 = vst [vmem:[%s2563_s25 + $0x6b0] sm:$0xff] %v352_v22  ;;  %1377 = vst [vmem:[%s2563_s25 + $0x6b8] sm:$0xff] %v353_v23  ;;  %v354_v24 = vld [vmem:[%s2554_s30 + $0x6c0] sm:$0xff]  ;;  %v355_v25 = vld [vmem:[%s2554_s30 + $0x6c8] sm:$0xff] }
  0xa2   : > { %v356_v26 = vld [vmem:[%s2554_s30 + $0x6d0] sm:$0xff]  ;;  %1378 = vst [vmem:[%s2563_s25 + $0x6c0] sm:$0xff] %v354_v24  ;;  %1379 = vst [vmem:[%s2563_s25 + $0x6c8] sm:$0xff] %v355_v25  ;;  %v357_v27 = vld [vmem:[%s2554_s30 + $0x6d8] sm:$0xff] }
  0xa3   : > { %1380 = vst [vmem:[%s2563_s25 + $0x6d0] sm:$0xff] %v356_v26  ;;  %v358_v28 = vld [vmem:[%s2554_s30 + $0x6e0] sm:$0xff]  ;;  %v359_v29 = vld [vmem:[%s2554_s30 + $0x6e8] sm:$0xff]  ;;  %1381 = vst [vmem:[%s2563_s25 + $0x6d8] sm:$0xff] %v357_v27 }
  0xa4   : > { %1382 = vst [vmem:[%s2563_s25 + $0x6e0] sm:$0xff] %v358_v28  ;;  %1383 = vst [vmem:[%s2563_s25 + $0x6e8] sm:$0xff] %v359_v29  ;;  %v360_v30 = vld [vmem:[%s2554_s30 + $0x6f0] sm:$0xff]  ;;  %v361_v31 = vld [vmem:[%s2554_s30 + $0x6f8] sm:$0xff] }
  0xa5   : > { %v362_v32 = vld [vmem:[%s2554_s30 + $0x700] sm:$0xff]  ;;  %1384 = vst [vmem:[%s2563_s25 + $0x6f0] sm:$0xff] %v360_v30  ;;  %1385 = vst [vmem:[%s2563_s25 + $0x6f8] sm:$0xff] %v361_v31  ;;  %v363_v33 = vld [vmem:[%s2554_s30 + $0x708] sm:$0xff] }
  0xa6   : > { %1386 = vst [vmem:[%s2563_s25 + $0x700] sm:$0xff] %v362_v32  ;;  %v364_v34 = vld [vmem:[%s2554_s30 + $0x710] sm:$0xff]  ;;  %v365_v35 = vld [vmem:[%s2554_s30 + $0x718] sm:$0xff]  ;;  %1387 = vst [vmem:[%s2563_s25 + $0x708] sm:$0xff] %v363_v33 }
  0xa7   : > { %1388 = vst [vmem:[%s2563_s25 + $0x710] sm:$0xff] %v364_v34  ;;  %1389 = vst [vmem:[%s2563_s25 + $0x718] sm:$0xff] %v365_v35  ;;  %v366_v36 = vld [vmem:[%s2554_s30 + $0x720] sm:$0xff]  ;;  %v367_v37 = vld [vmem:[%s2554_s30 + $0x728] sm:$0xff] }
  0xa8   : > { %v368_v38 = vld [vmem:[%s2554_s30 + $0x730] sm:$0xff]  ;;  %1390 = vst [vmem:[%s2563_s25 + $0x720] sm:$0xff] %v366_v36  ;;  %1391 = vst [vmem:[%s2563_s25 + $0x728] sm:$0xff] %v367_v37  ;;  %v369_v39 = vld [vmem:[%s2554_s30 + $0x738] sm:$0xff] }
  0xa9   : > { %1392 = vst [vmem:[%s2563_s25 + $0x730] sm:$0xff] %v368_v38  ;;  %v370_v40 = vld [vmem:[%s2554_s30 + $0x740] sm:$0xff]  ;;  %v371_v41 = vld [vmem:[%s2554_s30 + $0x748] sm:$0xff]  ;;  %1393 = vst [vmem:[%s2563_s25 + $0x738] sm:$0xff] %v369_v39 }
  0xaa   : > { %1394 = vst [vmem:[%s2563_s25 + $0x740] sm:$0xff] %v370_v40  ;;  %1395 = vst [vmem:[%s2563_s25 + $0x748] sm:$0xff] %v371_v41  ;;  %v372_v42 = vld [vmem:[%s2554_s30 + $0x750] sm:$0xff]  ;;  %v373_v43 = vld [vmem:[%s2554_s30 + $0x758] sm:$0xff] }
  0xab   : > { %v374_v44 = vld [vmem:[%s2554_s30 + $0x760] sm:$0xff]  ;;  %1396 = vst [vmem:[%s2563_s25 + $0x750] sm:$0xff] %v372_v42  ;;  %1397 = vst [vmem:[%s2563_s25 + $0x758] sm:$0xff] %v373_v43  ;;  %v375_v45 = vld [vmem:[%s2554_s30 + $0x768] sm:$0xff] }
  0xac   : > { %1398 = vst [vmem:[%s2563_s25 + $0x760] sm:$0xff] %v374_v44  ;;  %v376_v46 = vld [vmem:[%s2554_s30 + $0x770] sm:$0xff]  ;;  %v377_v47 = vld [vmem:[%s2554_s30 + $0x778] sm:$0xff]  ;;  %1399 = vst [vmem:[%s2563_s25 + $0x768] sm:$0xff] %v375_v45 }
  0xad   : > { %1400 = vst [vmem:[%s2563_s25 + $0x770] sm:$0xff] %v376_v46  ;;  %1401 = vst [vmem:[%s2563_s25 + $0x778] sm:$0xff] %v377_v47  ;;  %v378_v48 = vld [vmem:[%s2554_s30 + $0x780] sm:$0xff]  ;;  %v379_v49 = vld [vmem:[%s2554_s30 + $0x788] sm:$0xff] }
  0xae   : > { %v380_v50 = vld [vmem:[%s2554_s30 + $0x790] sm:$0xff]  ;;  %1402 = vst [vmem:[%s2563_s25 + $0x780] sm:$0xff] %v378_v48  ;;  %1403 = vst [vmem:[%s2563_s25 + $0x788] sm:$0xff] %v379_v49  ;;  %v381_v51 = vld [vmem:[%s2554_s30 + $0x798] sm:$0xff] }
  0xaf   : > { %1404 = vst [vmem:[%s2563_s25 + $0x790] sm:$0xff] %v380_v50  ;;  %v382_v52 = vld [vmem:[%s2554_s30 + $0x7a0] sm:$0xff]  ;;  %v383_v53 = vld [vmem:[%s2554_s30 + $0x7a8] sm:$0xff]  ;;  %1405 = vst [vmem:[%s2563_s25 + $0x798] sm:$0xff] %v381_v51 }
  0xb0   : > { %1406 = vst [vmem:[%s2563_s25 + $0x7a0] sm:$0xff] %v382_v52  ;;  %1407 = vst [vmem:[%s2563_s25 + $0x7a8] sm:$0xff] %v383_v53  ;;  %v384_v54 = vld [vmem:[%s2554_s30 + $0x7b0] sm:$0xff]  ;;  %v385_v55 = vld [vmem:[%s2554_s30 + $0x7b8] sm:$0xff] }
  0xb1   : > { %v386_v56 = vld [vmem:[%s2554_s30 + $0x7c0] sm:$0xff]  ;;  %1408 = vst [vmem:[%s2563_s25 + $0x7b0] sm:$0xff] %v384_v54  ;;  %1409 = vst [vmem:[%s2563_s25 + $0x7b8] sm:$0xff] %v385_v55  ;;  %v387_v57 = vld [vmem:[%s2554_s30 + $0x7c8] sm:$0xff] }
  0xb2   : > { %1410 = vst [vmem:[%s2563_s25 + $0x7c0] sm:$0xff] %v386_v56  ;;  %v388_v58 = vld [vmem:[%s2554_s30 + $0x7d0] sm:$0xff]  ;;  %v389_v59 = vld [vmem:[%s2554_s30 + $0x7d8] sm:$0xff]  ;;  %1411 = vst [vmem:[%s2563_s25 + $0x7c8] sm:$0xff] %v387_v57 }
  0xb3   : > { %1412 = vst [vmem:[%s2563_s25 + $0x7d0] sm:$0xff] %v388_v58  ;;  %1413 = vst [vmem:[%s2563_s25 + $0x7d8] sm:$0xff] %v389_v59  ;;  %v390_v60 = vld [vmem:[%s2554_s30 + $0x7e0] sm:$0xff]  ;;  %v391_v61 = vld [vmem:[%s2554_s30 + $0x7e8] sm:$0xff] }
  0xb4   : > { %v392_v62 = vld [vmem:[%s2554_s30 + $0x7f0] sm:$0xff]  ;;  %1414 = vst [vmem:[%s2563_s25 + $0x7e0] sm:$0xff] %v390_v60  ;;  %1415 = vst [vmem:[%s2563_s25 + $0x7e8] sm:$0xff] %v391_v61  ;;  %v393_v63 = vld [vmem:[%s2554_s30 + $0x7f8] sm:$0xff] }
  0xb5   : > { %1416 = vst [vmem:[%s2563_s25 + $0x7f0] sm:$0xff] %v392_v62  ;;  %v394_v0 = vld [vmem:[%s2554_s30 + $0x800] sm:$0xff]  ;;  %v395_v1 = vld [vmem:[%s2554_s30 + $0x808] sm:$0xff]  ;;  %1417 = vst [vmem:[%s2563_s25 + $0x7f8] sm:$0xff] %v393_v63 }
  0xb6   : > { %1418 = vst [vmem:[%s2563_s25 + $0x800] sm:$0xff] %v394_v0  ;;  %1419 = vst [vmem:[%s2563_s25 + $0x808] sm:$0xff] %v395_v1  ;;  %v396_v2 = vld [vmem:[%s2554_s30 + $0x810] sm:$0xff]  ;;  %v397_v3 = vld [vmem:[%s2554_s30 + $0x818] sm:$0xff] }
  0xb7   : > { %v398_v4 = vld [vmem:[%s2554_s30 + $0x820] sm:$0xff]  ;;  %1420 = vst [vmem:[%s2563_s25 + $0x810] sm:$0xff] %v396_v2  ;;  %1421 = vst [vmem:[%s2563_s25 + $0x818] sm:$0xff] %v397_v3  ;;  %v399_v5 = vld [vmem:[%s2554_s30 + $0x828] sm:$0xff] }
  0xb8   : > { %1422 = vst [vmem:[%s2563_s25 + $0x820] sm:$0xff] %v398_v4  ;;  %v400_v6 = vld [vmem:[%s2554_s30 + $0x830] sm:$0xff]  ;;  %v401_v7 = vld [vmem:[%s2554_s30 + $0x838] sm:$0xff]  ;;  %1423 = vst [vmem:[%s2563_s25 + $0x828] sm:$0xff] %v399_v5 }
  0xb9   : > { %1424 = vst [vmem:[%s2563_s25 + $0x830] sm:$0xff] %v400_v6  ;;  %1425 = vst [vmem:[%s2563_s25 + $0x838] sm:$0xff] %v401_v7  ;;  %v402_v8 = vld [vmem:[%s2554_s30 + $0x840] sm:$0xff]  ;;  %v403_v9 = vld [vmem:[%s2554_s30 + $0x848] sm:$0xff] }
  0xba   : > { %v404_v10 = vld [vmem:[%s2554_s30 + $0x850] sm:$0xff]  ;;  %1426 = vst [vmem:[%s2563_s25 + $0x840] sm:$0xff] %v402_v8  ;;  %1427 = vst [vmem:[%s2563_s25 + $0x848] sm:$0xff] %v403_v9  ;;  %v405_v11 = vld [vmem:[%s2554_s30 + $0x858] sm:$0xff] }
  0xbb   : > { %1428 = vst [vmem:[%s2563_s25 + $0x850] sm:$0xff] %v404_v10  ;;  %v406_v12 = vld [vmem:[%s2554_s30 + $0x860] sm:$0xff]  ;;  %v407_v13 = vld [vmem:[%s2554_s30 + $0x868] sm:$0xff]  ;;  %1429 = vst [vmem:[%s2563_s25 + $0x858] sm:$0xff] %v405_v11 }
  0xbc   : > { %1430 = vst [vmem:[%s2563_s25 + $0x860] sm:$0xff] %v406_v12  ;;  %1431 = vst [vmem:[%s2563_s25 + $0x868] sm:$0xff] %v407_v13  ;;  %v408_v14 = vld [vmem:[%s2554_s30 + $0x870] sm:$0xff]  ;;  %v409_v15 = vld [vmem:[%s2554_s30 + $0x878] sm:$0xff] }
  0xbd   : > { %v410_v16 = vld [vmem:[%s2554_s30 + $0x880] sm:$0xff]  ;;  %1432 = vst [vmem:[%s2563_s25 + $0x870] sm:$0xff] %v408_v14  ;;  %1433 = vst [vmem:[%s2563_s25 + $0x878] sm:$0xff] %v409_v15  ;;  %v411_v17 = vld [vmem:[%s2554_s30 + $0x888] sm:$0xff] }
  0xbe   : > { %1434 = vst [vmem:[%s2563_s25 + $0x880] sm:$0xff] %v410_v16  ;;  %v412_v18 = vld [vmem:[%s2554_s30 + $0x890] sm:$0xff]  ;;  %v413_v19 = vld [vmem:[%s2554_s30 + $0x898] sm:$0xff]  ;;  %1435 = vst [vmem:[%s2563_s25 + $0x888] sm:$0xff] %v411_v17 }
  0xbf   : > { %1436 = vst [vmem:[%s2563_s25 + $0x890] sm:$0xff] %v412_v18  ;;  %1437 = vst [vmem:[%s2563_s25 + $0x898] sm:$0xff] %v413_v19  ;;  %v414_v20 = vld [vmem:[%s2554_s30 + $0x8a0] sm:$0xff]  ;;  %v415_v21 = vld [vmem:[%s2554_s30 + $0x8a8] sm:$0xff] }
  0xc0   : > { %v416_v22 = vld [vmem:[%s2554_s30 + $0x8b0] sm:$0xff]  ;;  %1438 = vst [vmem:[%s2563_s25 + $0x8a0] sm:$0xff] %v414_v20  ;;  %1439 = vst [vmem:[%s2563_s25 + $0x8a8] sm:$0xff] %v415_v21  ;;  %v417_v23 = vld [vmem:[%s2554_s30 + $0x8b8] sm:$0xff] }
  0xc1   : > { %1440 = vst [vmem:[%s2563_s25 + $0x8b0] sm:$0xff] %v416_v22  ;;  %v418_v24 = vld [vmem:[%s2554_s30 + $0x8c0] sm:$0xff]  ;;  %v419_v25 = vld [vmem:[%s2554_s30 + $0x8c8] sm:$0xff]  ;;  %1441 = vst [vmem:[%s2563_s25 + $0x8b8] sm:$0xff] %v417_v23 }
  0xc2   : > { %1442 = vst [vmem:[%s2563_s25 + $0x8c0] sm:$0xff] %v418_v24  ;;  %1443 = vst [vmem:[%s2563_s25 + $0x8c8] sm:$0xff] %v419_v25  ;;  %v420_v26 = vld [vmem:[%s2554_s30 + $0x8d0] sm:$0xff]  ;;  %v421_v27 = vld [vmem:[%s2554_s30 + $0x8d8] sm:$0xff] }
  0xc3   : > { %v422_v28 = vld [vmem:[%s2554_s30 + $0x8e0] sm:$0xff]  ;;  %1444 = vst [vmem:[%s2563_s25 + $0x8d0] sm:$0xff] %v420_v26  ;;  %1445 = vst [vmem:[%s2563_s25 + $0x8d8] sm:$0xff] %v421_v27  ;;  %v423_v29 = vld [vmem:[%s2554_s30 + $0x8e8] sm:$0xff] }
  0xc4   : > { %1446 = vst [vmem:[%s2563_s25 + $0x8e0] sm:$0xff] %v422_v28  ;;  %v424_v30 = vld [vmem:[%s2554_s30 + $0x8f0] sm:$0xff]  ;;  %v425_v31 = vld [vmem:[%s2554_s30 + $0x8f8] sm:$0xff]  ;;  %1447 = vst [vmem:[%s2563_s25 + $0x8e8] sm:$0xff] %v423_v29 }
  0xc5   : > { %1448 = vst [vmem:[%s2563_s25 + $0x8f0] sm:$0xff] %v424_v30  ;;  %1449 = vst [vmem:[%s2563_s25 + $0x8f8] sm:$0xff] %v425_v31  ;;  %v426_v32 = vld [vmem:[%s2554_s30 + $0x900] sm:$0xff]  ;;  %v427_v33 = vld [vmem:[%s2554_s30 + $0x908] sm:$0xff] }
  0xc6   : > { %v428_v34 = vld [vmem:[%s2554_s30 + $0x910] sm:$0xff]  ;;  %1450 = vst [vmem:[%s2563_s25 + $0x900] sm:$0xff] %v426_v32  ;;  %1451 = vst [vmem:[%s2563_s25 + $0x908] sm:$0xff] %v427_v33  ;;  %v429_v35 = vld [vmem:[%s2554_s30 + $0x918] sm:$0xff] }
  0xc7   : > { %1452 = vst [vmem:[%s2563_s25 + $0x910] sm:$0xff] %v428_v34  ;;  %v430_v36 = vld [vmem:[%s2554_s30 + $0x920] sm:$0xff]  ;;  %v431_v37 = vld [vmem:[%s2554_s30 + $0x928] sm:$0xff]  ;;  %1453 = vst [vmem:[%s2563_s25 + $0x918] sm:$0xff] %v429_v35 }
  0xc8   : > { %1454 = vst [vmem:[%s2563_s25 + $0x920] sm:$0xff] %v430_v36  ;;  %1455 = vst [vmem:[%s2563_s25 + $0x928] sm:$0xff] %v431_v37  ;;  %v432_v38 = vld [vmem:[%s2554_s30 + $0x930] sm:$0xff]  ;;  %v433_v39 = vld [vmem:[%s2554_s30 + $0x938] sm:$0xff] }
  0xc9   : > { %v434_v40 = vld [vmem:[%s2554_s30 + $0x940] sm:$0xff]  ;;  %1456 = vst [vmem:[%s2563_s25 + $0x930] sm:$0xff] %v432_v38  ;;  %1457 = vst [vmem:[%s2563_s25 + $0x938] sm:$0xff] %v433_v39  ;;  %v435_v41 = vld [vmem:[%s2554_s30 + $0x948] sm:$0xff] }
  0xca   : > { %1458 = vst [vmem:[%s2563_s25 + $0x940] sm:$0xff] %v434_v40  ;;  %v436_v42 = vld [vmem:[%s2554_s30 + $0x950] sm:$0xff]  ;;  %v437_v43 = vld [vmem:[%s2554_s30 + $0x958] sm:$0xff]  ;;  %1459 = vst [vmem:[%s2563_s25 + $0x948] sm:$0xff] %v435_v41 }
  0xcb   : > { %1460 = vst [vmem:[%s2563_s25 + $0x950] sm:$0xff] %v436_v42  ;;  %1461 = vst [vmem:[%s2563_s25 + $0x958] sm:$0xff] %v437_v43  ;;  %v438_v44 = vld [vmem:[%s2554_s30 + $0x960] sm:$0xff]  ;;  %v439_v45 = vld [vmem:[%s2554_s30 + $0x968] sm:$0xff] }
  0xcc   : > { %v440_v46 = vld [vmem:[%s2554_s30 + $0x970] sm:$0xff]  ;;  %1462 = vst [vmem:[%s2563_s25 + $0x960] sm:$0xff] %v438_v44  ;;  %1463 = vst [vmem:[%s2563_s25 + $0x968] sm:$0xff] %v439_v45  ;;  %v441_v47 = vld [vmem:[%s2554_s30 + $0x978] sm:$0xff] }
  0xcd   : > { %1464 = vst [vmem:[%s2563_s25 + $0x970] sm:$0xff] %v440_v46  ;;  %v442_v48 = vld [vmem:[%s2554_s30 + $0x980] sm:$0xff]  ;;  %v443_v49 = vld [vmem:[%s2554_s30 + $0x988] sm:$0xff]  ;;  %1465 = vst [vmem:[%s2563_s25 + $0x978] sm:$0xff] %v441_v47 }
  0xce   : > { %1466 = vst [vmem:[%s2563_s25 + $0x980] sm:$0xff] %v442_v48  ;;  %1467 = vst [vmem:[%s2563_s25 + $0x988] sm:$0xff] %v443_v49  ;;  %v444_v50 = vld [vmem:[%s2554_s30 + $0x990] sm:$0xff]  ;;  %v445_v51 = vld [vmem:[%s2554_s30 + $0x998] sm:$0xff] }
  0xcf   : > { %v446_v52 = vld [vmem:[%s2554_s30 + $0x9a0] sm:$0xff]  ;;  %1468 = vst [vmem:[%s2563_s25 + $0x990] sm:$0xff] %v444_v50  ;;  %1469 = vst [vmem:[%s2563_s25 + $0x998] sm:$0xff] %v445_v51  ;;  %v447_v53 = vld [vmem:[%s2554_s30 + $0x9a8] sm:$0xff] }
  0xd0   : > { %1470 = vst [vmem:[%s2563_s25 + $0x9a0] sm:$0xff] %v446_v52  ;;  %v448_v54 = vld [vmem:[%s2554_s30 + $0x9b0] sm:$0xff]  ;;  %v449_v55 = vld [vmem:[%s2554_s30 + $0x9b8] sm:$0xff]  ;;  %1471 = vst [vmem:[%s2563_s25 + $0x9a8] sm:$0xff] %v447_v53 }
  0xd1   : > { %1472 = vst [vmem:[%s2563_s25 + $0x9b0] sm:$0xff] %v448_v54  ;;  %1473 = vst [vmem:[%s2563_s25 + $0x9b8] sm:$0xff] %v449_v55  ;;  %v450_v56 = vld [vmem:[%s2554_s30 + $0x9c0] sm:$0xff]  ;;  %v451_v57 = vld [vmem:[%s2554_s30 + $0x9c8] sm:$0xff] }
  0xd2   : > { %v452_v58 = vld [vmem:[%s2554_s30 + $0x9d0] sm:$0xff]  ;;  %1474 = vst [vmem:[%s2563_s25 + $0x9c0] sm:$0xff] %v450_v56  ;;  %1475 = vst [vmem:[%s2563_s25 + $0x9c8] sm:$0xff] %v451_v57  ;;  %v453_v59 = vld [vmem:[%s2554_s30 + $0x9d8] sm:$0xff] }
  0xd3   : > { %1476 = vst [vmem:[%s2563_s25 + $0x9d0] sm:$0xff] %v452_v58  ;;  %v454_v60 = vld [vmem:[%s2554_s30 + $0x9e0] sm:$0xff]  ;;  %v455_v61 = vld [vmem:[%s2554_s30 + $0x9e8] sm:$0xff]  ;;  %1477 = vst [vmem:[%s2563_s25 + $0x9d8] sm:$0xff] %v453_v59 }
  0xd4   : > { %1478 = vst [vmem:[%s2563_s25 + $0x9e0] sm:$0xff] %v454_v60  ;;  %1479 = vst [vmem:[%s2563_s25 + $0x9e8] sm:$0xff] %v455_v61  ;;  %v456_v62 = vld [vmem:[%s2554_s30 + $0x9f0] sm:$0xff]  ;;  %v457_v63 = vld [vmem:[%s2554_s30 + $0x9f8] sm:$0xff] }
  0xd5   : > { %v458_v0 = vld [vmem:[%s2554_s30 + $0xa00] sm:$0xff]  ;;  %1480 = vst [vmem:[%s2563_s25 + $0x9f0] sm:$0xff] %v456_v62  ;;  %1481 = vst [vmem:[%s2563_s25 + $0x9f8] sm:$0xff] %v457_v63  ;;  %v459_v1 = vld [vmem:[%s2554_s30 + $0xa08] sm:$0xff] }
  0xd6   : > { %1482 = vst [vmem:[%s2563_s25 + $0xa00] sm:$0xff] %v458_v0  ;;  %v460_v2 = vld [vmem:[%s2554_s30 + $0xa10] sm:$0xff]  ;;  %v461_v3 = vld [vmem:[%s2554_s30 + $0xa18] sm:$0xff]  ;;  %1483 = vst [vmem:[%s2563_s25 + $0xa08] sm:$0xff] %v459_v1 }
  0xd7   : > { %1484 = vst [vmem:[%s2563_s25 + $0xa10] sm:$0xff] %v460_v2  ;;  %1485 = vst [vmem:[%s2563_s25 + $0xa18] sm:$0xff] %v461_v3  ;;  %v462_v4 = vld [vmem:[%s2554_s30 + $0xa20] sm:$0xff]  ;;  %v463_v5 = vld [vmem:[%s2554_s30 + $0xa28] sm:$0xff] }
  0xd8   : > { %v464_v6 = vld [vmem:[%s2554_s30 + $0xa30] sm:$0xff]  ;;  %1486 = vst [vmem:[%s2563_s25 + $0xa20] sm:$0xff] %v462_v4  ;;  %1487 = vst [vmem:[%s2563_s25 + $0xa28] sm:$0xff] %v463_v5  ;;  %v465_v7 = vld [vmem:[%s2554_s30 + $0xa38] sm:$0xff] }
  0xd9   : > { %1488 = vst [vmem:[%s2563_s25 + $0xa30] sm:$0xff] %v464_v6  ;;  %v466_v8 = vld [vmem:[%s2554_s30 + $0xa40] sm:$0xff]  ;;  %v467_v9 = vld [vmem:[%s2554_s30 + $0xa48] sm:$0xff]  ;;  %1489 = vst [vmem:[%s2563_s25 + $0xa38] sm:$0xff] %v465_v7 }
  0xda   : > { %1490 = vst [vmem:[%s2563_s25 + $0xa40] sm:$0xff] %v466_v8  ;;  %1491 = vst [vmem:[%s2563_s25 + $0xa48] sm:$0xff] %v467_v9  ;;  %v468_v10 = vld [vmem:[%s2554_s30 + $0xa50] sm:$0xff]  ;;  %v469_v11 = vld [vmem:[%s2554_s30 + $0xa58] sm:$0xff] }
  0xdb   : > { %v470_v12 = vld [vmem:[%s2554_s30 + $0xa60] sm:$0xff]  ;;  %1492 = vst [vmem:[%s2563_s25 + $0xa50] sm:$0xff] %v468_v10  ;;  %1493 = vst [vmem:[%s2563_s25 + $0xa58] sm:$0xff] %v469_v11  ;;  %v471_v13 = vld [vmem:[%s2554_s30 + $0xa68] sm:$0xff] }
  0xdc   : > { %1494 = vst [vmem:[%s2563_s25 + $0xa60] sm:$0xff] %v470_v12  ;;  %v472_v14 = vld [vmem:[%s2554_s30 + $0xa70] sm:$0xff]  ;;  %v473_v15 = vld [vmem:[%s2554_s30 + $0xa78] sm:$0xff]  ;;  %1495 = vst [vmem:[%s2563_s25 + $0xa68] sm:$0xff] %v471_v13 }
  0xdd   : > { %1496 = vst [vmem:[%s2563_s25 + $0xa70] sm:$0xff] %v472_v14  ;;  %1497 = vst [vmem:[%s2563_s25 + $0xa78] sm:$0xff] %v473_v15  ;;  %v474_v16 = vld [vmem:[%s2554_s30 + $0xa80] sm:$0xff]  ;;  %v475_v17 = vld [vmem:[%s2554_s30 + $0xa88] sm:$0xff] }
  0xde   : > { %v476_v18 = vld [vmem:[%s2554_s30 + $0xa90] sm:$0xff]  ;;  %1498 = vst [vmem:[%s2563_s25 + $0xa80] sm:$0xff] %v474_v16  ;;  %1499 = vst [vmem:[%s2563_s25 + $0xa88] sm:$0xff] %v475_v17  ;;  %v477_v19 = vld [vmem:[%s2554_s30 + $0xa98] sm:$0xff] }
  0xdf   : > { %1500 = vst [vmem:[%s2563_s25 + $0xa90] sm:$0xff] %v476_v18  ;;  %v478_v20 = vld [vmem:[%s2554_s30 + $0xaa0] sm:$0xff]  ;;  %v479_v21 = vld [vmem:[%s2554_s30 + $0xaa8] sm:$0xff]  ;;  %1501 = vst [vmem:[%s2563_s25 + $0xa98] sm:$0xff] %v477_v19 }
  0xe0   : > { %1502 = vst [vmem:[%s2563_s25 + $0xaa0] sm:$0xff] %v478_v20  ;;  %1503 = vst [vmem:[%s2563_s25 + $0xaa8] sm:$0xff] %v479_v21  ;;  %v480_v22 = vld [vmem:[%s2554_s30 + $0xab0] sm:$0xff]  ;;  %v481_v23 = vld [vmem:[%s2554_s30 + $0xab8] sm:$0xff] }
  0xe1   : > { %v482_v24 = vld [vmem:[%s2554_s30 + $0xac0] sm:$0xff]  ;;  %1504 = vst [vmem:[%s2563_s25 + $0xab0] sm:$0xff] %v480_v22  ;;  %1505 = vst [vmem:[%s2563_s25 + $0xab8] sm:$0xff] %v481_v23  ;;  %v483_v25 = vld [vmem:[%s2554_s30 + $0xac8] sm:$0xff] }
  0xe2   : > { %1506 = vst [vmem:[%s2563_s25 + $0xac0] sm:$0xff] %v482_v24  ;;  %v484_v26 = vld [vmem:[%s2554_s30 + $0xad0] sm:$0xff]  ;;  %v485_v27 = vld [vmem:[%s2554_s30 + $0xad8] sm:$0xff]  ;;  %1507 = vst [vmem:[%s2563_s25 + $0xac8] sm:$0xff] %v483_v25 }
  0xe3   : > { %1508 = vst [vmem:[%s2563_s25 + $0xad0] sm:$0xff] %v484_v26  ;;  %1509 = vst [vmem:[%s2563_s25 + $0xad8] sm:$0xff] %v485_v27  ;;  %v486_v28 = vld [vmem:[%s2554_s30 + $0xae0] sm:$0xff]  ;;  %v487_v29 = vld [vmem:[%s2554_s30 + $0xae8] sm:$0xff] }
  0xe4   : > { %v488_v30 = vld [vmem:[%s2554_s30 + $0xaf0] sm:$0xff]  ;;  %1510 = vst [vmem:[%s2563_s25 + $0xae0] sm:$0xff] %v486_v28  ;;  %1511 = vst [vmem:[%s2563_s25 + $0xae8] sm:$0xff] %v487_v29  ;;  %v489_v31 = vld [vmem:[%s2554_s30 + $0xaf8] sm:$0xff] }
  0xe5   : > { %1512 = vst [vmem:[%s2563_s25 + $0xaf0] sm:$0xff] %v488_v30  ;;  %v490_v32 = vld [vmem:[%s2554_s30 + $0xb00] sm:$0xff]  ;;  %v491_v33 = vld [vmem:[%s2554_s30 + $0xb08] sm:$0xff]  ;;  %1513 = vst [vmem:[%s2563_s25 + $0xaf8] sm:$0xff] %v489_v31 }
  0xe6   : > { %1514 = vst [vmem:[%s2563_s25 + $0xb00] sm:$0xff] %v490_v32  ;;  %1515 = vst [vmem:[%s2563_s25 + $0xb08] sm:$0xff] %v491_v33  ;;  %v492_v34 = vld [vmem:[%s2554_s30 + $0xb10] sm:$0xff]  ;;  %v493_v35 = vld [vmem:[%s2554_s30 + $0xb18] sm:$0xff] }
  0xe7   : > { %v494_v36 = vld [vmem:[%s2554_s30 + $0xb20] sm:$0xff]  ;;  %1516 = vst [vmem:[%s2563_s25 + $0xb10] sm:$0xff] %v492_v34  ;;  %1517 = vst [vmem:[%s2563_s25 + $0xb18] sm:$0xff] %v493_v35  ;;  %v495_v37 = vld [vmem:[%s2554_s30 + $0xb28] sm:$0xff] }
  0xe8   : > { %1518 = vst [vmem:[%s2563_s25 + $0xb20] sm:$0xff] %v494_v36  ;;  %v496_v38 = vld [vmem:[%s2554_s30 + $0xb30] sm:$0xff]  ;;  %v497_v39 = vld [vmem:[%s2554_s30 + $0xb38] sm:$0xff]  ;;  %1519 = vst [vmem:[%s2563_s25 + $0xb28] sm:$0xff] %v495_v37 }
  0xe9   : > { %1520 = vst [vmem:[%s2563_s25 + $0xb30] sm:$0xff] %v496_v38  ;;  %1521 = vst [vmem:[%s2563_s25 + $0xb38] sm:$0xff] %v497_v39  ;;  %v498_v40 = vld [vmem:[%s2554_s30 + $0xb40] sm:$0xff]  ;;  %v499_v41 = vld [vmem:[%s2554_s30 + $0xb48] sm:$0xff] }
  0xea   : > { %v500_v42 = vld [vmem:[%s2554_s30 + $0xb50] sm:$0xff]  ;;  %1522 = vst [vmem:[%s2563_s25 + $0xb40] sm:$0xff] %v498_v40  ;;  %1523 = vst [vmem:[%s2563_s25 + $0xb48] sm:$0xff] %v499_v41  ;;  %v501_v43 = vld [vmem:[%s2554_s30 + $0xb58] sm:$0xff] }
  0xeb   : > { %1524 = vst [vmem:[%s2563_s25 + $0xb50] sm:$0xff] %v500_v42  ;;  %v502_v44 = vld [vmem:[%s2554_s30 + $0xb60] sm:$0xff]  ;;  %v503_v45 = vld [vmem:[%s2554_s30 + $0xb68] sm:$0xff]  ;;  %1525 = vst [vmem:[%s2563_s25 + $0xb58] sm:$0xff] %v501_v43 }
  0xec   : > { %1526 = vst [vmem:[%s2563_s25 + $0xb60] sm:$0xff] %v502_v44  ;;  %1527 = vst [vmem:[%s2563_s25 + $0xb68] sm:$0xff] %v503_v45  ;;  %v504_v46 = vld [vmem:[%s2554_s30 + $0xb70] sm:$0xff]  ;;  %v505_v47 = vld [vmem:[%s2554_s30 + $0xb78] sm:$0xff] }
  0xed   : > { %v506_v48 = vld [vmem:[%s2554_s30 + $0xb80] sm:$0xff]  ;;  %1528 = vst [vmem:[%s2563_s25 + $0xb70] sm:$0xff] %v504_v46  ;;  %1529 = vst [vmem:[%s2563_s25 + $0xb78] sm:$0xff] %v505_v47  ;;  %v507_v49 = vld [vmem:[%s2554_s30 + $0xb88] sm:$0xff] }
  0xee   : > { %1530 = vst [vmem:[%s2563_s25 + $0xb80] sm:$0xff] %v506_v48  ;;  %v508_v50 = vld [vmem:[%s2554_s30 + $0xb90] sm:$0xff]  ;;  %v509_v51 = vld [vmem:[%s2554_s30 + $0xb98] sm:$0xff]  ;;  %1531 = vst [vmem:[%s2563_s25 + $0xb88] sm:$0xff] %v507_v49 }
  0xef   : > { %1532 = vst [vmem:[%s2563_s25 + $0xb90] sm:$0xff] %v508_v50  ;;  %1533 = vst [vmem:[%s2563_s25 + $0xb98] sm:$0xff] %v509_v51  ;;  %v510_v52 = vld [vmem:[%s2554_s30 + $0xba0] sm:$0xff]  ;;  %v511_v53 = vld [vmem:[%s2554_s30 + $0xba8] sm:$0xff] }
  0xf0   : > { %v512_v54 = vld [vmem:[%s2554_s30 + $0xbb0] sm:$0xff]  ;;  %1534 = vst [vmem:[%s2563_s25 + $0xba0] sm:$0xff] %v510_v52  ;;  %1535 = vst [vmem:[%s2563_s25 + $0xba8] sm:$0xff] %v511_v53  ;;  %v513_v55 = vld [vmem:[%s2554_s30 + $0xbb8] sm:$0xff] }
  0xf1   : > { %1536 = vst [vmem:[%s2563_s25 + $0xbb0] sm:$0xff] %v512_v54  ;;  %v514_v56 = vld [vmem:[%s2554_s30 + $0xbc0] sm:$0xff]  ;;  %v515_v57 = vld [vmem:[%s2554_s30 + $0xbc8] sm:$0xff]  ;;  %1537 = vst [vmem:[%s2563_s25 + $0xbb8] sm:$0xff] %v513_v55 }
  0xf2   : > { %1538 = vst [vmem:[%s2563_s25 + $0xbc0] sm:$0xff] %v514_v56  ;;  %1539 = vst [vmem:[%s2563_s25 + $0xbc8] sm:$0xff] %v515_v57  ;;  %v516_v58 = vld [vmem:[%s2554_s30 + $0xbd0] sm:$0xff]  ;;  %v517_v59 = vld [vmem:[%s2554_s30 + $0xbd8] sm:$0xff] }
  0xf3   : > { %v518_v60 = vld [vmem:[%s2554_s30 + $0xbe0] sm:$0xff]  ;;  %1540 = vst [vmem:[%s2563_s25 + $0xbd0] sm:$0xff] %v516_v58  ;;  %1541 = vst [vmem:[%s2563_s25 + $0xbd8] sm:$0xff] %v517_v59  ;;  %v519_v61 = vld [vmem:[%s2554_s30 + $0xbe8] sm:$0xff] }
  0xf4   : > { %1542 = vst [vmem:[%s2563_s25 + $0xbe0] sm:$0xff] %v518_v60  ;;  %v520_v62 = vld [vmem:[%s2554_s30 + $0xbf0] sm:$0xff]  ;;  %v521_v63 = vld [vmem:[%s2554_s30 + $0xbf8] sm:$0xff]  ;;  %1543 = vst [vmem:[%s2563_s25 + $0xbe8] sm:$0xff] %v519_v61 }
  0xf5   : > { %1544 = vst [vmem:[%s2563_s25 + $0xbf0] sm:$0xff] %v520_v62  ;;  %1545 = vst [vmem:[%s2563_s25 + $0xbf8] sm:$0xff] %v521_v63  ;;  %v522_v0 = vld [vmem:[%s2554_s30 + $0xc00] sm:$0xff]  ;;  %v523_v1 = vld [vmem:[%s2554_s30 + $0xc08] sm:$0xff] }
  0xf6   : > { %v524_v2 = vld [vmem:[%s2554_s30 + $0xc10] sm:$0xff]  ;;  %1546 = vst [vmem:[%s2563_s25 + $0xc00] sm:$0xff] %v522_v0  ;;  %1547 = vst [vmem:[%s2563_s25 + $0xc08] sm:$0xff] %v523_v1  ;;  %v525_v3 = vld [vmem:[%s2554_s30 + $0xc18] sm:$0xff] }
  0xf7   : > { %1548 = vst [vmem:[%s2563_s25 + $0xc10] sm:$0xff] %v524_v2  ;;  %v526_v4 = vld [vmem:[%s2554_s30 + $0xc20] sm:$0xff]  ;;  %v527_v5 = vld [vmem:[%s2554_s30 + $0xc28] sm:$0xff]  ;;  %1549 = vst [vmem:[%s2563_s25 + $0xc18] sm:$0xff] %v525_v3 }
  0xf8   : > { %1550 = vst [vmem:[%s2563_s25 + $0xc20] sm:$0xff] %v526_v4  ;;  %1551 = vst [vmem:[%s2563_s25 + $0xc28] sm:$0xff] %v527_v5  ;;  %v528_v6 = vld [vmem:[%s2554_s30 + $0xc30] sm:$0xff]  ;;  %v529_v7 = vld [vmem:[%s2554_s30 + $0xc38] sm:$0xff] }
  0xf9   : > { %v530_v8 = vld [vmem:[%s2554_s30 + $0xc40] sm:$0xff]  ;;  %1552 = vst [vmem:[%s2563_s25 + $0xc30] sm:$0xff] %v528_v6  ;;  %1553 = vst [vmem:[%s2563_s25 + $0xc38] sm:$0xff] %v529_v7  ;;  %v531_v9 = vld [vmem:[%s2554_s30 + $0xc48] sm:$0xff] }
  0xfa   : > { %1554 = vst [vmem:[%s2563_s25 + $0xc40] sm:$0xff] %v530_v8  ;;  %v532_v10 = vld [vmem:[%s2554_s30 + $0xc50] sm:$0xff]  ;;  %v533_v11 = vld [vmem:[%s2554_s30 + $0xc58] sm:$0xff]  ;;  %1555 = vst [vmem:[%s2563_s25 + $0xc48] sm:$0xff] %v531_v9 }
  0xfb   : > { %1556 = vst [vmem:[%s2563_s25 + $0xc50] sm:$0xff] %v532_v10  ;;  %1557 = vst [vmem:[%s2563_s25 + $0xc58] sm:$0xff] %v533_v11  ;;  %v534_v12 = vld [vmem:[%s2554_s30 + $0xc60] sm:$0xff]  ;;  %v535_v13 = vld [vmem:[%s2554_s30 + $0xc68] sm:$0xff] }
  0xfc   : > { %v536_v14 = vld [vmem:[%s2554_s30 + $0xc70] sm:$0xff]  ;;  %1558 = vst [vmem:[%s2563_s25 + $0xc60] sm:$0xff] %v534_v12  ;;  %1559 = vst [vmem:[%s2563_s25 + $0xc68] sm:$0xff] %v535_v13  ;;  %v537_v15 = vld [vmem:[%s2554_s30 + $0xc78] sm:$0xff] }
  0xfd   : > { %1560 = vst [vmem:[%s2563_s25 + $0xc70] sm:$0xff] %v536_v14  ;;  %v538_v16 = vld [vmem:[%s2554_s30 + $0xc80] sm:$0xff]  ;;  %v539_v17 = vld [vmem:[%s2554_s30 + $0xc88] sm:$0xff]  ;;  %1561 = vst [vmem:[%s2563_s25 + $0xc78] sm:$0xff] %v537_v15 }
  0xfe   : > { %1562 = vst [vmem:[%s2563_s25 + $0xc80] sm:$0xff] %v538_v16  ;;  %1563 = vst [vmem:[%s2563_s25 + $0xc88] sm:$0xff] %v539_v17  ;;  %v540_v18 = vld [vmem:[%s2554_s30 + $0xc90] sm:$0xff]  ;;  %v541_v19 = vld [vmem:[%s2554_s30 + $0xc98] sm:$0xff] }
  0xff   : > { %v542_v20 = vld [vmem:[%s2554_s30 + $0xca0] sm:$0xff]  ;;  %1564 = vst [vmem:[%s2563_s25 + $0xc90] sm:$0xff] %v540_v18  ;;  %1565 = vst [vmem:[%s2563_s25 + $0xc98] sm:$0xff] %v541_v19  ;;  %v543_v21 = vld [vmem:[%s2554_s30 + $0xca8] sm:$0xff] }
 0x100   : > { %1566 = vst [vmem:[%s2563_s25 + $0xca0] sm:$0xff] %v542_v20  ;;  %v544_v22 = vld [vmem:[%s2554_s30 + $0xcb0] sm:$0xff]  ;;  %v545_v23 = vld [vmem:[%s2554_s30 + $0xcb8] sm:$0xff]  ;;  %1567 = vst [vmem:[%s2563_s25 + $0xca8] sm:$0xff] %v543_v21 }
 0x101   : > { %1568 = vst [vmem:[%s2563_s25 + $0xcb0] sm:$0xff] %v544_v22  ;;  %1569 = vst [vmem:[%s2563_s25 + $0xcb8] sm:$0xff] %v545_v23  ;;  %v546_v24 = vld [vmem:[%s2554_s30 + $0xcc0] sm:$0xff]  ;;  %v547_v25 = vld [vmem:[%s2554_s30 + $0xcc8] sm:$0xff] }
 0x102   : > { %v548_v26 = vld [vmem:[%s2554_s30 + $0xcd0] sm:$0xff]  ;;  %1570 = vst [vmem:[%s2563_s25 + $0xcc0] sm:$0xff] %v546_v24  ;;  %1571 = vst [vmem:[%s2563_s25 + $0xcc8] sm:$0xff] %v547_v25  ;;  %v549_v27 = vld [vmem:[%s2554_s30 + $0xcd8] sm:$0xff] }
 0x103   : > { %1572 = vst [vmem:[%s2563_s25 + $0xcd0] sm:$0xff] %v548_v26  ;;  %v550_v28 = vld [vmem:[%s2554_s30 + $0xce0] sm:$0xff]  ;;  %v551_v29 = vld [vmem:[%s2554_s30 + $0xce8] sm:$0xff]  ;;  %1573 = vst [vmem:[%s2563_s25 + $0xcd8] sm:$0xff] %v549_v27 }
 0x104   : > { %1574 = vst [vmem:[%s2563_s25 + $0xce0] sm:$0xff] %v550_v28  ;;  %1575 = vst [vmem:[%s2563_s25 + $0xce8] sm:$0xff] %v551_v29  ;;  %v552_v30 = vld [vmem:[%s2554_s30 + $0xcf0] sm:$0xff]  ;;  %v553_v31 = vld [vmem:[%s2554_s30 + $0xcf8] sm:$0xff] }
 0x105   : > { %v554_v32 = vld [vmem:[%s2554_s30 + $0xd00] sm:$0xff]  ;;  %1576 = vst [vmem:[%s2563_s25 + $0xcf0] sm:$0xff] %v552_v30  ;;  %1577 = vst [vmem:[%s2563_s25 + $0xcf8] sm:$0xff] %v553_v31  ;;  %v555_v33 = vld [vmem:[%s2554_s30 + $0xd08] sm:$0xff] }
 0x106   : > { %1578 = vst [vmem:[%s2563_s25 + $0xd00] sm:$0xff] %v554_v32  ;;  %v556_v34 = vld [vmem:[%s2554_s30 + $0xd10] sm:$0xff]  ;;  %v557_v35 = vld [vmem:[%s2554_s30 + $0xd18] sm:$0xff]  ;;  %1579 = vst [vmem:[%s2563_s25 + $0xd08] sm:$0xff] %v555_v33 }
 0x107   : > { %1580 = vst [vmem:[%s2563_s25 + $0xd10] sm:$0xff] %v556_v34  ;;  %1581 = vst [vmem:[%s2563_s25 + $0xd18] sm:$0xff] %v557_v35  ;;  %v558_v36 = vld [vmem:[%s2554_s30 + $0xd20] sm:$0xff]  ;;  %v559_v37 = vld [vmem:[%s2554_s30 + $0xd28] sm:$0xff] }
 0x108   : > { %v560_v38 = vld [vmem:[%s2554_s30 + $0xd30] sm:$0xff]  ;;  %1582 = vst [vmem:[%s2563_s25 + $0xd20] sm:$0xff] %v558_v36  ;;  %1583 = vst [vmem:[%s2563_s25 + $0xd28] sm:$0xff] %v559_v37  ;;  %v561_v39 = vld [vmem:[%s2554_s30 + $0xd38] sm:$0xff] }
 0x109   : > { %1584 = vst [vmem:[%s2563_s25 + $0xd30] sm:$0xff] %v560_v38  ;;  %v562_v40 = vld [vmem:[%s2554_s30 + $0xd40] sm:$0xff]  ;;  %v563_v41 = vld [vmem:[%s2554_s30 + $0xd48] sm:$0xff]  ;;  %1585 = vst [vmem:[%s2563_s25 + $0xd38] sm:$0xff] %v561_v39 }
 0x10a   : > { %1586 = vst [vmem:[%s2563_s25 + $0xd40] sm:$0xff] %v562_v40  ;;  %1587 = vst [vmem:[%s2563_s25 + $0xd48] sm:$0xff] %v563_v41  ;;  %v564_v42 = vld [vmem:[%s2554_s30 + $0xd50] sm:$0xff]  ;;  %v565_v43 = vld [vmem:[%s2554_s30 + $0xd58] sm:$0xff] }
 0x10b   : > { %v566_v44 = vld [vmem:[%s2554_s30 + $0xd60] sm:$0xff]  ;;  %1588 = vst [vmem:[%s2563_s25 + $0xd50] sm:$0xff] %v564_v42  ;;  %1589 = vst [vmem:[%s2563_s25 + $0xd58] sm:$0xff] %v565_v43  ;;  %v567_v45 = vld [vmem:[%s2554_s30 + $0xd68] sm:$0xff] }
 0x10c   : > { %1590 = vst [vmem:[%s2563_s25 + $0xd60] sm:$0xff] %v566_v44  ;;  %v568_v46 = vld [vmem:[%s2554_s30 + $0xd70] sm:$0xff]  ;;  %v569_v47 = vld [vmem:[%s2554_s30 + $0xd78] sm:$0xff]  ;;  %1591 = vst [vmem:[%s2563_s25 + $0xd68] sm:$0xff] %v567_v45 }
 0x10d   : > { %1592 = vst [vmem:[%s2563_s25 + $0xd70] sm:$0xff] %v568_v46  ;;  %1593 = vst [vmem:[%s2563_s25 + $0xd78] sm:$0xff] %v569_v47  ;;  %v570_v48 = vld [vmem:[%s2554_s30 + $0xd80] sm:$0xff]  ;;  %v571_v49 = vld [vmem:[%s2554_s30 + $0xd88] sm:$0xff] }
 0x10e   : > { %v572_v50 = vld [vmem:[%s2554_s30 + $0xd90] sm:$0xff]  ;;  %1594 = vst [vmem:[%s2563_s25 + $0xd80] sm:$0xff] %v570_v48  ;;  %1595 = vst [vmem:[%s2563_s25 + $0xd88] sm:$0xff] %v571_v49  ;;  %v573_v51 = vld [vmem:[%s2554_s30 + $0xd98] sm:$0xff] }
 0x10f   : > { %1596 = vst [vmem:[%s2563_s25 + $0xd90] sm:$0xff] %v572_v50  ;;  %v574_v52 = vld [vmem:[%s2554_s30 + $0xda0] sm:$0xff]  ;;  %v575_v53 = vld [vmem:[%s2554_s30 + $0xda8] sm:$0xff]  ;;  %1597 = vst [vmem:[%s2563_s25 + $0xd98] sm:$0xff] %v573_v51 }
 0x110   : > { %1598 = vst [vmem:[%s2563_s25 + $0xda0] sm:$0xff] %v574_v52  ;;  %1599 = vst [vmem:[%s2563_s25 + $0xda8] sm:$0xff] %v575_v53  ;;  %v576_v54 = vld [vmem:[%s2554_s30 + $0xdb0] sm:$0xff]  ;;  %v577_v55 = vld [vmem:[%s2554_s30 + $0xdb8] sm:$0xff] }
 0x111   : > { %v578_v56 = vld [vmem:[%s2554_s30 + $0xdc0] sm:$0xff]  ;;  %1600 = vst [vmem:[%s2563_s25 + $0xdb0] sm:$0xff] %v576_v54  ;;  %1601 = vst [vmem:[%s2563_s25 + $0xdb8] sm:$0xff] %v577_v55  ;;  %v579_v57 = vld [vmem:[%s2554_s30 + $0xdc8] sm:$0xff] }
 0x112   : > { %1602 = vst [vmem:[%s2563_s25 + $0xdc0] sm:$0xff] %v578_v56  ;;  %v580_v58 = vld [vmem:[%s2554_s30 + $0xdd0] sm:$0xff]  ;;  %v581_v59 = vld [vmem:[%s2554_s30 + $0xdd8] sm:$0xff]  ;;  %1603 = vst [vmem:[%s2563_s25 + $0xdc8] sm:$0xff] %v579_v57 }
 0x113   : > { %1604 = vst [vmem:[%s2563_s25 + $0xdd0] sm:$0xff] %v580_v58  ;;  %1605 = vst [vmem:[%s2563_s25 + $0xdd8] sm:$0xff] %v581_v59  ;;  %v582_v60 = vld [vmem:[%s2554_s30 + $0xde0] sm:$0xff]  ;;  %v583_v61 = vld [vmem:[%s2554_s30 + $0xde8] sm:$0xff] }
 0x114   : > { %v584_v62 = vld [vmem:[%s2554_s30 + $0xdf0] sm:$0xff]  ;;  %1606 = vst [vmem:[%s2563_s25 + $0xde0] sm:$0xff] %v582_v60  ;;  %1607 = vst [vmem:[%s2563_s25 + $0xde8] sm:$0xff] %v583_v61  ;;  %v585_v63 = vld [vmem:[%s2554_s30 + $0xdf8] sm:$0xff] }
 0x115   : > { %1608 = vst [vmem:[%s2563_s25 + $0xdf0] sm:$0xff] %v584_v62  ;;  %v586_v0 = vld [vmem:[%s2554_s30 + $0xe00] sm:$0xff]  ;;  %v587_v1 = vld [vmem:[%s2554_s30 + $0xe08] sm:$0xff]  ;;  %1609 = vst [vmem:[%s2563_s25 + $0xdf8] sm:$0xff] %v585_v63 }
 0x116   : > { %1610 = vst [vmem:[%s2563_s25 + $0xe00] sm:$0xff] %v586_v0  ;;  %1611 = vst [vmem:[%s2563_s25 + $0xe08] sm:$0xff] %v587_v1  ;;  %v588_v2 = vld [vmem:[%s2554_s30 + $0xe10] sm:$0xff]  ;;  %v589_v3 = vld [vmem:[%s2554_s30 + $0xe18] sm:$0xff] }
 0x117   : > { %v590_v4 = vld [vmem:[%s2554_s30 + $0xe20] sm:$0xff]  ;;  %1612 = vst [vmem:[%s2563_s25 + $0xe10] sm:$0xff] %v588_v2  ;;  %1613 = vst [vmem:[%s2563_s25 + $0xe18] sm:$0xff] %v589_v3  ;;  %v591_v5 = vld [vmem:[%s2554_s30 + $0xe28] sm:$0xff] }
 0x118   : > { %1614 = vst [vmem:[%s2563_s25 + $0xe20] sm:$0xff] %v590_v4  ;;  %v592_v6 = vld [vmem:[%s2554_s30 + $0xe30] sm:$0xff]  ;;  %v593_v7 = vld [vmem:[%s2554_s30 + $0xe38] sm:$0xff]  ;;  %1615 = vst [vmem:[%s2563_s25 + $0xe28] sm:$0xff] %v591_v5 }
 0x119   : > { %1616 = vst [vmem:[%s2563_s25 + $0xe30] sm:$0xff] %v592_v6  ;;  %1617 = vst [vmem:[%s2563_s25 + $0xe38] sm:$0xff] %v593_v7  ;;  %v594_v8 = vld [vmem:[%s2554_s30 + $0xe40] sm:$0xff]  ;;  %v595_v9 = vld [vmem:[%s2554_s30 + $0xe48] sm:$0xff] }
 0x11a   : > { %v596_v10 = vld [vmem:[%s2554_s30 + $0xe50] sm:$0xff]  ;;  %1618 = vst [vmem:[%s2563_s25 + $0xe40] sm:$0xff] %v594_v8  ;;  %1619 = vst [vmem:[%s2563_s25 + $0xe48] sm:$0xff] %v595_v9  ;;  %v597_v11 = vld [vmem:[%s2554_s30 + $0xe58] sm:$0xff] }
 0x11b   : > { %1620 = vst [vmem:[%s2563_s25 + $0xe50] sm:$0xff] %v596_v10  ;;  %v598_v12 = vld [vmem:[%s2554_s30 + $0xe60] sm:$0xff]  ;;  %v599_v13 = vld [vmem:[%s2554_s30 + $0xe68] sm:$0xff]  ;;  %1621 = vst [vmem:[%s2563_s25 + $0xe58] sm:$0xff] %v597_v11 }
 0x11c   : > { %1622 = vst [vmem:[%s2563_s25 + $0xe60] sm:$0xff] %v598_v12  ;;  %1623 = vst [vmem:[%s2563_s25 + $0xe68] sm:$0xff] %v599_v13  ;;  %v600_v14 = vld [vmem:[%s2554_s30 + $0xe70] sm:$0xff]  ;;  %v601_v15 = vld [vmem:[%s2554_s30 + $0xe78] sm:$0xff] }
 0x11d   : > { %v602_v16 = vld [vmem:[%s2554_s30 + $0xe80] sm:$0xff]  ;;  %1624 = vst [vmem:[%s2563_s25 + $0xe70] sm:$0xff] %v600_v14  ;;  %1625 = vst [vmem:[%s2563_s25 + $0xe78] sm:$0xff] %v601_v15  ;;  %v603_v17 = vld [vmem:[%s2554_s30 + $0xe88] sm:$0xff] }
 0x11e   : > { %1626 = vst [vmem:[%s2563_s25 + $0xe80] sm:$0xff] %v602_v16  ;;  %v604_v18 = vld [vmem:[%s2554_s30 + $0xe90] sm:$0xff]  ;;  %v605_v19 = vld [vmem:[%s2554_s30 + $0xe98] sm:$0xff]  ;;  %1627 = vst [vmem:[%s2563_s25 + $0xe88] sm:$0xff] %v603_v17 }
 0x11f   : > { %1628 = vst [vmem:[%s2563_s25 + $0xe90] sm:$0xff] %v604_v18  ;;  %1629 = vst [vmem:[%s2563_s25 + $0xe98] sm:$0xff] %v605_v19  ;;  %v606_v20 = vld [vmem:[%s2554_s30 + $0xea0] sm:$0xff]  ;;  %v607_v21 = vld [vmem:[%s2554_s30 + $0xea8] sm:$0xff] }
 0x120   : > { %v608_v22 = vld [vmem:[%s2554_s30 + $0xeb0] sm:$0xff]  ;;  %1630 = vst [vmem:[%s2563_s25 + $0xea0] sm:$0xff] %v606_v20  ;;  %1631 = vst [vmem:[%s2563_s25 + $0xea8] sm:$0xff] %v607_v21  ;;  %v609_v23 = vld [vmem:[%s2554_s30 + $0xeb8] sm:$0xff] }
 0x121   : > { %1632 = vst [vmem:[%s2563_s25 + $0xeb0] sm:$0xff] %v608_v22  ;;  %v610_v24 = vld [vmem:[%s2554_s30 + $0xec0] sm:$0xff]  ;;  %v611_v25 = vld [vmem:[%s2554_s30 + $0xec8] sm:$0xff]  ;;  %1633 = vst [vmem:[%s2563_s25 + $0xeb8] sm:$0xff] %v609_v23 }
 0x122   : > { %1634 = vst [vmem:[%s2563_s25 + $0xec0] sm:$0xff] %v610_v24  ;;  %1635 = vst [vmem:[%s2563_s25 + $0xec8] sm:$0xff] %v611_v25  ;;  %v612_v26 = vld [vmem:[%s2554_s30 + $0xed0] sm:$0xff]  ;;  %v613_v27 = vld [vmem:[%s2554_s30 + $0xed8] sm:$0xff] }
 0x123   : > { %v614_v28 = vld [vmem:[%s2554_s30 + $0xee0] sm:$0xff]  ;;  %1636 = vst [vmem:[%s2563_s25 + $0xed0] sm:$0xff] %v612_v26  ;;  %1637 = vst [vmem:[%s2563_s25 + $0xed8] sm:$0xff] %v613_v27  ;;  %v615_v29 = vld [vmem:[%s2554_s30 + $0xee8] sm:$0xff] }
 0x124   : > { %1638 = vst [vmem:[%s2563_s25 + $0xee0] sm:$0xff] %v614_v28  ;;  %v616_v30 = vld [vmem:[%s2554_s30 + $0xef0] sm:$0xff]  ;;  %v617_v31 = vld [vmem:[%s2554_s30 + $0xef8] sm:$0xff]  ;;  %1639 = vst [vmem:[%s2563_s25 + $0xee8] sm:$0xff] %v615_v29 }
 0x125   : > { %1640 = vst [vmem:[%s2563_s25 + $0xef0] sm:$0xff] %v616_v30  ;;  %1641 = vst [vmem:[%s2563_s25 + $0xef8] sm:$0xff] %v617_v31  ;;  %v618_v32 = vld [vmem:[%s2554_s30 + $0xf00] sm:$0xff]  ;;  %v619_v33 = vld [vmem:[%s2554_s30 + $0xf08] sm:$0xff] }
 0x126   : > { %v620_v34 = vld [vmem:[%s2554_s30 + $0xf10] sm:$0xff]  ;;  %1642 = vst [vmem:[%s2563_s25 + $0xf00] sm:$0xff] %v618_v32  ;;  %1643 = vst [vmem:[%s2563_s25 + $0xf08] sm:$0xff] %v619_v33  ;;  %v621_v35 = vld [vmem:[%s2554_s30 + $0xf18] sm:$0xff] }
 0x127   : > { %1644 = vst [vmem:[%s2563_s25 + $0xf10] sm:$0xff] %v620_v34  ;;  %v622_v36 = vld [vmem:[%s2554_s30 + $0xf20] sm:$0xff]  ;;  %v623_v37 = vld [vmem:[%s2554_s30 + $0xf28] sm:$0xff]  ;;  %1645 = vst [vmem:[%s2563_s25 + $0xf18] sm:$0xff] %v621_v35 }
 0x128   : > { %1646 = vst [vmem:[%s2563_s25 + $0xf20] sm:$0xff] %v622_v36  ;;  %1647 = vst [vmem:[%s2563_s25 + $0xf28] sm:$0xff] %v623_v37  ;;  %v624_v38 = vld [vmem:[%s2554_s30 + $0xf30] sm:$0xff]  ;;  %v625_v39 = vld [vmem:[%s2554_s30 + $0xf38] sm:$0xff] }
 0x129   : > { %v626_v40 = vld [vmem:[%s2554_s30 + $0xf40] sm:$0xff]  ;;  %1648 = vst [vmem:[%s2563_s25 + $0xf30] sm:$0xff] %v624_v38  ;;  %1649 = vst [vmem:[%s2563_s25 + $0xf38] sm:$0xff] %v625_v39  ;;  %v627_v41 = vld [vmem:[%s2554_s30 + $0xf48] sm:$0xff] }
 0x12a   : > { %1650 = vst [vmem:[%s2563_s25 + $0xf40] sm:$0xff] %v626_v40  ;;  %v628_v42 = vld [vmem:[%s2554_s30 + $0xf50] sm:$0xff]  ;;  %v629_v43 = vld [vmem:[%s2554_s30 + $0xf58] sm:$0xff]  ;;  %1651 = vst [vmem:[%s2563_s25 + $0xf48] sm:$0xff] %v627_v41 }
 0x12b   : > { %1652 = vst [vmem:[%s2563_s25 + $0xf50] sm:$0xff] %v628_v42  ;;  %1653 = vst [vmem:[%s2563_s25 + $0xf58] sm:$0xff] %v629_v43  ;;  %v630_v44 = vld [vmem:[%s2554_s30 + $0xf60] sm:$0xff]  ;;  %v631_v45 = vld [vmem:[%s2554_s30 + $0xf68] sm:$0xff] }
 0x12c   : > { %v632_v46 = vld [vmem:[%s2554_s30 + $0xf70] sm:$0xff]  ;;  %1654 = vst [vmem:[%s2563_s25 + $0xf60] sm:$0xff] %v630_v44  ;;  %1655 = vst [vmem:[%s2563_s25 + $0xf68] sm:$0xff] %v631_v45  ;;  %v633_v47 = vld [vmem:[%s2554_s30 + $0xf78] sm:$0xff] }
 0x12d   : > { %1656 = vst [vmem:[%s2563_s25 + $0xf70] sm:$0xff] %v632_v46  ;;  %v634_v48 = vld [vmem:[%s2554_s30 + $0xf80] sm:$0xff]  ;;  %v635_v49 = vld [vmem:[%s2554_s30 + $0xf88] sm:$0xff]  ;;  %1657 = vst [vmem:[%s2563_s25 + $0xf78] sm:$0xff] %v633_v47 }
 0x12e   : > { %1658 = vst [vmem:[%s2563_s25 + $0xf80] sm:$0xff] %v634_v48  ;;  %1659 = vst [vmem:[%s2563_s25 + $0xf88] sm:$0xff] %v635_v49  ;;  %v636_v50 = vld [vmem:[%s2554_s30 + $0xf90] sm:$0xff]  ;;  %v637_v51 = vld [vmem:[%s2554_s30 + $0xf98] sm:$0xff] }
 0x12f   : > { %v638_v52 = vld [vmem:[%s2554_s30 + $0xfa0] sm:$0xff]  ;;  %1660 = vst [vmem:[%s2563_s25 + $0xf90] sm:$0xff] %v636_v50  ;;  %1661 = vst [vmem:[%s2563_s25 + $0xf98] sm:$0xff] %v637_v51  ;;  %v639_v53 = vld [vmem:[%s2554_s30 + $0xfa8] sm:$0xff] }
 0x130   : > { %1662 = vst [vmem:[%s2563_s25 + $0xfa0] sm:$0xff] %v638_v52  ;;  %v640_v54 = vld [vmem:[%s2554_s30 + $0xfb0] sm:$0xff]  ;;  %v641_v55 = vld [vmem:[%s2554_s30 + $0xfb8] sm:$0xff]  ;;  %1663 = vst [vmem:[%s2563_s25 + $0xfa8] sm:$0xff] %v639_v53 }
 0x131   : > { %1664 = vst [vmem:[%s2563_s25 + $0xfb0] sm:$0xff] %v640_v54  ;;  %1665 = vst [vmem:[%s2563_s25 + $0xfb8] sm:$0xff] %v641_v55  ;;  %v642_v56 = vld [vmem:[%s2554_s30 + $0xfc0] sm:$0xff]  ;;  %v643_v57 = vld [vmem:[%s2554_s30 + $0xfc8] sm:$0xff] }
 0x132   : > { %v644_v58 = vld [vmem:[%s2554_s30 + $0xfd0] sm:$0xff]  ;;  %1666 = vst [vmem:[%s2563_s25 + $0xfc0] sm:$0xff] %v642_v56  ;;  %1667 = vst [vmem:[%s2563_s25 + $0xfc8] sm:$0xff] %v643_v57  ;;  %v645_v59 = vld [vmem:[%s2554_s30 + $0xfd8] sm:$0xff] }
 0x133   : > { %1668 = vst [vmem:[%s2563_s25 + $0xfd0] sm:$0xff] %v644_v58  ;;  %v646_v60 = vld [vmem:[%s2554_s30 + $0xfe0] sm:$0xff]  ;;  %v647_v61 = vld [vmem:[%s2554_s30 + $0xfe8] sm:$0xff]  ;;  %1669 = vst [vmem:[%s2563_s25 + $0xfd8] sm:$0xff] %v645_v59 }
 0x134   : > { %1670 = vst [vmem:[%s2563_s25 + $0xfe0] sm:$0xff] %v646_v60  ;;  %1671 = vst [vmem:[%s2563_s25 + $0xfe8] sm:$0xff] %v647_v61  ;;  %v648_v62 = vld [vmem:[%s2554_s30 + $0xff0] sm:$0xff]  ;;  %v649_v63 = vld [vmem:[%s2554_s30 + $0xff8] sm:$0xff] }
 0x135   : > { %v650_v0 = vld [vmem:[%s2554_s30 + $0x1000] sm:$0xff]  ;;  %1672 = vst [vmem:[%s2563_s25 + $0xff0] sm:$0xff] %v648_v62  ;;  %1673 = vst [vmem:[%s2563_s25 + $0xff8] sm:$0xff] %v649_v63  ;;  %v651_v1 = vld [vmem:[%s2554_s30 + $0x1008] sm:$0xff] }
 0x136   : > { %1674 = vst [vmem:[%s2563_s25 + $0x1000] sm:$0xff] %v650_v0  ;;  %v652_v2 = vld [vmem:[%s2554_s30 + $0x1010] sm:$0xff]  ;;  %v653_v3 = vld [vmem:[%s2554_s30 + $0x1018] sm:$0xff]  ;;  %1675 = vst [vmem:[%s2563_s25 + $0x1008] sm:$0xff] %v651_v1 }
 0x137   : > { %1676 = vst [vmem:[%s2563_s25 + $0x1010] sm:$0xff] %v652_v2  ;;  %1677 = vst [vmem:[%s2563_s25 + $0x1018] sm:$0xff] %v653_v3  ;;  %v654_v4 = vld [vmem:[%s2554_s30 + $0x1020] sm:$0xff]  ;;  %v655_v5 = vld [vmem:[%s2554_s30 + $0x1028] sm:$0xff] }
 0x138   : > { %v656_v6 = vld [vmem:[%s2554_s30 + $0x1030] sm:$0xff]  ;;  %1678 = vst [vmem:[%s2563_s25 + $0x1020] sm:$0xff] %v654_v4  ;;  %1679 = vst [vmem:[%s2563_s25 + $0x1028] sm:$0xff] %v655_v5  ;;  %v657_v7 = vld [vmem:[%s2554_s30 + $0x1038] sm:$0xff] }
 0x139   : > { %1680 = vst [vmem:[%s2563_s25 + $0x1030] sm:$0xff] %v656_v6  ;;  %v658_v8 = vld [vmem:[%s2554_s30 + $0x1040] sm:$0xff]  ;;  %v659_v9 = vld [vmem:[%s2554_s30 + $0x1048] sm:$0xff]  ;;  %1681 = vst [vmem:[%s2563_s25 + $0x1038] sm:$0xff] %v657_v7 }
 0x13a   : > { %1682 = vst [vmem:[%s2563_s25 + $0x1040] sm:$0xff] %v658_v8  ;;  %1683 = vst [vmem:[%s2563_s25 + $0x1048] sm:$0xff] %v659_v9  ;;  %v660_v10 = vld [vmem:[%s2554_s30 + $0x1050] sm:$0xff]  ;;  %v661_v11 = vld [vmem:[%s2554_s30 + $0x1058] sm:$0xff] }
 0x13b   : > { %v662_v12 = vld [vmem:[%s2554_s30 + $0x1060] sm:$0xff]  ;;  %1684 = vst [vmem:[%s2563_s25 + $0x1050] sm:$0xff] %v660_v10  ;;  %1685 = vst [vmem:[%s2563_s25 + $0x1058] sm:$0xff] %v661_v11  ;;  %v663_v13 = vld [vmem:[%s2554_s30 + $0x1068] sm:$0xff] }
 0x13c   : > { %1686 = vst [vmem:[%s2563_s25 + $0x1060] sm:$0xff] %v662_v12  ;;  %v664_v14 = vld [vmem:[%s2554_s30 + $0x1070] sm:$0xff]  ;;  %v665_v15 = vld [vmem:[%s2554_s30 + $0x1078] sm:$0xff]  ;;  %1687 = vst [vmem:[%s2563_s25 + $0x1068] sm:$0xff] %v663_v13 }
 0x13d   : > { %1688 = vst [vmem:[%s2563_s25 + $0x1070] sm:$0xff] %v664_v14  ;;  %1689 = vst [vmem:[%s2563_s25 + $0x1078] sm:$0xff] %v665_v15  ;;  %v666_v16 = vld [vmem:[%s2554_s30 + $0x1080] sm:$0xff]  ;;  %v667_v17 = vld [vmem:[%s2554_s30 + $0x1088] sm:$0xff] }
 0x13e   : > { %v668_v18 = vld [vmem:[%s2554_s30 + $0x1090] sm:$0xff]  ;;  %1690 = vst [vmem:[%s2563_s25 + $0x1080] sm:$0xff] %v666_v16  ;;  %1691 = vst [vmem:[%s2563_s25 + $0x1088] sm:$0xff] %v667_v17  ;;  %v669_v19 = vld [vmem:[%s2554_s30 + $0x1098] sm:$0xff] }
 0x13f   : > { %1692 = vst [vmem:[%s2563_s25 + $0x1090] sm:$0xff] %v668_v18  ;;  %v670_v20 = vld [vmem:[%s2554_s30 + $0x10a0] sm:$0xff]  ;;  %v671_v21 = vld [vmem:[%s2554_s30 + $0x10a8] sm:$0xff]  ;;  %1693 = vst [vmem:[%s2563_s25 + $0x1098] sm:$0xff] %v669_v19 }
 0x140   : > { %1694 = vst [vmem:[%s2563_s25 + $0x10a0] sm:$0xff] %v670_v20  ;;  %1695 = vst [vmem:[%s2563_s25 + $0x10a8] sm:$0xff] %v671_v21  ;;  %v672_v22 = vld [vmem:[%s2554_s30 + $0x10b0] sm:$0xff]  ;;  %v673_v23 = vld [vmem:[%s2554_s30 + $0x10b8] sm:$0xff] }
 0x141   : > { %v674_v24 = vld [vmem:[%s2554_s30 + $0x10c0] sm:$0xff]  ;;  %1696 = vst [vmem:[%s2563_s25 + $0x10b0] sm:$0xff] %v672_v22  ;;  %1697 = vst [vmem:[%s2563_s25 + $0x10b8] sm:$0xff] %v673_v23  ;;  %v675_v25 = vld [vmem:[%s2554_s30 + $0x10c8] sm:$0xff] }
 0x142   : > { %1698 = vst [vmem:[%s2563_s25 + $0x10c0] sm:$0xff] %v674_v24  ;;  %v676_v26 = vld [vmem:[%s2554_s30 + $0x10d0] sm:$0xff]  ;;  %v677_v27 = vld [vmem:[%s2554_s30 + $0x10d8] sm:$0xff]  ;;  %1699 = vst [vmem:[%s2563_s25 + $0x10c8] sm:$0xff] %v675_v25 }
 0x143   : > { %1700 = vst [vmem:[%s2563_s25 + $0x10d0] sm:$0xff] %v676_v26  ;;  %1701 = vst [vmem:[%s2563_s25 + $0x10d8] sm:$0xff] %v677_v27  ;;  %v678_v28 = vld [vmem:[%s2554_s30 + $0x10e0] sm:$0xff]  ;;  %v679_v29 = vld [vmem:[%s2554_s30 + $0x10e8] sm:$0xff] }
 0x144   : > { %v680_v30 = vld [vmem:[%s2554_s30 + $0x10f0] sm:$0xff]  ;;  %1702 = vst [vmem:[%s2563_s25 + $0x10e0] sm:$0xff] %v678_v28  ;;  %1703 = vst [vmem:[%s2563_s25 + $0x10e8] sm:$0xff] %v679_v29  ;;  %v681_v31 = vld [vmem:[%s2554_s30 + $0x10f8] sm:$0xff] }
 0x145   : > { %1704 = vst [vmem:[%s2563_s25 + $0x10f0] sm:$0xff] %v680_v30  ;;  %v682_v32 = vld [vmem:[%s2554_s30 + $0x1100] sm:$0xff]  ;;  %v683_v33 = vld [vmem:[%s2554_s30 + $0x1108] sm:$0xff]  ;;  %1705 = vst [vmem:[%s2563_s25 + $0x10f8] sm:$0xff] %v681_v31 }
 0x146   : > { %1706 = vst [vmem:[%s2563_s25 + $0x1100] sm:$0xff] %v682_v32  ;;  %1707 = vst [vmem:[%s2563_s25 + $0x1108] sm:$0xff] %v683_v33  ;;  %v684_v34 = vld [vmem:[%s2554_s30 + $0x1110] sm:$0xff]  ;;  %v685_v35 = vld [vmem:[%s2554_s30 + $0x1118] sm:$0xff] }
 0x147   : > { %v686_v36 = vld [vmem:[%s2554_s30 + $0x1120] sm:$0xff]  ;;  %1708 = vst [vmem:[%s2563_s25 + $0x1110] sm:$0xff] %v684_v34  ;;  %1709 = vst [vmem:[%s2563_s25 + $0x1118] sm:$0xff] %v685_v35  ;;  %v687_v37 = vld [vmem:[%s2554_s30 + $0x1128] sm:$0xff] }
 0x148   : > { %1710 = vst [vmem:[%s2563_s25 + $0x1120] sm:$0xff] %v686_v36  ;;  %v688_v38 = vld [vmem:[%s2554_s30 + $0x1130] sm:$0xff]  ;;  %v689_v39 = vld [vmem:[%s2554_s30 + $0x1138] sm:$0xff]  ;;  %1711 = vst [vmem:[%s2563_s25 + $0x1128] sm:$0xff] %v687_v37 }
 0x149   : > { %1712 = vst [vmem:[%s2563_s25 + $0x1130] sm:$0xff] %v688_v38  ;;  %1713 = vst [vmem:[%s2563_s25 + $0x1138] sm:$0xff] %v689_v39  ;;  %v690_v40 = vld [vmem:[%s2554_s30 + $0x1140] sm:$0xff]  ;;  %v691_v41 = vld [vmem:[%s2554_s30 + $0x1148] sm:$0xff] }
 0x14a   : > { %v692_v42 = vld [vmem:[%s2554_s30 + $0x1150] sm:$0xff]  ;;  %1714 = vst [vmem:[%s2563_s25 + $0x1140] sm:$0xff] %v690_v40  ;;  %1715 = vst [vmem:[%s2563_s25 + $0x1148] sm:$0xff] %v691_v41  ;;  %v693_v43 = vld [vmem:[%s2554_s30 + $0x1158] sm:$0xff] }
 0x14b   : > { %1716 = vst [vmem:[%s2563_s25 + $0x1150] sm:$0xff] %v692_v42  ;;  %v694_v44 = vld [vmem:[%s2554_s30 + $0x1160] sm:$0xff]  ;;  %v695_v45 = vld [vmem:[%s2554_s30 + $0x1168] sm:$0xff]  ;;  %1717 = vst [vmem:[%s2563_s25 + $0x1158] sm:$0xff] %v693_v43 }
 0x14c   : > { %1718 = vst [vmem:[%s2563_s25 + $0x1160] sm:$0xff] %v694_v44  ;;  %1719 = vst [vmem:[%s2563_s25 + $0x1168] sm:$0xff] %v695_v45  ;;  %v696_v46 = vld [vmem:[%s2554_s30 + $0x1170] sm:$0xff]  ;;  %v697_v47 = vld [vmem:[%s2554_s30 + $0x1178] sm:$0xff] }
 0x14d   : > { %v698_v48 = vld [vmem:[%s2554_s30 + $0x1180] sm:$0xff]  ;;  %1720 = vst [vmem:[%s2563_s25 + $0x1170] sm:$0xff] %v696_v46  ;;  %1721 = vst [vmem:[%s2563_s25 + $0x1178] sm:$0xff] %v697_v47  ;;  %v699_v49 = vld [vmem:[%s2554_s30 + $0x1188] sm:$0xff] }
 0x14e   : > { %1722 = vst [vmem:[%s2563_s25 + $0x1180] sm:$0xff] %v698_v48  ;;  %v700_v50 = vld [vmem:[%s2554_s30 + $0x1190] sm:$0xff]  ;;  %v701_v51 = vld [vmem:[%s2554_s30 + $0x1198] sm:$0xff]  ;;  %1723 = vst [vmem:[%s2563_s25 + $0x1188] sm:$0xff] %v699_v49 }
 0x14f   : > { %1724 = vst [vmem:[%s2563_s25 + $0x1190] sm:$0xff] %v700_v50  ;;  %1725 = vst [vmem:[%s2563_s25 + $0x1198] sm:$0xff] %v701_v51  ;;  %v702_v52 = vld [vmem:[%s2554_s30 + $0x11a0] sm:$0xff]  ;;  %v703_v53 = vld [vmem:[%s2554_s30 + $0x11a8] sm:$0xff] }
 0x150   : > { %v704_v54 = vld [vmem:[%s2554_s30 + $0x11b0] sm:$0xff]  ;;  %1726 = vst [vmem:[%s2563_s25 + $0x11a0] sm:$0xff] %v702_v52  ;;  %1727 = vst [vmem:[%s2563_s25 + $0x11a8] sm:$0xff] %v703_v53  ;;  %v705_v55 = vld [vmem:[%s2554_s30 + $0x11b8] sm:$0xff] }
 0x151   : > { %1728 = vst [vmem:[%s2563_s25 + $0x11b0] sm:$0xff] %v704_v54  ;;  %v706_v56 = vld [vmem:[%s2554_s30 + $0x11c0] sm:$0xff]  ;;  %v707_v57 = vld [vmem:[%s2554_s30 + $0x11c8] sm:$0xff]  ;;  %1729 = vst [vmem:[%s2563_s25 + $0x11b8] sm:$0xff] %v705_v55 }
 0x152   : > { %1730 = vst [vmem:[%s2563_s25 + $0x11c0] sm:$0xff] %v706_v56  ;;  %1731 = vst [vmem:[%s2563_s25 + $0x11c8] sm:$0xff] %v707_v57  ;;  %v708_v58 = vld [vmem:[%s2554_s30 + $0x11d0] sm:$0xff]  ;;  %v709_v59 = vld [vmem:[%s2554_s30 + $0x11d8] sm:$0xff] }
 0x153   : > { %v710_v60 = vld [vmem:[%s2554_s30 + $0x11e0] sm:$0xff]  ;;  %1732 = vst [vmem:[%s2563_s25 + $0x11d0] sm:$0xff] %v708_v58  ;;  %1733 = vst [vmem:[%s2563_s25 + $0x11d8] sm:$0xff] %v709_v59  ;;  %v711_v61 = vld [vmem:[%s2554_s30 + $0x11e8] sm:$0xff] }
 0x154   : > { %1734 = vst [vmem:[%s2563_s25 + $0x11e0] sm:$0xff] %v710_v60  ;;  %v712_v62 = vld [vmem:[%s2554_s30 + $0x11f0] sm:$0xff]  ;;  %v713_v63 = vld [vmem:[%s2554_s30 + $0x11f8] sm:$0xff]  ;;  %1735 = vst [vmem:[%s2563_s25 + $0x11e8] sm:$0xff] %v711_v61 }
 0x155   : > { %1736 = vst [vmem:[%s2563_s25 + $0x11f0] sm:$0xff] %v712_v62  ;;  %1737 = vst [vmem:[%s2563_s25 + $0x11f8] sm:$0xff] %v713_v63  ;;  %v714_v0 = vld [vmem:[%s2554_s30 + $0x1200] sm:$0xff]  ;;  %v715_v1 = vld [vmem:[%s2554_s30 + $0x1208] sm:$0xff] }
 0x156   : > { %v716_v2 = vld [vmem:[%s2554_s30 + $0x1210] sm:$0xff]  ;;  %1738 = vst [vmem:[%s2563_s25 + $0x1200] sm:$0xff] %v714_v0  ;;  %1739 = vst [vmem:[%s2563_s25 + $0x1208] sm:$0xff] %v715_v1  ;;  %v717_v3 = vld [vmem:[%s2554_s30 + $0x1218] sm:$0xff] }
 0x157   : > { %1740 = vst [vmem:[%s2563_s25 + $0x1210] sm:$0xff] %v716_v2  ;;  %v718_v4 = vld [vmem:[%s2554_s30 + $0x1220] sm:$0xff]  ;;  %v719_v5 = vld [vmem:[%s2554_s30 + $0x1228] sm:$0xff]  ;;  %1741 = vst [vmem:[%s2563_s25 + $0x1218] sm:$0xff] %v717_v3 }
 0x158   : > { %1742 = vst [vmem:[%s2563_s25 + $0x1220] sm:$0xff] %v718_v4  ;;  %1743 = vst [vmem:[%s2563_s25 + $0x1228] sm:$0xff] %v719_v5  ;;  %v720_v6 = vld [vmem:[%s2554_s30 + $0x1230] sm:$0xff]  ;;  %v721_v7 = vld [vmem:[%s2554_s30 + $0x1238] sm:$0xff] }
 0x159   : > { %v722_v8 = vld [vmem:[%s2554_s30 + $0x1240] sm:$0xff]  ;;  %1744 = vst [vmem:[%s2563_s25 + $0x1230] sm:$0xff] %v720_v6  ;;  %1745 = vst [vmem:[%s2563_s25 + $0x1238] sm:$0xff] %v721_v7  ;;  %v723_v9 = vld [vmem:[%s2554_s30 + $0x1248] sm:$0xff] }
 0x15a   : > { %1746 = vst [vmem:[%s2563_s25 + $0x1240] sm:$0xff] %v722_v8  ;;  %v724_v10 = vld [vmem:[%s2554_s30 + $0x1250] sm:$0xff]  ;;  %v725_v11 = vld [vmem:[%s2554_s30 + $0x1258] sm:$0xff]  ;;  %1747 = vst [vmem:[%s2563_s25 + $0x1248] sm:$0xff] %v723_v9 }
 0x15b   : > { %1748 = vst [vmem:[%s2563_s25 + $0x1250] sm:$0xff] %v724_v10  ;;  %1749 = vst [vmem:[%s2563_s25 + $0x1258] sm:$0xff] %v725_v11  ;;  %v726_v12 = vld [vmem:[%s2554_s30 + $0x1260] sm:$0xff]  ;;  %v727_v13 = vld [vmem:[%s2554_s30 + $0x1268] sm:$0xff] }
 0x15c   : > { %v728_v14 = vld [vmem:[%s2554_s30 + $0x1270] sm:$0xff]  ;;  %1750 = vst [vmem:[%s2563_s25 + $0x1260] sm:$0xff] %v726_v12  ;;  %1751 = vst [vmem:[%s2563_s25 + $0x1268] sm:$0xff] %v727_v13  ;;  %v729_v15 = vld [vmem:[%s2554_s30 + $0x1278] sm:$0xff] }
 0x15d   : > { %1752 = vst [vmem:[%s2563_s25 + $0x1270] sm:$0xff] %v728_v14  ;;  %v730_v16 = vld [vmem:[%s2554_s30 + $0x1280] sm:$0xff]  ;;  %v731_v17 = vld [vmem:[%s2554_s30 + $0x1288] sm:$0xff]  ;;  %1753 = vst [vmem:[%s2563_s25 + $0x1278] sm:$0xff] %v729_v15 }
 0x15e   : > { %1754 = vst [vmem:[%s2563_s25 + $0x1280] sm:$0xff] %v730_v16  ;;  %1755 = vst [vmem:[%s2563_s25 + $0x1288] sm:$0xff] %v731_v17  ;;  %v732_v18 = vld [vmem:[%s2554_s30 + $0x1290] sm:$0xff]  ;;  %v733_v19 = vld [vmem:[%s2554_s30 + $0x1298] sm:$0xff] }
 0x15f   : > { %v734_v20 = vld [vmem:[%s2554_s30 + $0x12a0] sm:$0xff]  ;;  %1756 = vst [vmem:[%s2563_s25 + $0x1290] sm:$0xff] %v732_v18  ;;  %1757 = vst [vmem:[%s2563_s25 + $0x1298] sm:$0xff] %v733_v19  ;;  %v735_v21 = vld [vmem:[%s2554_s30 + $0x12a8] sm:$0xff] }
 0x160   : > { %1758 = vst [vmem:[%s2563_s25 + $0x12a0] sm:$0xff] %v734_v20  ;;  %v736_v22 = vld [vmem:[%s2554_s30 + $0x12b0] sm:$0xff]  ;;  %v737_v23 = vld [vmem:[%s2554_s30 + $0x12b8] sm:$0xff]  ;;  %1759 = vst [vmem:[%s2563_s25 + $0x12a8] sm:$0xff] %v735_v21 }
 0x161   : > { %1760 = vst [vmem:[%s2563_s25 + $0x12b0] sm:$0xff] %v736_v22  ;;  %1761 = vst [vmem:[%s2563_s25 + $0x12b8] sm:$0xff] %v737_v23  ;;  %v738_v24 = vld [vmem:[%s2554_s30 + $0x12c0] sm:$0xff]  ;;  %v739_v25 = vld [vmem:[%s2554_s30 + $0x12c8] sm:$0xff] }
 0x162   : > { %v740_v26 = vld [vmem:[%s2554_s30 + $0x12d0] sm:$0xff]  ;;  %1762 = vst [vmem:[%s2563_s25 + $0x12c0] sm:$0xff] %v738_v24  ;;  %1763 = vst [vmem:[%s2563_s25 + $0x12c8] sm:$0xff] %v739_v25  ;;  %v741_v27 = vld [vmem:[%s2554_s30 + $0x12d8] sm:$0xff] }
 0x163   : > { %1764 = vst [vmem:[%s2563_s25 + $0x12d0] sm:$0xff] %v740_v26  ;;  %v742_v28 = vld [vmem:[%s2554_s30 + $0x12e0] sm:$0xff]  ;;  %v743_v29 = vld [vmem:[%s2554_s30 + $0x12e8] sm:$0xff]  ;;  %1765 = vst [vmem:[%s2563_s25 + $0x12d8] sm:$0xff] %v741_v27 }
 0x164   : > { %1766 = vst [vmem:[%s2563_s25 + $0x12e0] sm:$0xff] %v742_v28  ;;  %1767 = vst [vmem:[%s2563_s25 + $0x12e8] sm:$0xff] %v743_v29  ;;  %v744_v30 = vld [vmem:[%s2554_s30 + $0x12f0] sm:$0xff]  ;;  %v745_v31 = vld [vmem:[%s2554_s30 + $0x12f8] sm:$0xff] }
 0x165   : > { %v746_v32 = vld [vmem:[%s2554_s30 + $0x1300] sm:$0xff]  ;;  %1768 = vst [vmem:[%s2563_s25 + $0x12f0] sm:$0xff] %v744_v30  ;;  %1769 = vst [vmem:[%s2563_s25 + $0x12f8] sm:$0xff] %v745_v31  ;;  %v747_v33 = vld [vmem:[%s2554_s30 + $0x1308] sm:$0xff] }
 0x166   : > { %1770 = vst [vmem:[%s2563_s25 + $0x1300] sm:$0xff] %v746_v32  ;;  %v748_v34 = vld [vmem:[%s2554_s30 + $0x1310] sm:$0xff]  ;;  %v749_v35 = vld [vmem:[%s2554_s30 + $0x1318] sm:$0xff]  ;;  %1771 = vst [vmem:[%s2563_s25 + $0x1308] sm:$0xff] %v747_v33 }
 0x167   : > { %1772 = vst [vmem:[%s2563_s25 + $0x1310] sm:$0xff] %v748_v34  ;;  %1773 = vst [vmem:[%s2563_s25 + $0x1318] sm:$0xff] %v749_v35  ;;  %v750_v36 = vld [vmem:[%s2554_s30 + $0x1320] sm:$0xff]  ;;  %v751_v37 = vld [vmem:[%s2554_s30 + $0x1328] sm:$0xff] }
 0x168   : > { %v752_v38 = vld [vmem:[%s2554_s30 + $0x1330] sm:$0xff]  ;;  %1774 = vst [vmem:[%s2563_s25 + $0x1320] sm:$0xff] %v750_v36  ;;  %1775 = vst [vmem:[%s2563_s25 + $0x1328] sm:$0xff] %v751_v37  ;;  %v753_v39 = vld [vmem:[%s2554_s30 + $0x1338] sm:$0xff] }
 0x169   : > { %1776 = vst [vmem:[%s2563_s25 + $0x1330] sm:$0xff] %v752_v38  ;;  %v754_v40 = vld [vmem:[%s2554_s30 + $0x1340] sm:$0xff]  ;;  %v755_v41 = vld [vmem:[%s2554_s30 + $0x1348] sm:$0xff]  ;;  %1777 = vst [vmem:[%s2563_s25 + $0x1338] sm:$0xff] %v753_v39 }
 0x16a   : > { %1778 = vst [vmem:[%s2563_s25 + $0x1340] sm:$0xff] %v754_v40  ;;  %1779 = vst [vmem:[%s2563_s25 + $0x1348] sm:$0xff] %v755_v41  ;;  %v756_v42 = vld [vmem:[%s2554_s30 + $0x1350] sm:$0xff]  ;;  %v757_v43 = vld [vmem:[%s2554_s30 + $0x1358] sm:$0xff] }
 0x16b   : > { %v758_v44 = vld [vmem:[%s2554_s30 + $0x1360] sm:$0xff]  ;;  %1780 = vst [vmem:[%s2563_s25 + $0x1350] sm:$0xff] %v756_v42  ;;  %1781 = vst [vmem:[%s2563_s25 + $0x1358] sm:$0xff] %v757_v43  ;;  %v759_v45 = vld [vmem:[%s2554_s30 + $0x1368] sm:$0xff] }
 0x16c   : > { %1782 = vst [vmem:[%s2563_s25 + $0x1360] sm:$0xff] %v758_v44  ;;  %v760_v46 = vld [vmem:[%s2554_s30 + $0x1370] sm:$0xff]  ;;  %v761_v47 = vld [vmem:[%s2554_s30 + $0x1378] sm:$0xff]  ;;  %1783 = vst [vmem:[%s2563_s25 + $0x1368] sm:$0xff] %v759_v45 }
 0x16d   : > { %1784 = vst [vmem:[%s2563_s25 + $0x1370] sm:$0xff] %v760_v46  ;;  %1785 = vst [vmem:[%s2563_s25 + $0x1378] sm:$0xff] %v761_v47  ;;  %v762_v48 = vld [vmem:[%s2554_s30 + $0x1380] sm:$0xff]  ;;  %v763_v49 = vld [vmem:[%s2554_s30 + $0x1388] sm:$0xff] }
 0x16e   : > { %v764_v50 = vld [vmem:[%s2554_s30 + $0x1390] sm:$0xff]  ;;  %1786 = vst [vmem:[%s2563_s25 + $0x1380] sm:$0xff] %v762_v48  ;;  %1787 = vst [vmem:[%s2563_s25 + $0x1388] sm:$0xff] %v763_v49  ;;  %v765_v51 = vld [vmem:[%s2554_s30 + $0x1398] sm:$0xff] }
 0x16f   : > { %1788 = vst [vmem:[%s2563_s25 + $0x1390] sm:$0xff] %v764_v50  ;;  %v766_v52 = vld [vmem:[%s2554_s30 + $0x13a0] sm:$0xff]  ;;  %v767_v53 = vld [vmem:[%s2554_s30 + $0x13a8] sm:$0xff]  ;;  %1789 = vst [vmem:[%s2563_s25 + $0x1398] sm:$0xff] %v765_v51 }
 0x170   : > { %1790 = vst [vmem:[%s2563_s25 + $0x13a0] sm:$0xff] %v766_v52  ;;  %1791 = vst [vmem:[%s2563_s25 + $0x13a8] sm:$0xff] %v767_v53  ;;  %v768_v54 = vld [vmem:[%s2554_s30 + $0x13b0] sm:$0xff]  ;;  %v769_v55 = vld [vmem:[%s2554_s30 + $0x13b8] sm:$0xff] }
 0x171   : > { %v770_v56 = vld [vmem:[%s2554_s30 + $0x13c0] sm:$0xff]  ;;  %1792 = vst [vmem:[%s2563_s25 + $0x13b0] sm:$0xff] %v768_v54  ;;  %1793 = vst [vmem:[%s2563_s25 + $0x13b8] sm:$0xff] %v769_v55  ;;  %v771_v57 = vld [vmem:[%s2554_s30 + $0x13c8] sm:$0xff] }
 0x172   : > { %1794 = vst [vmem:[%s2563_s25 + $0x13c0] sm:$0xff] %v770_v56  ;;  %v772_v58 = vld [vmem:[%s2554_s30 + $0x13d0] sm:$0xff]  ;;  %v773_v59 = vld [vmem:[%s2554_s30 + $0x13d8] sm:$0xff]  ;;  %1795 = vst [vmem:[%s2563_s25 + $0x13c8] sm:$0xff] %v771_v57 }
 0x173   : > { %1796 = vst [vmem:[%s2563_s25 + $0x13d0] sm:$0xff] %v772_v58  ;;  %1797 = vst [vmem:[%s2563_s25 + $0x13d8] sm:$0xff] %v773_v59  ;;  %v774_v60 = vld [vmem:[%s2554_s30 + $0x13e0] sm:$0xff]  ;;  %v775_v61 = vld [vmem:[%s2554_s30 + $0x13e8] sm:$0xff] }
 0x174   : > { %v776_v62 = vld [vmem:[%s2554_s30 + $0x13f0] sm:$0xff]  ;;  %1798 = vst [vmem:[%s2563_s25 + $0x13e0] sm:$0xff] %v774_v60  ;;  %1799 = vst [vmem:[%s2563_s25 + $0x13e8] sm:$0xff] %v775_v61  ;;  %v777_v63 = vld [vmem:[%s2554_s30 + $0x13f8] sm:$0xff] }
 0x175   : > { %1800 = vst [vmem:[%s2563_s25 + $0x13f0] sm:$0xff] %v776_v62  ;;  %v778_v0 = vld [vmem:[%s2554_s30 + $0x1400] sm:$0xff]  ;;  %v779_v1 = vld [vmem:[%s2554_s30 + $0x1408] sm:$0xff]  ;;  %1801 = vst [vmem:[%s2563_s25 + $0x13f8] sm:$0xff] %v777_v63 }
 0x176   : > { %1802 = vst [vmem:[%s2563_s25 + $0x1400] sm:$0xff] %v778_v0  ;;  %1803 = vst [vmem:[%s2563_s25 + $0x1408] sm:$0xff] %v779_v1  ;;  %v780_v2 = vld [vmem:[%s2554_s30 + $0x1410] sm:$0xff]  ;;  %v781_v3 = vld [vmem:[%s2554_s30 + $0x1418] sm:$0xff] }
 0x177   : > { %v782_v4 = vld [vmem:[%s2554_s30 + $0x1420] sm:$0xff]  ;;  %1804 = vst [vmem:[%s2563_s25 + $0x1410] sm:$0xff] %v780_v2  ;;  %1805 = vst [vmem:[%s2563_s25 + $0x1418] sm:$0xff] %v781_v3  ;;  %v783_v5 = vld [vmem:[%s2554_s30 + $0x1428] sm:$0xff] }
 0x178   : > { %1806 = vst [vmem:[%s2563_s25 + $0x1420] sm:$0xff] %v782_v4  ;;  %v784_v6 = vld [vmem:[%s2554_s30 + $0x1430] sm:$0xff]  ;;  %v785_v7 = vld [vmem:[%s2554_s30 + $0x1438] sm:$0xff]  ;;  %1807 = vst [vmem:[%s2563_s25 + $0x1428] sm:$0xff] %v783_v5 }
 0x179   : > { %1808 = vst [vmem:[%s2563_s25 + $0x1430] sm:$0xff] %v784_v6  ;;  %1809 = vst [vmem:[%s2563_s25 + $0x1438] sm:$0xff] %v785_v7  ;;  %v786_v8 = vld [vmem:[%s2554_s30 + $0x1440] sm:$0xff]  ;;  %v787_v9 = vld [vmem:[%s2554_s30 + $0x1448] sm:$0xff] }
 0x17a   : > { %v788_v10 = vld [vmem:[%s2554_s30 + $0x1450] sm:$0xff]  ;;  %1810 = vst [vmem:[%s2563_s25 + $0x1440] sm:$0xff] %v786_v8  ;;  %1811 = vst [vmem:[%s2563_s25 + $0x1448] sm:$0xff] %v787_v9  ;;  %v789_v11 = vld [vmem:[%s2554_s30 + $0x1458] sm:$0xff] }
 0x17b   : > { %1812 = vst [vmem:[%s2563_s25 + $0x1450] sm:$0xff] %v788_v10  ;;  %v790_v12 = vld [vmem:[%s2554_s30 + $0x1460] sm:$0xff]  ;;  %v791_v13 = vld [vmem:[%s2554_s30 + $0x1468] sm:$0xff]  ;;  %1813 = vst [vmem:[%s2563_s25 + $0x1458] sm:$0xff] %v789_v11 }
 0x17c   : > { %1814 = vst [vmem:[%s2563_s25 + $0x1460] sm:$0xff] %v790_v12  ;;  %1815 = vst [vmem:[%s2563_s25 + $0x1468] sm:$0xff] %v791_v13  ;;  %v792_v14 = vld [vmem:[%s2554_s30 + $0x1470] sm:$0xff]  ;;  %v793_v15 = vld [vmem:[%s2554_s30 + $0x1478] sm:$0xff] }
 0x17d   : > { %v794_v16 = vld [vmem:[%s2554_s30 + $0x1480] sm:$0xff]  ;;  %1816 = vst [vmem:[%s2563_s25 + $0x1470] sm:$0xff] %v792_v14  ;;  %1817 = vst [vmem:[%s2563_s25 + $0x1478] sm:$0xff] %v793_v15  ;;  %v795_v17 = vld [vmem:[%s2554_s30 + $0x1488] sm:$0xff] }
 0x17e   : > { %1818 = vst [vmem:[%s2563_s25 + $0x1480] sm:$0xff] %v794_v16  ;;  %v796_v18 = vld [vmem:[%s2554_s30 + $0x1490] sm:$0xff]  ;;  %v797_v19 = vld [vmem:[%s2554_s30 + $0x1498] sm:$0xff]  ;;  %1819 = vst [vmem:[%s2563_s25 + $0x1488] sm:$0xff] %v795_v17 }
 0x17f   : > { %1820 = vst [vmem:[%s2563_s25 + $0x1490] sm:$0xff] %v796_v18  ;;  %1821 = vst [vmem:[%s2563_s25 + $0x1498] sm:$0xff] %v797_v19  ;;  %v798_v20 = vld [vmem:[%s2554_s30 + $0x14a0] sm:$0xff]  ;;  %v799_v21 = vld [vmem:[%s2554_s30 + $0x14a8] sm:$0xff] }
 0x180   : > { %v800_v22 = vld [vmem:[%s2554_s30 + $0x14b0] sm:$0xff]  ;;  %1822 = vst [vmem:[%s2563_s25 + $0x14a0] sm:$0xff] %v798_v20  ;;  %1823 = vst [vmem:[%s2563_s25 + $0x14a8] sm:$0xff] %v799_v21  ;;  %v801_v23 = vld [vmem:[%s2554_s30 + $0x14b8] sm:$0xff] }
 0x181   : > { %1824 = vst [vmem:[%s2563_s25 + $0x14b0] sm:$0xff] %v800_v22  ;;  %v802_v24 = vld [vmem:[%s2554_s30 + $0x14c0] sm:$0xff]  ;;  %v803_v25 = vld [vmem:[%s2554_s30 + $0x14c8] sm:$0xff]  ;;  %1825 = vst [vmem:[%s2563_s25 + $0x14b8] sm:$0xff] %v801_v23 }
 0x182   : > { %1826 = vst [vmem:[%s2563_s25 + $0x14c0] sm:$0xff] %v802_v24  ;;  %1827 = vst [vmem:[%s2563_s25 + $0x14c8] sm:$0xff] %v803_v25  ;;  %v804_v26 = vld [vmem:[%s2554_s30 + $0x14d0] sm:$0xff]  ;;  %v805_v27 = vld [vmem:[%s2554_s30 + $0x14d8] sm:$0xff] }
 0x183   : > { %v806_v28 = vld [vmem:[%s2554_s30 + $0x14e0] sm:$0xff]  ;;  %1828 = vst [vmem:[%s2563_s25 + $0x14d0] sm:$0xff] %v804_v26  ;;  %1829 = vst [vmem:[%s2563_s25 + $0x14d8] sm:$0xff] %v805_v27  ;;  %v807_v29 = vld [vmem:[%s2554_s30 + $0x14e8] sm:$0xff] }
 0x184   : > { %1830 = vst [vmem:[%s2563_s25 + $0x14e0] sm:$0xff] %v806_v28  ;;  %v808_v30 = vld [vmem:[%s2554_s30 + $0x14f0] sm:$0xff]  ;;  %v809_v31 = vld [vmem:[%s2554_s30 + $0x14f8] sm:$0xff]  ;;  %1831 = vst [vmem:[%s2563_s25 + $0x14e8] sm:$0xff] %v807_v29 }
 0x185   : > { %1832 = vst [vmem:[%s2563_s25 + $0x14f0] sm:$0xff] %v808_v30  ;;  %1833 = vst [vmem:[%s2563_s25 + $0x14f8] sm:$0xff] %v809_v31  ;;  %v810_v32 = vld [vmem:[%s2554_s30 + $0x1500] sm:$0xff]  ;;  %v811_v33 = vld [vmem:[%s2554_s30 + $0x1508] sm:$0xff] }
 0x186   : > { %v812_v34 = vld [vmem:[%s2554_s30 + $0x1510] sm:$0xff]  ;;  %1834 = vst [vmem:[%s2563_s25 + $0x1500] sm:$0xff] %v810_v32  ;;  %1835 = vst [vmem:[%s2563_s25 + $0x1508] sm:$0xff] %v811_v33  ;;  %v813_v35 = vld [vmem:[%s2554_s30 + $0x1518] sm:$0xff] }
 0x187   : > { %1836 = vst [vmem:[%s2563_s25 + $0x1510] sm:$0xff] %v812_v34  ;;  %v814_v36 = vld [vmem:[%s2554_s30 + $0x1520] sm:$0xff]  ;;  %v815_v37 = vld [vmem:[%s2554_s30 + $0x1528] sm:$0xff]  ;;  %1837 = vst [vmem:[%s2563_s25 + $0x1518] sm:$0xff] %v813_v35 }
 0x188   : > { %1838 = vst [vmem:[%s2563_s25 + $0x1520] sm:$0xff] %v814_v36  ;;  %1839 = vst [vmem:[%s2563_s25 + $0x1528] sm:$0xff] %v815_v37  ;;  %v816_v38 = vld [vmem:[%s2554_s30 + $0x1530] sm:$0xff]  ;;  %v817_v39 = vld [vmem:[%s2554_s30 + $0x1538] sm:$0xff] }
 0x189   : > { %v818_v40 = vld [vmem:[%s2554_s30 + $0x1540] sm:$0xff]  ;;  %1840 = vst [vmem:[%s2563_s25 + $0x1530] sm:$0xff] %v816_v38  ;;  %1841 = vst [vmem:[%s2563_s25 + $0x1538] sm:$0xff] %v817_v39  ;;  %v819_v41 = vld [vmem:[%s2554_s30 + $0x1548] sm:$0xff] }
 0x18a   : > { %1842 = vst [vmem:[%s2563_s25 + $0x1540] sm:$0xff] %v818_v40  ;;  %v820_v42 = vld [vmem:[%s2554_s30 + $0x1550] sm:$0xff]  ;;  %v821_v43 = vld [vmem:[%s2554_s30 + $0x1558] sm:$0xff]  ;;  %1843 = vst [vmem:[%s2563_s25 + $0x1548] sm:$0xff] %v819_v41 }
 0x18b   : > { %1844 = vst [vmem:[%s2563_s25 + $0x1550] sm:$0xff] %v820_v42  ;;  %1845 = vst [vmem:[%s2563_s25 + $0x1558] sm:$0xff] %v821_v43  ;;  %v822_v44 = vld [vmem:[%s2554_s30 + $0x1560] sm:$0xff]  ;;  %v823_v45 = vld [vmem:[%s2554_s30 + $0x1568] sm:$0xff] }
 0x18c   : > { %v824_v46 = vld [vmem:[%s2554_s30 + $0x1570] sm:$0xff]  ;;  %1846 = vst [vmem:[%s2563_s25 + $0x1560] sm:$0xff] %v822_v44  ;;  %1847 = vst [vmem:[%s2563_s25 + $0x1568] sm:$0xff] %v823_v45  ;;  %v825_v47 = vld [vmem:[%s2554_s30 + $0x1578] sm:$0xff] }
 0x18d   : > { %1848 = vst [vmem:[%s2563_s25 + $0x1570] sm:$0xff] %v824_v46  ;;  %v826_v48 = vld [vmem:[%s2554_s30 + $0x1580] sm:$0xff]  ;;  %v827_v49 = vld [vmem:[%s2554_s30 + $0x1588] sm:$0xff]  ;;  %1849 = vst [vmem:[%s2563_s25 + $0x1578] sm:$0xff] %v825_v47 }
 0x18e   : > { %1850 = vst [vmem:[%s2563_s25 + $0x1580] sm:$0xff] %v826_v48  ;;  %1851 = vst [vmem:[%s2563_s25 + $0x1588] sm:$0xff] %v827_v49  ;;  %v828_v50 = vld [vmem:[%s2554_s30 + $0x1590] sm:$0xff]  ;;  %v829_v51 = vld [vmem:[%s2554_s30 + $0x1598] sm:$0xff] }
 0x18f   : > { %v830_v52 = vld [vmem:[%s2554_s30 + $0x15a0] sm:$0xff]  ;;  %1852 = vst [vmem:[%s2563_s25 + $0x1590] sm:$0xff] %v828_v50  ;;  %1853 = vst [vmem:[%s2563_s25 + $0x1598] sm:$0xff] %v829_v51  ;;  %v831_v53 = vld [vmem:[%s2554_s30 + $0x15a8] sm:$0xff] }
 0x190   : > { %1854 = vst [vmem:[%s2563_s25 + $0x15a0] sm:$0xff] %v830_v52  ;;  %v832_v54 = vld [vmem:[%s2554_s30 + $0x15b0] sm:$0xff]  ;;  %v833_v55 = vld [vmem:[%s2554_s30 + $0x15b8] sm:$0xff]  ;;  %1855 = vst [vmem:[%s2563_s25 + $0x15a8] sm:$0xff] %v831_v53 }
 0x191   : > { %1856 = vst [vmem:[%s2563_s25 + $0x15b0] sm:$0xff] %v832_v54  ;;  %1857 = vst [vmem:[%s2563_s25 + $0x15b8] sm:$0xff] %v833_v55  ;;  %v834_v56 = vld [vmem:[%s2554_s30 + $0x15c0] sm:$0xff]  ;;  %v835_v57 = vld [vmem:[%s2554_s30 + $0x15c8] sm:$0xff] }
 0x192   : > { %v836_v58 = vld [vmem:[%s2554_s30 + $0x15d0] sm:$0xff]  ;;  %1858 = vst [vmem:[%s2563_s25 + $0x15c0] sm:$0xff] %v834_v56  ;;  %1859 = vst [vmem:[%s2563_s25 + $0x15c8] sm:$0xff] %v835_v57  ;;  %v837_v59 = vld [vmem:[%s2554_s30 + $0x15d8] sm:$0xff] }
 0x193   : > { %1860 = vst [vmem:[%s2563_s25 + $0x15d0] sm:$0xff] %v836_v58  ;;  %v838_v60 = vld [vmem:[%s2554_s30 + $0x15e0] sm:$0xff]  ;;  %v839_v61 = vld [vmem:[%s2554_s30 + $0x15e8] sm:$0xff]  ;;  %1861 = vst [vmem:[%s2563_s25 + $0x15d8] sm:$0xff] %v837_v59 }
 0x194   : > { %1862 = vst [vmem:[%s2563_s25 + $0x15e0] sm:$0xff] %v838_v60  ;;  %1863 = vst [vmem:[%s2563_s25 + $0x15e8] sm:$0xff] %v839_v61  ;;  %v840_v62 = vld [vmem:[%s2554_s30 + $0x15f0] sm:$0xff]  ;;  %v841_v63 = vld [vmem:[%s2554_s30 + $0x15f8] sm:$0xff] }
 0x195   : > { %v842_v0 = vld [vmem:[%s2554_s30 + $0x1600] sm:$0xff]  ;;  %1864 = vst [vmem:[%s2563_s25 + $0x15f0] sm:$0xff] %v840_v62  ;;  %1865 = vst [vmem:[%s2563_s25 + $0x15f8] sm:$0xff] %v841_v63  ;;  %v843_v1 = vld [vmem:[%s2554_s30 + $0x1608] sm:$0xff] }
 0x196   : > { %1866 = vst [vmem:[%s2563_s25 + $0x1600] sm:$0xff] %v842_v0  ;;  %v844_v2 = vld [vmem:[%s2554_s30 + $0x1610] sm:$0xff]  ;;  %v845_v3 = vld [vmem:[%s2554_s30 + $0x1618] sm:$0xff]  ;;  %1867 = vst [vmem:[%s2563_s25 + $0x1608] sm:$0xff] %v843_v1 }
 0x197   : > { %1868 = vst [vmem:[%s2563_s25 + $0x1610] sm:$0xff] %v844_v2  ;;  %1869 = vst [vmem:[%s2563_s25 + $0x1618] sm:$0xff] %v845_v3  ;;  %v846_v4 = vld [vmem:[%s2554_s30 + $0x1620] sm:$0xff]  ;;  %v847_v5 = vld [vmem:[%s2554_s30 + $0x1628] sm:$0xff] }
 0x198   : > { %v848_v6 = vld [vmem:[%s2554_s30 + $0x1630] sm:$0xff]  ;;  %1870 = vst [vmem:[%s2563_s25 + $0x1620] sm:$0xff] %v846_v4  ;;  %1871 = vst [vmem:[%s2563_s25 + $0x1628] sm:$0xff] %v847_v5  ;;  %v849_v7 = vld [vmem:[%s2554_s30 + $0x1638] sm:$0xff] }
 0x199   : > { %1872 = vst [vmem:[%s2563_s25 + $0x1630] sm:$0xff] %v848_v6  ;;  %v850_v8 = vld [vmem:[%s2554_s30 + $0x1640] sm:$0xff]  ;;  %v851_v9 = vld [vmem:[%s2554_s30 + $0x1648] sm:$0xff]  ;;  %1873 = vst [vmem:[%s2563_s25 + $0x1638] sm:$0xff] %v849_v7 }
 0x19a   : > { %1874 = vst [vmem:[%s2563_s25 + $0x1640] sm:$0xff] %v850_v8  ;;  %1875 = vst [vmem:[%s2563_s25 + $0x1648] sm:$0xff] %v851_v9  ;;  %v852_v10 = vld [vmem:[%s2554_s30 + $0x1650] sm:$0xff]  ;;  %v853_v11 = vld [vmem:[%s2554_s30 + $0x1658] sm:$0xff] }
 0x19b   : > { %v854_v12 = vld [vmem:[%s2554_s30 + $0x1660] sm:$0xff]  ;;  %1876 = vst [vmem:[%s2563_s25 + $0x1650] sm:$0xff] %v852_v10  ;;  %1877 = vst [vmem:[%s2563_s25 + $0x1658] sm:$0xff] %v853_v11  ;;  %v855_v13 = vld [vmem:[%s2554_s30 + $0x1668] sm:$0xff] }
 0x19c   : > { %1878 = vst [vmem:[%s2563_s25 + $0x1660] sm:$0xff] %v854_v12  ;;  %v856_v14 = vld [vmem:[%s2554_s30 + $0x1670] sm:$0xff]  ;;  %v857_v15 = vld [vmem:[%s2554_s30 + $0x1678] sm:$0xff]  ;;  %1879 = vst [vmem:[%s2563_s25 + $0x1668] sm:$0xff] %v855_v13 }
 0x19d   : > { %1880 = vst [vmem:[%s2563_s25 + $0x1670] sm:$0xff] %v856_v14  ;;  %1881 = vst [vmem:[%s2563_s25 + $0x1678] sm:$0xff] %v857_v15  ;;  %v858_v16 = vld [vmem:[%s2554_s30 + $0x1680] sm:$0xff]  ;;  %v859_v17 = vld [vmem:[%s2554_s30 + $0x1688] sm:$0xff] }
 0x19e   : > { %v860_v18 = vld [vmem:[%s2554_s30 + $0x1690] sm:$0xff]  ;;  %1882 = vst [vmem:[%s2563_s25 + $0x1680] sm:$0xff] %v858_v16  ;;  %1883 = vst [vmem:[%s2563_s25 + $0x1688] sm:$0xff] %v859_v17  ;;  %v861_v19 = vld [vmem:[%s2554_s30 + $0x1698] sm:$0xff] }
 0x19f   : > { %1884 = vst [vmem:[%s2563_s25 + $0x1690] sm:$0xff] %v860_v18  ;;  %v862_v20 = vld [vmem:[%s2554_s30 + $0x16a0] sm:$0xff]  ;;  %v863_v21 = vld [vmem:[%s2554_s30 + $0x16a8] sm:$0xff]  ;;  %1885 = vst [vmem:[%s2563_s25 + $0x1698] sm:$0xff] %v861_v19 }
 0x1a0   : > { %1886 = vst [vmem:[%s2563_s25 + $0x16a0] sm:$0xff] %v862_v20  ;;  %1887 = vst [vmem:[%s2563_s25 + $0x16a8] sm:$0xff] %v863_v21  ;;  %v864_v22 = vld [vmem:[%s2554_s30 + $0x16b0] sm:$0xff]  ;;  %v865_v23 = vld [vmem:[%s2554_s30 + $0x16b8] sm:$0xff] }
 0x1a1   : > { %v866_v24 = vld [vmem:[%s2554_s30 + $0x16c0] sm:$0xff]  ;;  %1888 = vst [vmem:[%s2563_s25 + $0x16b0] sm:$0xff] %v864_v22  ;;  %1889 = vst [vmem:[%s2563_s25 + $0x16b8] sm:$0xff] %v865_v23  ;;  %v867_v25 = vld [vmem:[%s2554_s30 + $0x16c8] sm:$0xff] }
 0x1a2   : > { %1890 = vst [vmem:[%s2563_s25 + $0x16c0] sm:$0xff] %v866_v24  ;;  %v868_v26 = vld [vmem:[%s2554_s30 + $0x16d0] sm:$0xff]  ;;  %v869_v27 = vld [vmem:[%s2554_s30 + $0x16d8] sm:$0xff]  ;;  %1891 = vst [vmem:[%s2563_s25 + $0x16c8] sm:$0xff] %v867_v25 }
 0x1a3   : > { %1892 = vst [vmem:[%s2563_s25 + $0x16d0] sm:$0xff] %v868_v26  ;;  %1893 = vst [vmem:[%s2563_s25 + $0x16d8] sm:$0xff] %v869_v27  ;;  %v870_v28 = vld [vmem:[%s2554_s30 + $0x16e0] sm:$0xff]  ;;  %v871_v29 = vld [vmem:[%s2554_s30 + $0x16e8] sm:$0xff] }
 0x1a4   : > { %v872_v30 = vld [vmem:[%s2554_s30 + $0x16f0] sm:$0xff]  ;;  %1894 = vst [vmem:[%s2563_s25 + $0x16e0] sm:$0xff] %v870_v28  ;;  %1895 = vst [vmem:[%s2563_s25 + $0x16e8] sm:$0xff] %v871_v29  ;;  %v873_v31 = vld [vmem:[%s2554_s30 + $0x16f8] sm:$0xff] }
 0x1a5   : > { %1896 = vst [vmem:[%s2563_s25 + $0x16f0] sm:$0xff] %v872_v30  ;;  %v874_v32 = vld [vmem:[%s2554_s30 + $0x1700] sm:$0xff]  ;;  %v875_v33 = vld [vmem:[%s2554_s30 + $0x1708] sm:$0xff]  ;;  %1897 = vst [vmem:[%s2563_s25 + $0x16f8] sm:$0xff] %v873_v31 }
 0x1a6   : > { %1898 = vst [vmem:[%s2563_s25 + $0x1700] sm:$0xff] %v874_v32  ;;  %1899 = vst [vmem:[%s2563_s25 + $0x1708] sm:$0xff] %v875_v33  ;;  %v876_v34 = vld [vmem:[%s2554_s30 + $0x1710] sm:$0xff]  ;;  %v877_v35 = vld [vmem:[%s2554_s30 + $0x1718] sm:$0xff] }
 0x1a7   : > { %v878_v36 = vld [vmem:[%s2554_s30 + $0x1720] sm:$0xff]  ;;  %1900 = vst [vmem:[%s2563_s25 + $0x1710] sm:$0xff] %v876_v34  ;;  %1901 = vst [vmem:[%s2563_s25 + $0x1718] sm:$0xff] %v877_v35  ;;  %v879_v37 = vld [vmem:[%s2554_s30 + $0x1728] sm:$0xff] }
 0x1a8   : > { %1902 = vst [vmem:[%s2563_s25 + $0x1720] sm:$0xff] %v878_v36  ;;  %v880_v38 = vld [vmem:[%s2554_s30 + $0x1730] sm:$0xff]  ;;  %v881_v39 = vld [vmem:[%s2554_s30 + $0x1738] sm:$0xff]  ;;  %1903 = vst [vmem:[%s2563_s25 + $0x1728] sm:$0xff] %v879_v37 }
 0x1a9   : > { %1904 = vst [vmem:[%s2563_s25 + $0x1730] sm:$0xff] %v880_v38  ;;  %1905 = vst [vmem:[%s2563_s25 + $0x1738] sm:$0xff] %v881_v39  ;;  %v882_v40 = vld [vmem:[%s2554_s30 + $0x1740] sm:$0xff]  ;;  %v883_v41 = vld [vmem:[%s2554_s30 + $0x1748] sm:$0xff] }
 0x1aa   : > { %v884_v42 = vld [vmem:[%s2554_s30 + $0x1750] sm:$0xff]  ;;  %1906 = vst [vmem:[%s2563_s25 + $0x1740] sm:$0xff] %v882_v40  ;;  %1907 = vst [vmem:[%s2563_s25 + $0x1748] sm:$0xff] %v883_v41  ;;  %v885_v43 = vld [vmem:[%s2554_s30 + $0x1758] sm:$0xff] }
 0x1ab   : > { %1908 = vst [vmem:[%s2563_s25 + $0x1750] sm:$0xff] %v884_v42  ;;  %v886_v44 = vld [vmem:[%s2554_s30 + $0x1760] sm:$0xff]  ;;  %v887_v45 = vld [vmem:[%s2554_s30 + $0x1768] sm:$0xff]  ;;  %1909 = vst [vmem:[%s2563_s25 + $0x1758] sm:$0xff] %v885_v43 }
 0x1ac   : > { %1910 = vst [vmem:[%s2563_s25 + $0x1760] sm:$0xff] %v886_v44  ;;  %1911 = vst [vmem:[%s2563_s25 + $0x1768] sm:$0xff] %v887_v45  ;;  %v888_v46 = vld [vmem:[%s2554_s30 + $0x1770] sm:$0xff]  ;;  %v889_v47 = vld [vmem:[%s2554_s30 + $0x1778] sm:$0xff] }
 0x1ad   : > { %v890_v48 = vld [vmem:[%s2554_s30 + $0x1780] sm:$0xff]  ;;  %1912 = vst [vmem:[%s2563_s25 + $0x1770] sm:$0xff] %v888_v46  ;;  %1913 = vst [vmem:[%s2563_s25 + $0x1778] sm:$0xff] %v889_v47  ;;  %v891_v49 = vld [vmem:[%s2554_s30 + $0x1788] sm:$0xff] }
 0x1ae   : > { %1914 = vst [vmem:[%s2563_s25 + $0x1780] sm:$0xff] %v890_v48  ;;  %v892_v50 = vld [vmem:[%s2554_s30 + $0x1790] sm:$0xff]  ;;  %v893_v51 = vld [vmem:[%s2554_s30 + $0x1798] sm:$0xff]  ;;  %1915 = vst [vmem:[%s2563_s25 + $0x1788] sm:$0xff] %v891_v49 }
 0x1af   : > { %1916 = vst [vmem:[%s2563_s25 + $0x1790] sm:$0xff] %v892_v50  ;;  %1917 = vst [vmem:[%s2563_s25 + $0x1798] sm:$0xff] %v893_v51  ;;  %v894_v52 = vld [vmem:[%s2554_s30 + $0x17a0] sm:$0xff]  ;;  %v895_v53 = vld [vmem:[%s2554_s30 + $0x17a8] sm:$0xff] }
 0x1b0   : > { %v896_v54 = vld [vmem:[%s2554_s30 + $0x17b0] sm:$0xff]  ;;  %1918 = vst [vmem:[%s2563_s25 + $0x17a0] sm:$0xff] %v894_v52  ;;  %1919 = vst [vmem:[%s2563_s25 + $0x17a8] sm:$0xff] %v895_v53  ;;  %v897_v55 = vld [vmem:[%s2554_s30 + $0x17b8] sm:$0xff] }
 0x1b1   : > { %1920 = vst [vmem:[%s2563_s25 + $0x17b0] sm:$0xff] %v896_v54  ;;  %v898_v56 = vld [vmem:[%s2554_s30 + $0x17c0] sm:$0xff]  ;;  %v899_v57 = vld [vmem:[%s2554_s30 + $0x17c8] sm:$0xff]  ;;  %1921 = vst [vmem:[%s2563_s25 + $0x17b8] sm:$0xff] %v897_v55 }
 0x1b2   : > { %1922 = vst [vmem:[%s2563_s25 + $0x17c0] sm:$0xff] %v898_v56  ;;  %1923 = vst [vmem:[%s2563_s25 + $0x17c8] sm:$0xff] %v899_v57  ;;  %v900_v58 = vld [vmem:[%s2554_s30 + $0x17d0] sm:$0xff]  ;;  %v901_v59 = vld [vmem:[%s2554_s30 + $0x17d8] sm:$0xff] }
 0x1b3   : > { %v902_v60 = vld [vmem:[%s2554_s30 + $0x17e0] sm:$0xff]  ;;  %1924 = vst [vmem:[%s2563_s25 + $0x17d0] sm:$0xff] %v900_v58  ;;  %1925 = vst [vmem:[%s2563_s25 + $0x17d8] sm:$0xff] %v901_v59  ;;  %v903_v61 = vld [vmem:[%s2554_s30 + $0x17e8] sm:$0xff] }
 0x1b4   : > { %1926 = vst [vmem:[%s2563_s25 + $0x17e0] sm:$0xff] %v902_v60  ;;  %v904_v62 = vld [vmem:[%s2554_s30 + $0x17f0] sm:$0xff]  ;;  %v905_v63 = vld [vmem:[%s2554_s30 + $0x17f8] sm:$0xff]  ;;  %1927 = vst [vmem:[%s2563_s25 + $0x17e8] sm:$0xff] %v903_v61 }
 0x1b5   : > { %1928 = vst [vmem:[%s2563_s25 + $0x17f0] sm:$0xff] %v904_v62  ;;  %1929 = vst [vmem:[%s2563_s25 + $0x17f8] sm:$0xff] %v905_v63  ;;  %v906_v0 = vld [vmem:[%s2554_s30 + $0x1800] sm:$0xff]  ;;  %v907_v1 = vld [vmem:[%s2554_s30 + $0x1808] sm:$0xff] }
 0x1b6   : > { %v908_v2 = vld [vmem:[%s2554_s30 + $0x1810] sm:$0xff]  ;;  %1930 = vst [vmem:[%s2563_s25 + $0x1800] sm:$0xff] %v906_v0  ;;  %1931 = vst [vmem:[%s2563_s25 + $0x1808] sm:$0xff] %v907_v1  ;;  %v909_v3 = vld [vmem:[%s2554_s30 + $0x1818] sm:$0xff] }
 0x1b7   : > { %1932 = vst [vmem:[%s2563_s25 + $0x1810] sm:$0xff] %v908_v2  ;;  %v910_v4 = vld [vmem:[%s2554_s30 + $0x1820] sm:$0xff]  ;;  %v911_v5 = vld [vmem:[%s2554_s30 + $0x1828] sm:$0xff]  ;;  %1933 = vst [vmem:[%s2563_s25 + $0x1818] sm:$0xff] %v909_v3 }
 0x1b8   : > { %1934 = vst [vmem:[%s2563_s25 + $0x1820] sm:$0xff] %v910_v4  ;;  %1935 = vst [vmem:[%s2563_s25 + $0x1828] sm:$0xff] %v911_v5  ;;  %v912_v6 = vld [vmem:[%s2554_s30 + $0x1830] sm:$0xff]  ;;  %v913_v7 = vld [vmem:[%s2554_s30 + $0x1838] sm:$0xff] }
 0x1b9   : > { %v914_v8 = vld [vmem:[%s2554_s30 + $0x1840] sm:$0xff]  ;;  %1936 = vst [vmem:[%s2563_s25 + $0x1830] sm:$0xff] %v912_v6  ;;  %1937 = vst [vmem:[%s2563_s25 + $0x1838] sm:$0xff] %v913_v7  ;;  %v915_v9 = vld [vmem:[%s2554_s30 + $0x1848] sm:$0xff] }
 0x1ba   : > { %1938 = vst [vmem:[%s2563_s25 + $0x1840] sm:$0xff] %v914_v8  ;;  %v916_v10 = vld [vmem:[%s2554_s30 + $0x1850] sm:$0xff]  ;;  %v917_v11 = vld [vmem:[%s2554_s30 + $0x1858] sm:$0xff]  ;;  %1939 = vst [vmem:[%s2563_s25 + $0x1848] sm:$0xff] %v915_v9 }
 0x1bb   : > { %1940 = vst [vmem:[%s2563_s25 + $0x1850] sm:$0xff] %v916_v10  ;;  %1941 = vst [vmem:[%s2563_s25 + $0x1858] sm:$0xff] %v917_v11  ;;  %v918_v12 = vld [vmem:[%s2554_s30 + $0x1860] sm:$0xff]  ;;  %v919_v13 = vld [vmem:[%s2554_s30 + $0x1868] sm:$0xff] }
 0x1bc   : > { %v920_v14 = vld [vmem:[%s2554_s30 + $0x1870] sm:$0xff]  ;;  %1942 = vst [vmem:[%s2563_s25 + $0x1860] sm:$0xff] %v918_v12  ;;  %1943 = vst [vmem:[%s2563_s25 + $0x1868] sm:$0xff] %v919_v13  ;;  %v921_v15 = vld [vmem:[%s2554_s30 + $0x1878] sm:$0xff] }
 0x1bd   : > { %1944 = vst [vmem:[%s2563_s25 + $0x1870] sm:$0xff] %v920_v14  ;;  %v922_v16 = vld [vmem:[%s2554_s30 + $0x1880] sm:$0xff]  ;;  %v923_v17 = vld [vmem:[%s2554_s30 + $0x1888] sm:$0xff]  ;;  %1945 = vst [vmem:[%s2563_s25 + $0x1878] sm:$0xff] %v921_v15 }
 0x1be   : > { %1946 = vst [vmem:[%s2563_s25 + $0x1880] sm:$0xff] %v922_v16  ;;  %1947 = vst [vmem:[%s2563_s25 + $0x1888] sm:$0xff] %v923_v17  ;;  %v924_v18 = vld [vmem:[%s2554_s30 + $0x1890] sm:$0xff]  ;;  %v925_v19 = vld [vmem:[%s2554_s30 + $0x1898] sm:$0xff] }
 0x1bf   : > { %v926_v20 = vld [vmem:[%s2554_s30 + $0x18a0] sm:$0xff]  ;;  %1948 = vst [vmem:[%s2563_s25 + $0x1890] sm:$0xff] %v924_v18  ;;  %1949 = vst [vmem:[%s2563_s25 + $0x1898] sm:$0xff] %v925_v19  ;;  %v927_v21 = vld [vmem:[%s2554_s30 + $0x18a8] sm:$0xff] }
 0x1c0   : > { %1950 = vst [vmem:[%s2563_s25 + $0x18a0] sm:$0xff] %v926_v20  ;;  %v928_v22 = vld [vmem:[%s2554_s30 + $0x18b0] sm:$0xff]  ;;  %v929_v23 = vld [vmem:[%s2554_s30 + $0x18b8] sm:$0xff]  ;;  %1951 = vst [vmem:[%s2563_s25 + $0x18a8] sm:$0xff] %v927_v21 }
 0x1c1   : > { %1952 = vst [vmem:[%s2563_s25 + $0x18b0] sm:$0xff] %v928_v22  ;;  %1953 = vst [vmem:[%s2563_s25 + $0x18b8] sm:$0xff] %v929_v23  ;;  %v930_v24 = vld [vmem:[%s2554_s30 + $0x18c0] sm:$0xff]  ;;  %v931_v25 = vld [vmem:[%s2554_s30 + $0x18c8] sm:$0xff] }
 0x1c2   : > { %v932_v26 = vld [vmem:[%s2554_s30 + $0x18d0] sm:$0xff]  ;;  %1954 = vst [vmem:[%s2563_s25 + $0x18c0] sm:$0xff] %v930_v24  ;;  %1955 = vst [vmem:[%s2563_s25 + $0x18c8] sm:$0xff] %v931_v25  ;;  %v933_v27 = vld [vmem:[%s2554_s30 + $0x18d8] sm:$0xff] }
 0x1c3   : > { %1956 = vst [vmem:[%s2563_s25 + $0x18d0] sm:$0xff] %v932_v26  ;;  %v934_v28 = vld [vmem:[%s2554_s30 + $0x18e0] sm:$0xff]  ;;  %v935_v29 = vld [vmem:[%s2554_s30 + $0x18e8] sm:$0xff]  ;;  %1957 = vst [vmem:[%s2563_s25 + $0x18d8] sm:$0xff] %v933_v27 }
 0x1c4   : > { %1958 = vst [vmem:[%s2563_s25 + $0x18e0] sm:$0xff] %v934_v28  ;;  %1959 = vst [vmem:[%s2563_s25 + $0x18e8] sm:$0xff] %v935_v29  ;;  %v936_v30 = vld [vmem:[%s2554_s30 + $0x18f0] sm:$0xff]  ;;  %v937_v31 = vld [vmem:[%s2554_s30 + $0x18f8] sm:$0xff] }
 0x1c5   : > { %v938_v32 = vld [vmem:[%s2554_s30 + $0x1900] sm:$0xff]  ;;  %1960 = vst [vmem:[%s2563_s25 + $0x18f0] sm:$0xff] %v936_v30  ;;  %1961 = vst [vmem:[%s2563_s25 + $0x18f8] sm:$0xff] %v937_v31  ;;  %v939_v33 = vld [vmem:[%s2554_s30 + $0x1908] sm:$0xff] }
 0x1c6   : > { %1962 = vst [vmem:[%s2563_s25 + $0x1900] sm:$0xff] %v938_v32  ;;  %v940_v34 = vld [vmem:[%s2554_s30 + $0x1910] sm:$0xff]  ;;  %v941_v35 = vld [vmem:[%s2554_s30 + $0x1918] sm:$0xff]  ;;  %1963 = vst [vmem:[%s2563_s25 + $0x1908] sm:$0xff] %v939_v33 }
 0x1c7   : > { %1964 = vst [vmem:[%s2563_s25 + $0x1910] sm:$0xff] %v940_v34  ;;  %1965 = vst [vmem:[%s2563_s25 + $0x1918] sm:$0xff] %v941_v35  ;;  %v942_v36 = vld [vmem:[%s2554_s30 + $0x1920] sm:$0xff]  ;;  %v943_v37 = vld [vmem:[%s2554_s30 + $0x1928] sm:$0xff] }
 0x1c8   : > { %v944_v38 = vld [vmem:[%s2554_s30 + $0x1930] sm:$0xff]  ;;  %1966 = vst [vmem:[%s2563_s25 + $0x1920] sm:$0xff] %v942_v36  ;;  %1967 = vst [vmem:[%s2563_s25 + $0x1928] sm:$0xff] %v943_v37  ;;  %v945_v39 = vld [vmem:[%s2554_s30 + $0x1938] sm:$0xff] }
 0x1c9   : > { %1968 = vst [vmem:[%s2563_s25 + $0x1930] sm:$0xff] %v944_v38  ;;  %v946_v40 = vld [vmem:[%s2554_s30 + $0x1940] sm:$0xff]  ;;  %v947_v41 = vld [vmem:[%s2554_s30 + $0x1948] sm:$0xff]  ;;  %1969 = vst [vmem:[%s2563_s25 + $0x1938] sm:$0xff] %v945_v39 }
 0x1ca   : > { %1970 = vst [vmem:[%s2563_s25 + $0x1940] sm:$0xff] %v946_v40  ;;  %1971 = vst [vmem:[%s2563_s25 + $0x1948] sm:$0xff] %v947_v41  ;;  %v948_v42 = vld [vmem:[%s2554_s30 + $0x1950] sm:$0xff]  ;;  %v949_v43 = vld [vmem:[%s2554_s30 + $0x1958] sm:$0xff] }
 0x1cb   : > { %v950_v44 = vld [vmem:[%s2554_s30 + $0x1960] sm:$0xff]  ;;  %1972 = vst [vmem:[%s2563_s25 + $0x1950] sm:$0xff] %v948_v42  ;;  %1973 = vst [vmem:[%s2563_s25 + $0x1958] sm:$0xff] %v949_v43  ;;  %v951_v45 = vld [vmem:[%s2554_s30 + $0x1968] sm:$0xff] }
 0x1cc   : > { %1974 = vst [vmem:[%s2563_s25 + $0x1960] sm:$0xff] %v950_v44  ;;  %v952_v46 = vld [vmem:[%s2554_s30 + $0x1970] sm:$0xff]  ;;  %v953_v47 = vld [vmem:[%s2554_s30 + $0x1978] sm:$0xff]  ;;  %1975 = vst [vmem:[%s2563_s25 + $0x1968] sm:$0xff] %v951_v45 }
 0x1cd   : > { %1976 = vst [vmem:[%s2563_s25 + $0x1970] sm:$0xff] %v952_v46  ;;  %1977 = vst [vmem:[%s2563_s25 + $0x1978] sm:$0xff] %v953_v47  ;;  %v954_v48 = vld [vmem:[%s2554_s30 + $0x1980] sm:$0xff]  ;;  %v955_v49 = vld [vmem:[%s2554_s30 + $0x1988] sm:$0xff] }
 0x1ce   : > { %v956_v50 = vld [vmem:[%s2554_s30 + $0x1990] sm:$0xff]  ;;  %1978 = vst [vmem:[%s2563_s25 + $0x1980] sm:$0xff] %v954_v48  ;;  %1979 = vst [vmem:[%s2563_s25 + $0x1988] sm:$0xff] %v955_v49  ;;  %v957_v51 = vld [vmem:[%s2554_s30 + $0x1998] sm:$0xff] }
 0x1cf   : > { %1980 = vst [vmem:[%s2563_s25 + $0x1990] sm:$0xff] %v956_v50  ;;  %v958_v52 = vld [vmem:[%s2554_s30 + $0x19a0] sm:$0xff]  ;;  %v959_v53 = vld [vmem:[%s2554_s30 + $0x19a8] sm:$0xff]  ;;  %1981 = vst [vmem:[%s2563_s25 + $0x1998] sm:$0xff] %v957_v51 }
 0x1d0   : > { %1982 = vst [vmem:[%s2563_s25 + $0x19a0] sm:$0xff] %v958_v52  ;;  %1983 = vst [vmem:[%s2563_s25 + $0x19a8] sm:$0xff] %v959_v53  ;;  %v960_v54 = vld [vmem:[%s2554_s30 + $0x19b0] sm:$0xff]  ;;  %v961_v55 = vld [vmem:[%s2554_s30 + $0x19b8] sm:$0xff] }
 0x1d1   : > { %v962_v56 = vld [vmem:[%s2554_s30 + $0x19c0] sm:$0xff]  ;;  %1984 = vst [vmem:[%s2563_s25 + $0x19b0] sm:$0xff] %v960_v54  ;;  %1985 = vst [vmem:[%s2563_s25 + $0x19b8] sm:$0xff] %v961_v55  ;;  %v963_v57 = vld [vmem:[%s2554_s30 + $0x19c8] sm:$0xff] }
 0x1d2   : > { %1986 = vst [vmem:[%s2563_s25 + $0x19c0] sm:$0xff] %v962_v56  ;;  %v964_v58 = vld [vmem:[%s2554_s30 + $0x19d0] sm:$0xff]  ;;  %v965_v59 = vld [vmem:[%s2554_s30 + $0x19d8] sm:$0xff]  ;;  %1987 = vst [vmem:[%s2563_s25 + $0x19c8] sm:$0xff] %v963_v57 }
 0x1d3   : > { %1988 = vst [vmem:[%s2563_s25 + $0x19d0] sm:$0xff] %v964_v58  ;;  %1989 = vst [vmem:[%s2563_s25 + $0x19d8] sm:$0xff] %v965_v59  ;;  %v966_v60 = vld [vmem:[%s2554_s30 + $0x19e0] sm:$0xff]  ;;  %v967_v61 = vld [vmem:[%s2554_s30 + $0x19e8] sm:$0xff] }
 0x1d4   : > { %v968_v62 = vld [vmem:[%s2554_s30 + $0x19f0] sm:$0xff]  ;;  %1990 = vst [vmem:[%s2563_s25 + $0x19e0] sm:$0xff] %v966_v60  ;;  %1991 = vst [vmem:[%s2563_s25 + $0x19e8] sm:$0xff] %v967_v61  ;;  %v969_v63 = vld [vmem:[%s2554_s30 + $0x19f8] sm:$0xff] }
 0x1d5   : > { %1992 = vst [vmem:[%s2563_s25 + $0x19f0] sm:$0xff] %v968_v62  ;;  %v970_v0 = vld [vmem:[%s2554_s30 + $0x1a00] sm:$0xff]  ;;  %v971_v1 = vld [vmem:[%s2554_s30 + $0x1a08] sm:$0xff]  ;;  %1993 = vst [vmem:[%s2563_s25 + $0x19f8] sm:$0xff] %v969_v63 }
 0x1d6   : > { %1994 = vst [vmem:[%s2563_s25 + $0x1a00] sm:$0xff] %v970_v0  ;;  %1995 = vst [vmem:[%s2563_s25 + $0x1a08] sm:$0xff] %v971_v1  ;;  %v972_v2 = vld [vmem:[%s2554_s30 + $0x1a10] sm:$0xff]  ;;  %v973_v3 = vld [vmem:[%s2554_s30 + $0x1a18] sm:$0xff] }
 0x1d7   : > { %v974_v4 = vld [vmem:[%s2554_s30 + $0x1a20] sm:$0xff]  ;;  %1996 = vst [vmem:[%s2563_s25 + $0x1a10] sm:$0xff] %v972_v2  ;;  %1997 = vst [vmem:[%s2563_s25 + $0x1a18] sm:$0xff] %v973_v3  ;;  %v975_v5 = vld [vmem:[%s2554_s30 + $0x1a28] sm:$0xff] }
 0x1d8   : > { %1998 = vst [vmem:[%s2563_s25 + $0x1a20] sm:$0xff] %v974_v4  ;;  %v976_v6 = vld [vmem:[%s2554_s30 + $0x1a30] sm:$0xff]  ;;  %v977_v7 = vld [vmem:[%s2554_s30 + $0x1a38] sm:$0xff]  ;;  %1999 = vst [vmem:[%s2563_s25 + $0x1a28] sm:$0xff] %v975_v5 }
 0x1d9   : > { %2000 = vst [vmem:[%s2563_s25 + $0x1a30] sm:$0xff] %v976_v6  ;;  %2001 = vst [vmem:[%s2563_s25 + $0x1a38] sm:$0xff] %v977_v7  ;;  %v978_v8 = vld [vmem:[%s2554_s30 + $0x1a40] sm:$0xff]  ;;  %v979_v9 = vld [vmem:[%s2554_s30 + $0x1a48] sm:$0xff] }
 0x1da   : > { %v980_v10 = vld [vmem:[%s2554_s30 + $0x1a50] sm:$0xff]  ;;  %2002 = vst [vmem:[%s2563_s25 + $0x1a40] sm:$0xff] %v978_v8  ;;  %2003 = vst [vmem:[%s2563_s25 + $0x1a48] sm:$0xff] %v979_v9  ;;  %v981_v11 = vld [vmem:[%s2554_s30 + $0x1a58] sm:$0xff] }
 0x1db   : > { %2004 = vst [vmem:[%s2563_s25 + $0x1a50] sm:$0xff] %v980_v10  ;;  %v982_v12 = vld [vmem:[%s2554_s30 + $0x1a60] sm:$0xff]  ;;  %v983_v13 = vld [vmem:[%s2554_s30 + $0x1a68] sm:$0xff]  ;;  %2005 = vst [vmem:[%s2563_s25 + $0x1a58] sm:$0xff] %v981_v11 }
 0x1dc   : > { %2006 = vst [vmem:[%s2563_s25 + $0x1a60] sm:$0xff] %v982_v12  ;;  %2007 = vst [vmem:[%s2563_s25 + $0x1a68] sm:$0xff] %v983_v13  ;;  %v984_v14 = vld [vmem:[%s2554_s30 + $0x1a70] sm:$0xff]  ;;  %v985_v15 = vld [vmem:[%s2554_s30 + $0x1a78] sm:$0xff] }
 0x1dd   : > { %v986_v16 = vld [vmem:[%s2554_s30 + $0x1a80] sm:$0xff]  ;;  %2008 = vst [vmem:[%s2563_s25 + $0x1a70] sm:$0xff] %v984_v14  ;;  %2009 = vst [vmem:[%s2563_s25 + $0x1a78] sm:$0xff] %v985_v15  ;;  %v987_v17 = vld [vmem:[%s2554_s30 + $0x1a88] sm:$0xff] }
 0x1de   : > { %2010 = vst [vmem:[%s2563_s25 + $0x1a80] sm:$0xff] %v986_v16  ;;  %v988_v18 = vld [vmem:[%s2554_s30 + $0x1a90] sm:$0xff]  ;;  %v989_v19 = vld [vmem:[%s2554_s30 + $0x1a98] sm:$0xff]  ;;  %2011 = vst [vmem:[%s2563_s25 + $0x1a88] sm:$0xff] %v987_v17 }
 0x1df   : > { %2012 = vst [vmem:[%s2563_s25 + $0x1a90] sm:$0xff] %v988_v18  ;;  %2013 = vst [vmem:[%s2563_s25 + $0x1a98] sm:$0xff] %v989_v19  ;;  %v990_v20 = vld [vmem:[%s2554_s30 + $0x1aa0] sm:$0xff]  ;;  %v991_v21 = vld [vmem:[%s2554_s30 + $0x1aa8] sm:$0xff] }
 0x1e0   : > { %v992_v22 = vld [vmem:[%s2554_s30 + $0x1ab0] sm:$0xff]  ;;  %2014 = vst [vmem:[%s2563_s25 + $0x1aa0] sm:$0xff] %v990_v20  ;;  %2015 = vst [vmem:[%s2563_s25 + $0x1aa8] sm:$0xff] %v991_v21  ;;  %v993_v23 = vld [vmem:[%s2554_s30 + $0x1ab8] sm:$0xff] }
 0x1e1   : > { %2016 = vst [vmem:[%s2563_s25 + $0x1ab0] sm:$0xff] %v992_v22  ;;  %v994_v24 = vld [vmem:[%s2554_s30 + $0x1ac0] sm:$0xff]  ;;  %v995_v25 = vld [vmem:[%s2554_s30 + $0x1ac8] sm:$0xff]  ;;  %2017 = vst [vmem:[%s2563_s25 + $0x1ab8] sm:$0xff] %v993_v23 }
 0x1e2   : > { %2018 = vst [vmem:[%s2563_s25 + $0x1ac0] sm:$0xff] %v994_v24  ;;  %2019 = vst [vmem:[%s2563_s25 + $0x1ac8] sm:$0xff] %v995_v25  ;;  %v996_v26 = vld [vmem:[%s2554_s30 + $0x1ad0] sm:$0xff]  ;;  %v997_v27 = vld [vmem:[%s2554_s30 + $0x1ad8] sm:$0xff] }
 0x1e3   : > { %v998_v28 = vld [vmem:[%s2554_s30 + $0x1ae0] sm:$0xff]  ;;  %2020 = vst [vmem:[%s2563_s25 + $0x1ad0] sm:$0xff] %v996_v26  ;;  %2021 = vst [vmem:[%s2563_s25 + $0x1ad8] sm:$0xff] %v997_v27  ;;  %v999_v29 = vld [vmem:[%s2554_s30 + $0x1ae8] sm:$0xff] }
 0x1e4   : > { %2022 = vst [vmem:[%s2563_s25 + $0x1ae0] sm:$0xff] %v998_v28  ;;  %v1000_v30 = vld [vmem:[%s2554_s30 + $0x1af0] sm:$0xff]  ;;  %v1001_v31 = vld [vmem:[%s2554_s30 + $0x1af8] sm:$0xff]  ;;  %2023 = vst [vmem:[%s2563_s25 + $0x1ae8] sm:$0xff] %v999_v29 }
 0x1e5   : > { %2024 = vst [vmem:[%s2563_s25 + $0x1af0] sm:$0xff] %v1000_v30  ;;  %2025 = vst [vmem:[%s2563_s25 + $0x1af8] sm:$0xff] %v1001_v31  ;;  %v1002_v32 = vld [vmem:[%s2554_s30 + $0x1b00] sm:$0xff]  ;;  %v1003_v33 = vld [vmem:[%s2554_s30 + $0x1b08] sm:$0xff] }
 0x1e6   : > { %v1004_v34 = vld [vmem:[%s2554_s30 + $0x1b10] sm:$0xff]  ;;  %2026 = vst [vmem:[%s2563_s25 + $0x1b00] sm:$0xff] %v1002_v32  ;;  %2027 = vst [vmem:[%s2563_s25 + $0x1b08] sm:$0xff] %v1003_v33  ;;  %v1005_v35 = vld [vmem:[%s2554_s30 + $0x1b18] sm:$0xff] }
 0x1e7   : > { %2028 = vst [vmem:[%s2563_s25 + $0x1b10] sm:$0xff] %v1004_v34  ;;  %v1006_v36 = vld [vmem:[%s2554_s30 + $0x1b20] sm:$0xff]  ;;  %v1007_v37 = vld [vmem:[%s2554_s30 + $0x1b28] sm:$0xff]  ;;  %2029 = vst [vmem:[%s2563_s25 + $0x1b18] sm:$0xff] %v1005_v35 }
 0x1e8   : > { %2030 = vst [vmem:[%s2563_s25 + $0x1b20] sm:$0xff] %v1006_v36  ;;  %2031 = vst [vmem:[%s2563_s25 + $0x1b28] sm:$0xff] %v1007_v37  ;;  %v1008_v38 = vld [vmem:[%s2554_s30 + $0x1b30] sm:$0xff]  ;;  %v1009_v39 = vld [vmem:[%s2554_s30 + $0x1b38] sm:$0xff] }
 0x1e9   : > { %v1010_v40 = vld [vmem:[%s2554_s30 + $0x1b40] sm:$0xff]  ;;  %2032 = vst [vmem:[%s2563_s25 + $0x1b30] sm:$0xff] %v1008_v38  ;;  %2033 = vst [vmem:[%s2563_s25 + $0x1b38] sm:$0xff] %v1009_v39  ;;  %v1011_v41 = vld [vmem:[%s2554_s30 + $0x1b48] sm:$0xff] }
 0x1ea   : > { %2034 = vst [vmem:[%s2563_s25 + $0x1b40] sm:$0xff] %v1010_v40  ;;  %v1012_v42 = vld [vmem:[%s2554_s30 + $0x1b50] sm:$0xff]  ;;  %v1013_v43 = vld [vmem:[%s2554_s30 + $0x1b58] sm:$0xff]  ;;  %2035 = vst [vmem:[%s2563_s25 + $0x1b48] sm:$0xff] %v1011_v41 }
 0x1eb   : > { %2036 = vst [vmem:[%s2563_s25 + $0x1b50] sm:$0xff] %v1012_v42  ;;  %2037 = vst [vmem:[%s2563_s25 + $0x1b58] sm:$0xff] %v1013_v43  ;;  %v1014_v44 = vld [vmem:[%s2554_s30 + $0x1b60] sm:$0xff]  ;;  %v1015_v45 = vld [vmem:[%s2554_s30 + $0x1b68] sm:$0xff] }
 0x1ec   : > { %v1016_v46 = vld [vmem:[%s2554_s30 + $0x1b70] sm:$0xff]  ;;  %2038 = vst [vmem:[%s2563_s25 + $0x1b60] sm:$0xff] %v1014_v44  ;;  %2039 = vst [vmem:[%s2563_s25 + $0x1b68] sm:$0xff] %v1015_v45  ;;  %v1017_v47 = vld [vmem:[%s2554_s30 + $0x1b78] sm:$0xff] }
 0x1ed   : > { %2040 = vst [vmem:[%s2563_s25 + $0x1b70] sm:$0xff] %v1016_v46  ;;  %v1018_v48 = vld [vmem:[%s2554_s30 + $0x1b80] sm:$0xff]  ;;  %v1019_v49 = vld [vmem:[%s2554_s30 + $0x1b88] sm:$0xff]  ;;  %2041 = vst [vmem:[%s2563_s25 + $0x1b78] sm:$0xff] %v1017_v47 }
 0x1ee   : > { %2042 = vst [vmem:[%s2563_s25 + $0x1b80] sm:$0xff] %v1018_v48  ;;  %2043 = vst [vmem:[%s2563_s25 + $0x1b88] sm:$0xff] %v1019_v49  ;;  %v1020_v50 = vld [vmem:[%s2554_s30 + $0x1b90] sm:$0xff]  ;;  %v1021_v51 = vld [vmem:[%s2554_s30 + $0x1b98] sm:$0xff] }
 0x1ef   : > { %v1022_v52 = vld [vmem:[%s2554_s30 + $0x1ba0] sm:$0xff]  ;;  %2044 = vst [vmem:[%s2563_s25 + $0x1b90] sm:$0xff] %v1020_v50  ;;  %2045 = vst [vmem:[%s2563_s25 + $0x1b98] sm:$0xff] %v1021_v51  ;;  %v1023_v53 = vld [vmem:[%s2554_s30 + $0x1ba8] sm:$0xff] }
 0x1f0   : > { %2046 = vst [vmem:[%s2563_s25 + $0x1ba0] sm:$0xff] %v1022_v52  ;;  %v1024_v54 = vld [vmem:[%s2554_s30 + $0x1bb0] sm:$0xff]  ;;  %v1025_v55 = vld [vmem:[%s2554_s30 + $0x1bb8] sm:$0xff]  ;;  %2047 = vst [vmem:[%s2563_s25 + $0x1ba8] sm:$0xff] %v1023_v53 }
 0x1f1   : > { %2048 = vst [vmem:[%s2563_s25 + $0x1bb0] sm:$0xff] %v1024_v54  ;;  %2049 = vst [vmem:[%s2563_s25 + $0x1bb8] sm:$0xff] %v1025_v55  ;;  %v1026_v56 = vld [vmem:[%s2554_s30 + $0x1bc0] sm:$0xff]  ;;  %v1027_v57 = vld [vmem:[%s2554_s30 + $0x1bc8] sm:$0xff] }
 0x1f2   : > { %v1028_v58 = vld [vmem:[%s2554_s30 + $0x1bd0] sm:$0xff]  ;;  %2050 = vst [vmem:[%s2563_s25 + $0x1bc0] sm:$0xff] %v1026_v56  ;;  %2051 = vst [vmem:[%s2563_s25 + $0x1bc8] sm:$0xff] %v1027_v57  ;;  %v1029_v59 = vld [vmem:[%s2554_s30 + $0x1bd8] sm:$0xff] }
 0x1f3   : > { %2052 = vst [vmem:[%s2563_s25 + $0x1bd0] sm:$0xff] %v1028_v58  ;;  %v1030_v60 = vld [vmem:[%s2554_s30 + $0x1be0] sm:$0xff]  ;;  %v1031_v61 = vld [vmem:[%s2554_s30 + $0x1be8] sm:$0xff]  ;;  %2053 = vst [vmem:[%s2563_s25 + $0x1bd8] sm:$0xff] %v1029_v59 }
 0x1f4   : > { %2054 = vst [vmem:[%s2563_s25 + $0x1be0] sm:$0xff] %v1030_v60  ;;  %2055 = vst [vmem:[%s2563_s25 + $0x1be8] sm:$0xff] %v1031_v61  ;;  %v1032_v62 = vld [vmem:[%s2554_s30 + $0x1bf0] sm:$0xff]  ;;  %v1033_v63 = vld [vmem:[%s2554_s30 + $0x1bf8] sm:$0xff] }
 0x1f5   : > { %v1034_v0 = vld [vmem:[%s2554_s30 + $0x1c00] sm:$0xff]  ;;  %2056 = vst [vmem:[%s2563_s25 + $0x1bf0] sm:$0xff] %v1032_v62  ;;  %2057 = vst [vmem:[%s2563_s25 + $0x1bf8] sm:$0xff] %v1033_v63  ;;  %v1035_v1 = vld [vmem:[%s2554_s30 + $0x1c08] sm:$0xff] }
 0x1f6   : > { %2058 = vst [vmem:[%s2563_s25 + $0x1c00] sm:$0xff] %v1034_v0  ;;  %v1036_v2 = vld [vmem:[%s2554_s30 + $0x1c10] sm:$0xff]  ;;  %v1037_v3 = vld [vmem:[%s2554_s30 + $0x1c18] sm:$0xff]  ;;  %2059 = vst [vmem:[%s2563_s25 + $0x1c08] sm:$0xff] %v1035_v1 }
 0x1f7   : > { %2060 = vst [vmem:[%s2563_s25 + $0x1c10] sm:$0xff] %v1036_v2  ;;  %2061 = vst [vmem:[%s2563_s25 + $0x1c18] sm:$0xff] %v1037_v3  ;;  %v1038_v4 = vld [vmem:[%s2554_s30 + $0x1c20] sm:$0xff]  ;;  %v1039_v5 = vld [vmem:[%s2554_s30 + $0x1c28] sm:$0xff] }
 0x1f8   : > { %v1040_v6 = vld [vmem:[%s2554_s30 + $0x1c30] sm:$0xff]  ;;  %2062 = vst [vmem:[%s2563_s25 + $0x1c20] sm:$0xff] %v1038_v4  ;;  %2063 = vst [vmem:[%s2563_s25 + $0x1c28] sm:$0xff] %v1039_v5  ;;  %v1041_v7 = vld [vmem:[%s2554_s30 + $0x1c38] sm:$0xff] }
 0x1f9   : > { %2064 = vst [vmem:[%s2563_s25 + $0x1c30] sm:$0xff] %v1040_v6  ;;  %v1042_v8 = vld [vmem:[%s2554_s30 + $0x1c40] sm:$0xff]  ;;  %v1043_v9 = vld [vmem:[%s2554_s30 + $0x1c48] sm:$0xff]  ;;  %2065 = vst [vmem:[%s2563_s25 + $0x1c38] sm:$0xff] %v1041_v7 }
 0x1fa   : > { %2066 = vst [vmem:[%s2563_s25 + $0x1c40] sm:$0xff] %v1042_v8  ;;  %2067 = vst [vmem:[%s2563_s25 + $0x1c48] sm:$0xff] %v1043_v9  ;;  %v1044_v10 = vld [vmem:[%s2554_s30 + $0x1c50] sm:$0xff]  ;;  %v1045_v11 = vld [vmem:[%s2554_s30 + $0x1c58] sm:$0xff] }
 0x1fb   : > { %v1046_v12 = vld [vmem:[%s2554_s30 + $0x1c60] sm:$0xff]  ;;  %2068 = vst [vmem:[%s2563_s25 + $0x1c50] sm:$0xff] %v1044_v10  ;;  %2069 = vst [vmem:[%s2563_s25 + $0x1c58] sm:$0xff] %v1045_v11  ;;  %v1047_v13 = vld [vmem:[%s2554_s30 + $0x1c68] sm:$0xff] }
 0x1fc   : > { %2070 = vst [vmem:[%s2563_s25 + $0x1c60] sm:$0xff] %v1046_v12  ;;  %v1048_v14 = vld [vmem:[%s2554_s30 + $0x1c70] sm:$0xff]  ;;  %v1049_v15 = vld [vmem:[%s2554_s30 + $0x1c78] sm:$0xff]  ;;  %2071 = vst [vmem:[%s2563_s25 + $0x1c68] sm:$0xff] %v1047_v13 }
 0x1fd   : > { %2072 = vst [vmem:[%s2563_s25 + $0x1c70] sm:$0xff] %v1048_v14  ;;  %2073 = vst [vmem:[%s2563_s25 + $0x1c78] sm:$0xff] %v1049_v15  ;;  %v1050_v16 = vld [vmem:[%s2554_s30 + $0x1c80] sm:$0xff]  ;;  %v1051_v17 = vld [vmem:[%s2554_s30 + $0x1c88] sm:$0xff] }
 0x1fe   : > { %v1052_v18 = vld [vmem:[%s2554_s30 + $0x1c90] sm:$0xff]  ;;  %2074 = vst [vmem:[%s2563_s25 + $0x1c80] sm:$0xff] %v1050_v16  ;;  %2075 = vst [vmem:[%s2563_s25 + $0x1c88] sm:$0xff] %v1051_v17  ;;  %v1053_v19 = vld [vmem:[%s2554_s30 + $0x1c98] sm:$0xff] }
 0x1ff   : > { %2076 = vst [vmem:[%s2563_s25 + $0x1c90] sm:$0xff] %v1052_v18  ;;  %v1054_v20 = vld [vmem:[%s2554_s30 + $0x1ca0] sm:$0xff]  ;;  %v1055_v21 = vld [vmem:[%s2554_s30 + $0x1ca8] sm:$0xff]  ;;  %2077 = vst [vmem:[%s2563_s25 + $0x1c98] sm:$0xff] %v1053_v19 }
 0x200   : > { %2078 = vst [vmem:[%s2563_s25 + $0x1ca0] sm:$0xff] %v1054_v20  ;;  %2079 = vst [vmem:[%s2563_s25 + $0x1ca8] sm:$0xff] %v1055_v21  ;;  %v1056_v22 = vld [vmem:[%s2554_s30 + $0x1cb0] sm:$0xff]  ;;  %v1057_v23 = vld [vmem:[%s2554_s30 + $0x1cb8] sm:$0xff] }
 0x201   : > { %v1058_v24 = vld [vmem:[%s2554_s30 + $0x1cc0] sm:$0xff]  ;;  %2080 = vst [vmem:[%s2563_s25 + $0x1cb0] sm:$0xff] %v1056_v22  ;;  %2081 = vst [vmem:[%s2563_s25 + $0x1cb8] sm:$0xff] %v1057_v23  ;;  %v1059_v25 = vld [vmem:[%s2554_s30 + $0x1cc8] sm:$0xff] }
 0x202   : > { %2082 = vst [vmem:[%s2563_s25 + $0x1cc0] sm:$0xff] %v1058_v24  ;;  %v1060_v26 = vld [vmem:[%s2554_s30 + $0x1cd0] sm:$0xff]  ;;  %v1061_v27 = vld [vmem:[%s2554_s30 + $0x1cd8] sm:$0xff]  ;;  %2083 = vst [vmem:[%s2563_s25 + $0x1cc8] sm:$0xff] %v1059_v25 }
 0x203   : > { %2084 = vst [vmem:[%s2563_s25 + $0x1cd0] sm:$0xff] %v1060_v26  ;;  %2085 = vst [vmem:[%s2563_s25 + $0x1cd8] sm:$0xff] %v1061_v27  ;;  %v1062_v28 = vld [vmem:[%s2554_s30 + $0x1ce0] sm:$0xff]  ;;  %v1063_v29 = vld [vmem:[%s2554_s30 + $0x1ce8] sm:$0xff] }
 0x204   : > { %v1064_v30 = vld [vmem:[%s2554_s30 + $0x1cf0] sm:$0xff]  ;;  %2086 = vst [vmem:[%s2563_s25 + $0x1ce0] sm:$0xff] %v1062_v28  ;;  %2087 = vst [vmem:[%s2563_s25 + $0x1ce8] sm:$0xff] %v1063_v29  ;;  %v1065_v31 = vld [vmem:[%s2554_s30 + $0x1cf8] sm:$0xff] }
 0x205   : > { %2088 = vst [vmem:[%s2563_s25 + $0x1cf0] sm:$0xff] %v1064_v30  ;;  %v1066_v32 = vld [vmem:[%s2554_s30 + $0x1d00] sm:$0xff]  ;;  %v1067_v33 = vld [vmem:[%s2554_s30 + $0x1d08] sm:$0xff]  ;;  %2089 = vst [vmem:[%s2563_s25 + $0x1cf8] sm:$0xff] %v1065_v31 }
 0x206   : > { %2090 = vst [vmem:[%s2563_s25 + $0x1d00] sm:$0xff] %v1066_v32  ;;  %2091 = vst [vmem:[%s2563_s25 + $0x1d08] sm:$0xff] %v1067_v33  ;;  %v1068_v34 = vld [vmem:[%s2554_s30 + $0x1d10] sm:$0xff]  ;;  %v1069_v35 = vld [vmem:[%s2554_s30 + $0x1d18] sm:$0xff] }
 0x207   : > { %v1070_v36 = vld [vmem:[%s2554_s30 + $0x1d20] sm:$0xff]  ;;  %2092 = vst [vmem:[%s2563_s25 + $0x1d10] sm:$0xff] %v1068_v34  ;;  %2093 = vst [vmem:[%s2563_s25 + $0x1d18] sm:$0xff] %v1069_v35  ;;  %v1071_v37 = vld [vmem:[%s2554_s30 + $0x1d28] sm:$0xff] }
 0x208   : > { %2094 = vst [vmem:[%s2563_s25 + $0x1d20] sm:$0xff] %v1070_v36  ;;  %v1072_v38 = vld [vmem:[%s2554_s30 + $0x1d30] sm:$0xff]  ;;  %v1073_v39 = vld [vmem:[%s2554_s30 + $0x1d38] sm:$0xff]  ;;  %2095 = vst [vmem:[%s2563_s25 + $0x1d28] sm:$0xff] %v1071_v37 }
 0x209   : > { %2096 = vst [vmem:[%s2563_s25 + $0x1d30] sm:$0xff] %v1072_v38  ;;  %2097 = vst [vmem:[%s2563_s25 + $0x1d38] sm:$0xff] %v1073_v39  ;;  %v1074_v40 = vld [vmem:[%s2554_s30 + $0x1d40] sm:$0xff]  ;;  %v1075_v41 = vld [vmem:[%s2554_s30 + $0x1d48] sm:$0xff] }
 0x20a   : > { %v1076_v42 = vld [vmem:[%s2554_s30 + $0x1d50] sm:$0xff]  ;;  %2098 = vst [vmem:[%s2563_s25 + $0x1d40] sm:$0xff] %v1074_v40  ;;  %2099 = vst [vmem:[%s2563_s25 + $0x1d48] sm:$0xff] %v1075_v41  ;;  %v1077_v43 = vld [vmem:[%s2554_s30 + $0x1d58] sm:$0xff] }
 0x20b   : > { %2100 = vst [vmem:[%s2563_s25 + $0x1d50] sm:$0xff] %v1076_v42  ;;  %v1078_v44 = vld [vmem:[%s2554_s30 + $0x1d60] sm:$0xff]  ;;  %v1079_v45 = vld [vmem:[%s2554_s30 + $0x1d68] sm:$0xff]  ;;  %2101 = vst [vmem:[%s2563_s25 + $0x1d58] sm:$0xff] %v1077_v43 }
 0x20c   : > { %2102 = vst [vmem:[%s2563_s25 + $0x1d60] sm:$0xff] %v1078_v44  ;;  %2103 = vst [vmem:[%s2563_s25 + $0x1d68] sm:$0xff] %v1079_v45  ;;  %v1080_v46 = vld [vmem:[%s2554_s30 + $0x1d70] sm:$0xff]  ;;  %v1081_v47 = vld [vmem:[%s2554_s30 + $0x1d78] sm:$0xff] }
 0x20d   : > { %v1082_v48 = vld [vmem:[%s2554_s30 + $0x1d80] sm:$0xff]  ;;  %2104 = vst [vmem:[%s2563_s25 + $0x1d70] sm:$0xff] %v1080_v46  ;;  %2105 = vst [vmem:[%s2563_s25 + $0x1d78] sm:$0xff] %v1081_v47  ;;  %v1083_v49 = vld [vmem:[%s2554_s30 + $0x1d88] sm:$0xff] }
 0x20e   : > { %2106 = vst [vmem:[%s2563_s25 + $0x1d80] sm:$0xff] %v1082_v48  ;;  %v1084_v50 = vld [vmem:[%s2554_s30 + $0x1d90] sm:$0xff]  ;;  %v1085_v51 = vld [vmem:[%s2554_s30 + $0x1d98] sm:$0xff]  ;;  %2107 = vst [vmem:[%s2563_s25 + $0x1d88] sm:$0xff] %v1083_v49 }
 0x20f   : > { %2108 = vst [vmem:[%s2563_s25 + $0x1d90] sm:$0xff] %v1084_v50  ;;  %2109 = vst [vmem:[%s2563_s25 + $0x1d98] sm:$0xff] %v1085_v51  ;;  %v1086_v52 = vld [vmem:[%s2554_s30 + $0x1da0] sm:$0xff]  ;;  %v1087_v53 = vld [vmem:[%s2554_s30 + $0x1da8] sm:$0xff] }
 0x210   : > { %v1088_v54 = vld [vmem:[%s2554_s30 + $0x1db0] sm:$0xff]  ;;  %2110 = vst [vmem:[%s2563_s25 + $0x1da0] sm:$0xff] %v1086_v52  ;;  %2111 = vst [vmem:[%s2563_s25 + $0x1da8] sm:$0xff] %v1087_v53  ;;  %v1089_v55 = vld [vmem:[%s2554_s30 + $0x1db8] sm:$0xff] }
 0x211   : > { %2112 = vst [vmem:[%s2563_s25 + $0x1db0] sm:$0xff] %v1088_v54  ;;  %v1090_v56 = vld [vmem:[%s2554_s30 + $0x1dc0] sm:$0xff]  ;;  %v1091_v57 = vld [vmem:[%s2554_s30 + $0x1dc8] sm:$0xff]  ;;  %2113 = vst [vmem:[%s2563_s25 + $0x1db8] sm:$0xff] %v1089_v55 }
 0x212   : > { %2114 = vst [vmem:[%s2563_s25 + $0x1dc0] sm:$0xff] %v1090_v56  ;;  %2115 = vst [vmem:[%s2563_s25 + $0x1dc8] sm:$0xff] %v1091_v57  ;;  %v1092_v58 = vld [vmem:[%s2554_s30 + $0x1dd0] sm:$0xff]  ;;  %v1093_v59 = vld [vmem:[%s2554_s30 + $0x1dd8] sm:$0xff] }
 0x213   : > { %v1094_v60 = vld [vmem:[%s2554_s30 + $0x1de0] sm:$0xff]  ;;  %2116 = vst [vmem:[%s2563_s25 + $0x1dd0] sm:$0xff] %v1092_v58  ;;  %2117 = vst [vmem:[%s2563_s25 + $0x1dd8] sm:$0xff] %v1093_v59  ;;  %v1095_v61 = vld [vmem:[%s2554_s30 + $0x1de8] sm:$0xff] }
 0x214   : > { %2118 = vst [vmem:[%s2563_s25 + $0x1de0] sm:$0xff] %v1094_v60  ;;  %v1096_v62 = vld [vmem:[%s2554_s30 + $0x1df0] sm:$0xff]  ;;  %v1097_v63 = vld [vmem:[%s2554_s30 + $0x1df8] sm:$0xff]  ;;  %2119 = vst [vmem:[%s2563_s25 + $0x1de8] sm:$0xff] %v1095_v61 }
 0x215   : > { %2120 = vst [vmem:[%s2563_s25 + $0x1df0] sm:$0xff] %v1096_v62  ;;  %2121 = vst [vmem:[%s2563_s25 + $0x1df8] sm:$0xff] %v1097_v63  ;;  %v1098_v0 = vld [vmem:[%s2554_s30 + $0x1e00] sm:$0xff]  ;;  %v1099_v1 = vld [vmem:[%s2554_s30 + $0x1e08] sm:$0xff] }
 0x216   : > { %v1100_v2 = vld [vmem:[%s2554_s30 + $0x1e10] sm:$0xff]  ;;  %2122 = vst [vmem:[%s2563_s25 + $0x1e00] sm:$0xff] %v1098_v0  ;;  %2123 = vst [vmem:[%s2563_s25 + $0x1e08] sm:$0xff] %v1099_v1  ;;  %v1101_v3 = vld [vmem:[%s2554_s30 + $0x1e18] sm:$0xff] }
 0x217   : > { %2124 = vst [vmem:[%s2563_s25 + $0x1e10] sm:$0xff] %v1100_v2  ;;  %v1102_v4 = vld [vmem:[%s2554_s30 + $0x1e20] sm:$0xff]  ;;  %v1103_v5 = vld [vmem:[%s2554_s30 + $0x1e28] sm:$0xff]  ;;  %2125 = vst [vmem:[%s2563_s25 + $0x1e18] sm:$0xff] %v1101_v3 }
 0x218   : > { %2126 = vst [vmem:[%s2563_s25 + $0x1e20] sm:$0xff] %v1102_v4  ;;  %2127 = vst [vmem:[%s2563_s25 + $0x1e28] sm:$0xff] %v1103_v5  ;;  %v1104_v6 = vld [vmem:[%s2554_s30 + $0x1e30] sm:$0xff]  ;;  %v1105_v7 = vld [vmem:[%s2554_s30 + $0x1e38] sm:$0xff] }
 0x219   : > { %v1106_v8 = vld [vmem:[%s2554_s30 + $0x1e40] sm:$0xff]  ;;  %2128 = vst [vmem:[%s2563_s25 + $0x1e30] sm:$0xff] %v1104_v6  ;;  %2129 = vst [vmem:[%s2563_s25 + $0x1e38] sm:$0xff] %v1105_v7  ;;  %v1107_v9 = vld [vmem:[%s2554_s30 + $0x1e48] sm:$0xff] }
 0x21a   : > { %2130 = vst [vmem:[%s2563_s25 + $0x1e40] sm:$0xff] %v1106_v8  ;;  %v1108_v10 = vld [vmem:[%s2554_s30 + $0x1e50] sm:$0xff]  ;;  %v1109_v11 = vld [vmem:[%s2554_s30 + $0x1e58] sm:$0xff]  ;;  %2131 = vst [vmem:[%s2563_s25 + $0x1e48] sm:$0xff] %v1107_v9 }
 0x21b   : > { %2132 = vst [vmem:[%s2563_s25 + $0x1e50] sm:$0xff] %v1108_v10  ;;  %2133 = vst [vmem:[%s2563_s25 + $0x1e58] sm:$0xff] %v1109_v11  ;;  %v1110_v12 = vld [vmem:[%s2554_s30 + $0x1e60] sm:$0xff]  ;;  %v1111_v13 = vld [vmem:[%s2554_s30 + $0x1e68] sm:$0xff] }
 0x21c   : > { %v1112_v14 = vld [vmem:[%s2554_s30 + $0x1e70] sm:$0xff]  ;;  %2134 = vst [vmem:[%s2563_s25 + $0x1e60] sm:$0xff] %v1110_v12  ;;  %2135 = vst [vmem:[%s2563_s25 + $0x1e68] sm:$0xff] %v1111_v13  ;;  %v1113_v15 = vld [vmem:[%s2554_s30 + $0x1e78] sm:$0xff] }
 0x21d   : > { %2136 = vst [vmem:[%s2563_s25 + $0x1e70] sm:$0xff] %v1112_v14  ;;  %v1114_v16 = vld [vmem:[%s2554_s30 + $0x1e80] sm:$0xff]  ;;  %v1115_v17 = vld [vmem:[%s2554_s30 + $0x1e88] sm:$0xff]  ;;  %2137 = vst [vmem:[%s2563_s25 + $0x1e78] sm:$0xff] %v1113_v15 }
 0x21e   : > { %2138 = vst [vmem:[%s2563_s25 + $0x1e80] sm:$0xff] %v1114_v16  ;;  %2139 = vst [vmem:[%s2563_s25 + $0x1e88] sm:$0xff] %v1115_v17  ;;  %v1116_v18 = vld [vmem:[%s2554_s30 + $0x1e90] sm:$0xff]  ;;  %v1117_v19 = vld [vmem:[%s2554_s30 + $0x1e98] sm:$0xff] }
 0x21f   : > { %v1118_v20 = vld [vmem:[%s2554_s30 + $0x1ea0] sm:$0xff]  ;;  %2140 = vst [vmem:[%s2563_s25 + $0x1e90] sm:$0xff] %v1116_v18  ;;  %2141 = vst [vmem:[%s2563_s25 + $0x1e98] sm:$0xff] %v1117_v19  ;;  %v1119_v21 = vld [vmem:[%s2554_s30 + $0x1ea8] sm:$0xff] }
 0x220   : > { %2142 = vst [vmem:[%s2563_s25 + $0x1ea0] sm:$0xff] %v1118_v20  ;;  %v1120_v22 = vld [vmem:[%s2554_s30 + $0x1eb0] sm:$0xff]  ;;  %v1121_v23 = vld [vmem:[%s2554_s30 + $0x1eb8] sm:$0xff]  ;;  %2143 = vst [vmem:[%s2563_s25 + $0x1ea8] sm:$0xff] %v1119_v21 }
 0x221   : > { %2144 = vst [vmem:[%s2563_s25 + $0x1eb0] sm:$0xff] %v1120_v22  ;;  %2145 = vst [vmem:[%s2563_s25 + $0x1eb8] sm:$0xff] %v1121_v23  ;;  %v1122_v24 = vld [vmem:[%s2554_s30 + $0x1ec0] sm:$0xff]  ;;  %v1123_v25 = vld [vmem:[%s2554_s30 + $0x1ec8] sm:$0xff] }
 0x222   : > { %v1124_v26 = vld [vmem:[%s2554_s30 + $0x1ed0] sm:$0xff]  ;;  %2146 = vst [vmem:[%s2563_s25 + $0x1ec0] sm:$0xff] %v1122_v24  ;;  %2147 = vst [vmem:[%s2563_s25 + $0x1ec8] sm:$0xff] %v1123_v25  ;;  %v1125_v27 = vld [vmem:[%s2554_s30 + $0x1ed8] sm:$0xff] }
 0x223   : > { %2148 = vst [vmem:[%s2563_s25 + $0x1ed0] sm:$0xff] %v1124_v26  ;;  %v1126_v28 = vld [vmem:[%s2554_s30 + $0x1ee0] sm:$0xff]  ;;  %v1127_v29 = vld [vmem:[%s2554_s30 + $0x1ee8] sm:$0xff]  ;;  %2149 = vst [vmem:[%s2563_s25 + $0x1ed8] sm:$0xff] %v1125_v27 }
 0x224   : > { %2150 = vst [vmem:[%s2563_s25 + $0x1ee0] sm:$0xff] %v1126_v28  ;;  %2151 = vst [vmem:[%s2563_s25 + $0x1ee8] sm:$0xff] %v1127_v29  ;;  %v1128_v30 = vld [vmem:[%s2554_s30 + $0x1ef0] sm:$0xff]  ;;  %v1129_v31 = vld [vmem:[%s2554_s30 + $0x1ef8] sm:$0xff] }
 0x225   : > { %v1130_v32 = vld [vmem:[%s2554_s30 + $0x1f00] sm:$0xff]  ;;  %2152 = vst [vmem:[%s2563_s25 + $0x1ef0] sm:$0xff] %v1128_v30  ;;  %2153 = vst [vmem:[%s2563_s25 + $0x1ef8] sm:$0xff] %v1129_v31  ;;  %v1131_v33 = vld [vmem:[%s2554_s30 + $0x1f08] sm:$0xff] }
 0x226   : > { %2154 = vst [vmem:[%s2563_s25 + $0x1f00] sm:$0xff] %v1130_v32  ;;  %v1132_v34 = vld [vmem:[%s2554_s30 + $0x1f10] sm:$0xff]  ;;  %v1133_v35 = vld [vmem:[%s2554_s30 + $0x1f18] sm:$0xff]  ;;  %2155 = vst [vmem:[%s2563_s25 + $0x1f08] sm:$0xff] %v1131_v33 }
 0x227   : > { %2156 = vst [vmem:[%s2563_s25 + $0x1f10] sm:$0xff] %v1132_v34  ;;  %2157 = vst [vmem:[%s2563_s25 + $0x1f18] sm:$0xff] %v1133_v35  ;;  %v1134_v36 = vld [vmem:[%s2554_s30 + $0x1f20] sm:$0xff]  ;;  %v1135_v37 = vld [vmem:[%s2554_s30 + $0x1f28] sm:$0xff] }
 0x228   : > { %v1136_v38 = vld [vmem:[%s2554_s30 + $0x1f30] sm:$0xff]  ;;  %2158 = vst [vmem:[%s2563_s25 + $0x1f20] sm:$0xff] %v1134_v36  ;;  %2159 = vst [vmem:[%s2563_s25 + $0x1f28] sm:$0xff] %v1135_v37  ;;  %v1137_v39 = vld [vmem:[%s2554_s30 + $0x1f38] sm:$0xff] }
 0x229   : > { %2160 = vst [vmem:[%s2563_s25 + $0x1f30] sm:$0xff] %v1136_v38  ;;  %v1138_v40 = vld [vmem:[%s2554_s30 + $0x1f40] sm:$0xff]  ;;  %v1139_v41 = vld [vmem:[%s2554_s30 + $0x1f48] sm:$0xff]  ;;  %2161 = vst [vmem:[%s2563_s25 + $0x1f38] sm:$0xff] %v1137_v39 }
 0x22a   : > { %2162 = vst [vmem:[%s2563_s25 + $0x1f40] sm:$0xff] %v1138_v40  ;;  %2163 = vst [vmem:[%s2563_s25 + $0x1f48] sm:$0xff] %v1139_v41  ;;  %v1140_v42 = vld [vmem:[%s2554_s30 + $0x1f50] sm:$0xff]  ;;  %v1141_v43 = vld [vmem:[%s2554_s30 + $0x1f58] sm:$0xff] }
 0x22b   : > { %v1142_v44 = vld [vmem:[%s2554_s30 + $0x1f60] sm:$0xff]  ;;  %2164 = vst [vmem:[%s2563_s25 + $0x1f50] sm:$0xff] %v1140_v42  ;;  %2165 = vst [vmem:[%s2563_s25 + $0x1f58] sm:$0xff] %v1141_v43  ;;  %v1143_v45 = vld [vmem:[%s2554_s30 + $0x1f68] sm:$0xff] }
 0x22c   : > { %2166 = vst [vmem:[%s2563_s25 + $0x1f60] sm:$0xff] %v1142_v44  ;;  %v1144_v46 = vld [vmem:[%s2554_s30 + $0x1f70] sm:$0xff]  ;;  %v1145_v47 = vld [vmem:[%s2554_s30 + $0x1f78] sm:$0xff]  ;;  %2167 = vst [vmem:[%s2563_s25 + $0x1f68] sm:$0xff] %v1143_v45 }
 0x22d   : > { %2168 = vst [vmem:[%s2563_s25 + $0x1f70] sm:$0xff] %v1144_v46  ;;  %2169 = vst [vmem:[%s2563_s25 + $0x1f78] sm:$0xff] %v1145_v47  ;;  %v1146_v48 = vld [vmem:[%s2554_s30 + $0x1f80] sm:$0xff]  ;;  %v1147_v49 = vld [vmem:[%s2554_s30 + $0x1f88] sm:$0xff] }
 0x22e   : > { %v1148_v50 = vld [vmem:[%s2554_s30 + $0x1f90] sm:$0xff]  ;;  %2170 = vst [vmem:[%s2563_s25 + $0x1f80] sm:$0xff] %v1146_v48  ;;  %2171 = vst [vmem:[%s2563_s25 + $0x1f88] sm:$0xff] %v1147_v49  ;;  %v1149_v51 = vld [vmem:[%s2554_s30 + $0x1f98] sm:$0xff] }
 0x22f   : > { %2172 = vst [vmem:[%s2563_s25 + $0x1f90] sm:$0xff] %v1148_v50  ;;  %v1150_v52 = vld [vmem:[%s2554_s30 + $0x1fa0] sm:$0xff]  ;;  %v1151_v53 = vld [vmem:[%s2554_s30 + $0x1fa8] sm:$0xff]  ;;  %2173 = vst [vmem:[%s2563_s25 + $0x1f98] sm:$0xff] %v1149_v51 }
 0x230   : > { %2174 = vst [vmem:[%s2563_s25 + $0x1fa0] sm:$0xff] %v1150_v52  ;;  %2175 = vst [vmem:[%s2563_s25 + $0x1fa8] sm:$0xff] %v1151_v53  ;;  %v1152_v54 = vld [vmem:[%s2554_s30 + $0x1fb0] sm:$0xff]  ;;  %v1153_v55 = vld [vmem:[%s2554_s30 + $0x1fb8] sm:$0xff] }
 0x231   : > { %v1154_v56 = vld [vmem:[%s2554_s30 + $0x1fc0] sm:$0xff]  ;;  %2176 = vst [vmem:[%s2563_s25 + $0x1fb0] sm:$0xff] %v1152_v54  ;;  %2177 = vst [vmem:[%s2563_s25 + $0x1fb8] sm:$0xff] %v1153_v55  ;;  %v1155_v57 = vld [vmem:[%s2554_s30 + $0x1fc8] sm:$0xff] }
 0x232   : > { %2178 = vst [vmem:[%s2563_s25 + $0x1fc0] sm:$0xff] %v1154_v56  ;;  %v1156_v58 = vld [vmem:[%s2554_s30 + $0x1fd0] sm:$0xff]  ;;  %v1157_v59 = vld [vmem:[%s2554_s30 + $0x1fd8] sm:$0xff]  ;;  %2179 = vst [vmem:[%s2563_s25 + $0x1fc8] sm:$0xff] %v1155_v57 }
 0x233   : > { %2180 = vst [vmem:[%s2563_s25 + $0x1fd0] sm:$0xff] %v1156_v58  ;;  %2181 = vst [vmem:[%s2563_s25 + $0x1fd8] sm:$0xff] %v1157_v59  ;;  %v1158_v60 = vld [vmem:[%s2554_s30 + $0x1fe0] sm:$0xff]  ;;  %v1159_v61 = vld [vmem:[%s2554_s30 + $0x1fe8] sm:$0xff] }
 0x234   : > { %v1160_v62 = vld [vmem:[%s2554_s30 + $0x1ff0] sm:$0xff]  ;;  %2182 = vst [vmem:[%s2563_s25 + $0x1fe0] sm:$0xff] %v1158_v60  ;;  %2183 = vst [vmem:[%s2563_s25 + $0x1fe8] sm:$0xff] %v1159_v61  ;;  %v1161_v63 = vld [vmem:[%s2554_s30 + $0x1ff8] sm:$0xff] }
 0x235   : > { %2184 = vst [vmem:[%s2563_s25 + $0x1ff0] sm:$0xff] %v1160_v62  ;;  %2185 = vst [vmem:[%s2563_s25 + $0x1ff8] sm:$0xff] %v1161_v63 }
 0x236   : > { %2385 = shalt.err (!%p2382_p9)
}
 0x237   : > { %s2386_s13 = scalar_lea.hbm %s4604_s29, 131072  ;;  %s2390_s20 = scalar_lea.hbm %s4660_s1, 524288 }
 0x238   : > { %p2387_p13 = scmp.ne.s32.totalorder %s4604_s29, %s2386_s13  ;;  %p2391_p2 = scmp.lt.s32.totalorder %s4604_s29, %s4660_s1 }
 0x239   : > { %p2392_p3 = scmp.lt.s32.totalorder %s2390_s20, %s2386_s13 }
 0x23a   : > { %p2388_p1 = pnand %p2387_p13, %p4669_p11 }
 0x23b   : > { %p2393_p6 = por %p2392_p3, %p2391_p2 }
 0x23c   : > { %p2389_p0 = pneg %p2388_p1 }
 0x23e   : > { %p2394_p10 = pnand %p2393_p6, %p2389_p0 }
 0x240   : > { %2397 = shalt.err (!%p2394_p10)
}
 0x241   : > { %s2442_s24 = smov 2048   ;;  %s2443_s26 = smov 128  }
 0x242   : > { %2296 = dma.vmem_to_hbm [thread:$0]  (%p4669_p11), %s4606_s27, 131072, %s4604_s29, %s2187_s2, %s2442_s24, %s2442_s24, %s2443_s26  }
 0x243 PF: > { %p2307_p12 = scmp.ge.s32.totalorder %s2436_s9, 2  ;;  %s2216_s30 = sand.u32 1, %s2424_s6  }
 0x244   : > { %p4670_p4 = scmp.ne.s32.totalorder %s4666_s19, 0  ;;  %s2217_s25 = scalar_lea.sflag [#allocation4], %s2216_s30 }
 0x246   : > { %p2303_p5 = pnand %p2307_p12, %p4670_p4 }
 0x248   : > { %p2304_p7 = pneg %p2303_p5 }
 0x24a   : > { %2419 = dma.done.wait (%p2304_p7), %s2217_s25, 131072  }
 0x24b   : > { %2421 = vsyncadd (%p2304_p7), %s2217_s25, 4294836224  ;;  %p14_p8 = scmp.ge.s32.totalorder %s2479_s12, 6   ;;  %s4671_s6 = smov %s2428_s7 }
 0x24c   : > { %s4672_s7 = smov %s2432_s8  ;;  %s4673_s8 = smov %s2491_s15 }
 0x24d   : > { %s4674_s9 = smov %s2479_s12  ;;  %16 = sbr.rel (!%p14_p8) target bundleno = 5 (0x5), region = 69 }
 0x252   :  { %2222 = vsyncpa [#allocation3], 1 }
 0x253   :  { %2224 = vsyncpa [#allocation3 + $0x1], 1 }
 0x254   :  { %2225 = vsyncpa [#allocation4], 1 }
 0x255   :  { %2227 = vsyncpa [#allocation4 + $0x1], 1 }

</bundles_post_ra>
